<compile_context>
chip_gen: v7x
topology: tpu7x:2x2x1
jax: 0.10.0
libtpu: 0.0.40
codegen_flags: <defaults>
</compile_context>

<pallas_src>
import functools
from typing import NamedTuple

import numpy as np
import jax
import jax.numpy as jnp
from jax.experimental import pallas as pl
from jax.experimental.pallas import tpu as pltpu

MU = 81.35858
PHOTONS = 4096.0


# ---------------------------------------------------------------------------
# Host-side, one-time setup
# ---------------------------------------------------------------------------
def build_projection_matrix(H, W, n_angles, n_det, min_pt, max_pt):
    """Deterministic parallel-beam line-integral matrix, shape (H*W, n_angles*n_det)."""
    px = (max_pt[0] - min_pt[0]) / W
    py = (max_pt[1] - min_pt[1]) / H
    radius = np.sqrt(((max_pt[0] - min_pt[0]) / 2.0) ** 2 +
                     ((max_pt[1] - min_pt[1]) / 2.0) ** 2)
    det_pos = np.linspace(-radius, radius, n_det)
    thetas = np.linspace(0.0, np.pi, n_angles, endpoint=False)
    n_samples = 2 * max(H, W)
    ts = np.linspace(-radius, radius, n_samples)
    dl = ts[1] - ts[0]

    A = np.zeros((n_angles * n_det, H * W), dtype=np.float32)
    for ai, th in enumerate(thetas):
        d = np.array([np.cos(th), np.sin(th)])       # ray direction
        nrm = np.array([-np.sin(th), np.cos(th)])    # detector axis
        for di, s in enumerate(det_pos):
            pts = s * nrm[None, :] + ts[:, None] * d[None, :]   # (n_samples, 2)
            fx = (pts[:, 0] - min_pt[0]) / px - 0.5
            fy = (pts[:, 1] - min_pt[1]) / py - 0.5
            x0 = np.floor(fx).astype(np.int64)
            y0 = np.floor(fy).astype(np.int64)
            wx = fx - x0
            wy = fy - y0
            row = ai * n_det + di
            for dx, dy, w in ((0, 0, (1 - wx) * (1 - wy)),
                              (1, 0, wx * (1 - wy)),
                              (0, 1, (1 - wx) * wy),
                              (1, 1, wx * wy)):
                xi = x0 + dx
                yi = y0 + dy
                valid = (xi >= 0) & (xi < W) & (yi >= 0) & (yi < H)
                np.add.at(A[row], yi[valid] * W + xi[valid],
                          (w[valid] * dl).astype(np.float32))
    return np.ascontiguousarray(A.T)   # (N, P)


def _round_up(x, m):
    return ((x + m - 1) // m) * m


def _choose_tp(P, max_tp):
    """Lane tile for the sinogram axis: multiple of 128, low padding waste,
    and (when tiled) an even tile count so v7x's 2 TensorCores split evenly."""
    best_key, best_tp = None, 128
    for tp in range(128, max(128, max_tp) + 1, 128):
        num_jp = -(-P // tp)
        waste = num_jp * tp - P
        even_ok = (num_jp == 1) or (num_jp % 2 == 0)
        key = (0 if even_ok else 1, waste, num_jp)
        if best_key is None or key < best_key:
            best_key, best_tp = key, tp
    return best_tp


class ProjectionOperator(NamedTuple):
    a_q: jax.Array      # (N_pad, P_pad) int8, device-resident quantized A
    scale: jax.Array    # (1, P_pad) float32 per-ray dequantization scale
    H: int
    W: int
    n_angles: int
    n_det: int
    tk: int
    tp: int
    use_fullk: bool


def prepare_projection_matrix(a_np, H, W, n_angles, n_det, *,
                              max_tk=4096, max_tp=1024, force_tiled=False):
    """One-time setup: per-ray int8 quantization, lane/sublane padding, upload."""
    N, P = a_np.shape
    assert N == H * W and P == n_angles * n_det

    tp = _choose_tp(P, max_tp)
    P_pad = _round_up(P, tp)
    tk = min(_round_up(max(max_tk, 128), 128), _round_up(N, 128))
    N_pad = _round_up(N, tk)

    # Per-output-column (per-ray) symmetric int8 quantization.  The scale is
    # applied to the f32 accumulator in the epilogue; the MXU only sees the
    # exact int8 values widened to bf16.
    # TODO(synk): validate int8-A error against an f32 reference (expected to
    # sit below the Poisson noise floor for this problem).
    col_max = np.abs(a_np).max(axis=0)
    scale = np.where(col_max > 0.0, col_max / 127.0, 1.0).astype(np.float32)
    a_q = np.clip(np.rint(a_np / scale[None, :]), -127, 127).astype(np.int8)

    a_pad = np.zeros((N_pad, P_pad), dtype=np.int8)
    a_pad[:N, :P] = a_q
    s_pad = np.ones((1, P_pad), dtype=np.float32)
    s_pad[0, :P] = scale

    # Collapse the reduction into one grid step per output tile when the full
    # (N_pad, tp) strip fits a conservative VMEM budget (2x int8 stream buffers
    # + 1x bf16 dequantized copy + margin).
    fullk_fits = 6 * N_pad * tp + 4 * N_pad <= (28 << 20)
    use_fullk = fullk_fits and not force_tiled

    return ProjectionOperator(
        a_q=jax.device_put(jnp.asarray(a_pad)),
        scale=jax.device_put(jnp.asarray(s_pad)),
        H=H, W=W, n_angles=n_angles, n_det=n_det,
        tk=tk, tp=tp, use_fullk=use_fullk)


# ---------------------------------------------------------------------------
# Kernels
# ---------------------------------------------------------------------------
def _poisson_log_epilogue(sino, z):
    """exp -> Poisson (Gaussian approx, pre-generated N(0,1) noise) -> log."""
    # TODO(synk): exact Poisson sampling (np.random.RandomState.poisson) has no
    # vectorized Pallas equivalent; the Gaussian approximation biases rays with
    # very small expected counts (optically thick paths).
    lam = jnp.exp(-sino) * PHOTONS
    counts = jnp.maximum(jnp.round(lam + jnp.sqrt(lam) * z), 0.0)
    data = jnp.maximum(0.1 / PHOTONS, counts / PHOTONS)
    return jnp.log(data) * (-1.0 / MU)


def _radon_noise_kernel_fullk(im_ref, a_ref, s_ref, z_ref, out_ref):
    """grid=(num_jp,): one MXU pass over the full image per sinogram tile."""
    a_bf16 = a_ref[...].astype(jnp.bfloat16)          # exact widen of int8
    sino = jnp.dot(im_ref[...], a_bf16,
                   preferred_element_type=jnp.float32) * s_ref[...]
    out_ref[...] = _poisson_log_epilogue(sino, z_ref[...])


def _radon_noise_kernel_tiled(im_ref, a_ref, s_ref, z_ref, out_ref):
    """grid=(num_jp, num_kk): k is the reduction over image chunks (last axis)."""
    k = pl.program_id(1)

    @pl.when(k == 0)
    def _():
        out_ref[...] = jnp.zeros_like(out_ref)

    a_bf16 = a_ref[...].astype(jnp.bfloat16)          # exact widen of int8
    out_ref[...] += jnp.dot(im_ref[...], a_bf16,
                            preferred_element_type=jnp.float32)

    @pl.when(k == pl.num_programs(1) - 1)
    def _():
        sino = out_ref[...] * s_ref[...]
        out_ref[...] = _poisson_log_epilogue(sino, z_ref[...])


# ---------------------------------------------------------------------------
# Jitted per-call path
# ---------------------------------------------------------------------------
@functools.partial(
    jax.jit,
    static_argnames=("H", "W", "n_angles", "n_det", "tk", "tp", "use_fullk"))
def _recompute_observations_impl(x, a_q, scale, key, *, H, W, n_angles, n_det,
                                 tk, tp, use_fullk):
    N_pad, P_pad = a_q.shape
    N = H * W
    P = n_angles * n_det
    num_jp = P_pad // tp
    num_kk = N_pad // tk

    # skimage.transform.resize(order=1) analogue (bilinear).
    # TODO(synk): skimage applies anti-aliasing when downscaling; edge handling
    # differs slightly from jax.image.resize('linear').
    im = jnp.squeeze(x).astype(jnp.float32)
    im_resized = jax.image.resize(im * MU, (H, W), method="linear")

    # Image pre-cast to bf16 (MXU operand dtype), zero-padded to N_pad.
    im_flat = jnp.zeros((1, N_pad), jnp.float32).at[0, :N].set(
        im_resized.reshape(-1))
    im_bf16 = im_flat.astype(jnp.bfloat16)

    # Pre-generated standard-normal noise for the Gaussian-approx Poisson,
    # drawn at the true ray count so results are tiling-independent.
    z = jnp.zeros((1, P_pad), jnp.float32).at[:, :P].set(
        jax.random.normal(key, (1, P), dtype=jnp.float32))

    if use_fullk:
        kernel = _radon_noise_kernel_fullk
        grid = (num_jp,)
        dims = ("parallel",)
        sino_spec = pl.BlockSpec((1, tp), lambda j: (0, j))
        im_spec = pl.BlockSpec((1, N_pad), lambda j: (0, 0))      # resident
        a_spec = pl.BlockSpec((N_pad, tp), lambda j: (0, j))      # streamed int8
        a_elems, im_bytes = N_pad * tp, 2 * N_pad
    else:
        kernel = _radon_noise_kernel_tiled
        grid = (num_jp, num_kk)
        dims = ("parallel", "arbitrary")
        sino_spec = pl.BlockSpec((1, tp), lambda j, k: (0, j))
        im_spec = pl.BlockSpec((1, tk), lambda j, k: (0, k))      # pipelined bf16
        a_spec = pl.BlockSpec((tk, tp), lambda j, k: (k, j))      # streamed int8
        a_elems, im_bytes = tk * tp, 2 * tk

    # VMEM budget from actual block usage: 2x int8 stream buffers + bf16
    # dequantized copy + a same-size margin for Mosaic temporaries, plus the
    # small pipelined image / scale / noise / output blocks and fixed slack.
    vmem_bytes = 6 * a_elems + 2 * im_bytes + 8 * 4 * tp + (6 << 20)
    vmem_bytes = int(min(max(vmem_bytes, 32 << 20), 64 << 20))

    out = pl.pallas_call(
        kernel,
        out_shape=jax.ShapeDtypeStruct((1, P_pad), jnp.float32),
        grid=grid,
        in_specs=[im_spec, a_spec, sino_spec, sino_spec],
        out_specs=sino_spec,
        compiler_params=pltpu.CompilerParams(
            dimension_semantics=dims,
            vmem_limit_bytes=vmem_bytes),
    )(im_bf16, a_q, scale, z)

    return out[:, :P].reshape(1, 1, n_angles, n_det)


def recompute_observations(x, proj: ProjectionOperator, seed=0):
    """x: (1, 1, h, w) float32 image.  Returns (1, 1, n_angles, n_det) float32."""
    key = jax.random.PRNGKey(seed)
    return _recompute_observations_impl(
        x, proj.a_q, proj.scale, key,
        H=proj.H, W=proj.W, n_angles=proj.n_angles, n_det=proj.n_det,
        tk=proj.tk, tp=proj.tp, use_fullk=proj.use_fullk)


if __name__ == "__main__":
    # Small shapes consistent with the module:
    #   input image 32x32 -> resized to 64x64 (module: arbitrary -> 1000x1000)
    #   sinogram 16 angles x 65 detector pixels (module: 1000 x 513; the odd
    #   detector count exercises the lane-padding path the real shape needs).
    H = W = 64
    n_angles, n_det = 16, 65

    key = jax.random.PRNGKey(0)
    x = jax.random.uniform(key, (1, 1, 32, 32), dtype=jnp.float32)

    a_np = build_projection_matrix(
        H, W, n_angles, n_det, (-0.13, -0.13), (0.13, 0.13))   # (4096, 1040)

    # One-time setup (quantize + pad + upload) -- hoisted out of the call path.
    proj = prepare_projection_matrix(a_np, H, W, n_angles, n_det)
    proj_tiled = prepare_projection_matrix(                     # also exercise
        a_np, H, W, n_angles, n_det,                            # the 2-D grid
        max_tk=1024, max_tp=512, force_tiled=True)              # reduction path

    out = jax.block_until_ready(recompute_observations(x, proj, seed=0))
    out_t = jax.block_until_ready(recompute_observations(x, proj_tiled, seed=0))

    assert out.shape == (1, 1, n_angles, n_det)
    assert out_t.shape == (1, 1, n_angles, n_det)
    assert bool(jnp.all(jnp.isfinite(out)))
    assert bool(jnp.all(jnp.isfinite(out_t)))
    # Both paths consume identical quantized A, image and noise; they can only
    # differ via f32 accumulation order (rarely flipping a Poisson round), so
    # compare on mean error rather than element-wise.
    assert float(jnp.mean(jnp.abs(out - out_t))) < 1e-3
    print("KERNEL_OK")
</pallas_src>

<mosaic_0001>
module attributes {stable_mosaic.version = 11 : i64} {
  func.func @_radon_noise_kernel_fullk(%arg0: i32, %arg1: memref<1x4096xbf16, #tpu.memory_space<vmem>>, %arg2: memref<4096x640xi8, #tpu.memory_space<vmem>>, %arg3: memref<1x640xf32, #tpu.memory_space<vmem>>, %arg4: memref<1x640xf32, #tpu.memory_space<vmem>>, %arg5: memref<1x640xf32, #tpu.memory_space<vmem>>) attributes {dimension_semantics = [#tpu.dimension_semantics<parallel>], iteration_bounds = array<i64: 2>, scalar_prefetch = 0 : i64, scratch_operands = 0 : i64, tpu.core_type = #tpu.core_type<tc>, window_params = [{pipeline_mode = #tpu.pipeline_mode<synchronous>, transform_indices = @transform_0, window_bounds = array<i64: 1, 4096>}, {transform_indices = @transform_1, window_bounds = array<i64: 4096, 640>}, {transform_indices = @transform_2, window_bounds = array<i64: 1, 640>}, {transform_indices = @transform_3, window_bounds = array<i64: 1, 640>}, {transform_indices = @transform_4, window_bounds = array<i64: 1, 640>}]} {
    %c0 = arith.constant 0 : index
    %c0_0 = arith.constant 0 : index
    %0 = vector.load %arg2[%c0, %c0_0] : memref<4096x640xi8, #tpu.memory_space<vmem>>, vector<4096x640xi8>
    %1 = arith.sitofp %0 : vector<4096x640xi8> to vector<4096x640xbf16>
    %c0_1 = arith.constant 0 : index
    %c0_2 = arith.constant 0 : index
    %2 = vector.load %arg1[%c0_1, %c0_2] : memref<1x4096xbf16, #tpu.memory_space<vmem>>, vector<1x4096xbf16>
    %cst = arith.constant dense<0.000000e+00> : vector<1x640xf32>
    %3 = tpu.matmul %2, %1, %cst {dimension_numbers = #tpu.dot_dimension_numbers<[1], [0], [0], [1], [0, 0, 1, 1], [], []>} : vector<1x4096xbf16>, vector<4096x640xbf16>, vector<1x640xf32> -> vector<1x640xf32>
    %c0_3 = arith.constant 0 : index
    %c0_4 = arith.constant 0 : index
    %4 = vector.load %arg3[%c0_3, %c0_4] : memref<1x640xf32, #tpu.memory_space<vmem>>, vector<1x640xf32>
    %5 = arith.mulf %3, %4 : vector<1x640xf32>
    %c0_5 = arith.constant 0 : index
    %c0_6 = arith.constant 0 : index
    %6 = vector.load %arg4[%c0_5, %c0_6] : memref<1x640xf32, #tpu.memory_space<vmem>>, vector<1x640xf32>
    %cst_7 = arith.constant 0.000000e+00 : f32
    %7 = vector.broadcast %cst_7 : f32 to vector<1x640xf32>
    %8 = arith.subf %7, %5 : vector<1x640xf32>
    %9 = math.exp %8 : vector<1x640xf32>
    %cst_8 = arith.constant 4.096000e+03 : f32
    %10 = vector.broadcast %cst_8 : f32 to vector<1x640xf32>
    %11 = arith.mulf %9, %10 : vector<1x640xf32>
    %12 = math.sqrt %11 : vector<1x640xf32>
    %13 = arith.mulf %12, %6 : vector<1x640xf32>
    %14 = arith.addf %11, %13 : vector<1x640xf32>
    %15 = math.roundeven %14 : vector<1x640xf32>
    %cst_9 = arith.constant 0.000000e+00 : f32
    %16 = vector.broadcast %cst_9 : f32 to vector<1x640xf32>
    %17 = arith.maximumf %15, %16 : vector<1x640xf32>
    %cst_10 = arith.constant 4.096000e+03 : f32
    %18 = vector.broadcast %cst_10 : f32 to vector<1x640xf32>
    %19 = arith.divf %17, %18 : vector<1x640xf32>
    %cst_11 = arith.constant 2.44140629E-5 : f32
    %20 = vector.broadcast %cst_11 : f32 to vector<1x640xf32>
    %21 = arith.maximumf %20, %19 : vector<1x640xf32>
    %22 = math.log %21 : vector<1x640xf32>
    %cst_12 = arith.constant -0.0122912666 : f32
    %23 = vector.broadcast %cst_12 : f32 to vector<1x640xf32>
    %24 = arith.mulf %22, %23 : vector<1x640xf32>
    %c0_13 = arith.constant 0 : index
    %c0_14 = arith.constant 0 : index
    %25 = vector.load %arg5[%c0_13, %c0_14] : memref<1x640xf32, #tpu.memory_space<vmem>>, vector<1x640xf32>
    tpu.vector_store %arg5[%c0_13, %c0_14], %24 {strides = array<i32>} : memref<1x640xf32, #tpu.memory_space<vmem>>, vector<1x640xf32>,
    return
  }
  func.func @transform_0(%arg0: i32) -> (i32, i32) {
    %c0_i32 = arith.constant 0 : i32
    %c0_i32_0 = arith.constant 0 : i32
    %c0_i32_1 = arith.constant 0 : i32
    return %c0_i32, %c0_i32_0 : i32, i32
  }
  func.func @transform_1(%arg0: i32) -> (i32, i32) {
    %c0_i32 = arith.constant 0 : i32
    %c0_i32_0 = arith.constant 0 : i32
    return %c0_i32, %arg0 : i32, i32
  }
  func.func @transform_2(%arg0: i32) -> (i32, i32) {
    %c0_i32 = arith.constant 0 : i32
    %c0_i32_0 = arith.constant 0 : i32
    return %c0_i32, %arg0 : i32, i32
  }
  func.func @transform_3(%arg0: i32) -> (i32, i32) {
    %c0_i32 = arith.constant 0 : i32
    %c0_i32_0 = arith.constant 0 : i32
    return %c0_i32, %arg0 : i32, i32
  }
  func.func @transform_4(%arg0: i32) -> (i32, i32) {
    %c0_i32 = arith.constant 0 : i32
    %c0_i32_0 = arith.constant 0 : i32
    return %c0_i32, %arg0 : i32, i32
  }
}

</mosaic_0001>

<bundles_post_ra>
// kernel: _recompute_observations_impl.1
= control target key start
LH: loop header
LB: loop body
LE: loop exit
PB: predicated region body
PF: predicated region fallthrough
CT: control target
= control target key end

     0   :  { %9 = vsyncpa [#allocation3], 0  ;;  %s6595_s0 = inlined_call_operand.vmem [shape: bf16[1,4096], index: 0, kind: input, shape index: {}]   ;;  %s6596_s1 = inlined_call_operand.hbm [shape: s8[4096,1280], index: 1, kind: input, shape index: {}]   ;;  %s6597_s2 = inlined_call_operand.hbm [shape: f32[1,1280], index: 2, kind: input, shape index: {}]   ;;  %s6598_s3 = inlined_call_operand.vmem [shape: f32[1,1280], index: 3, kind: input, shape index: {}]   ;;  %s6599_s4 = inlined_call_operand.vmem [shape: f32[1,1280], index: 4, kind: output, shape index: {}]  }
   0x1   :  { %11 = vsyncpa [#allocation3 + $0x1], 0 }
   0x2   :  { %12 = vsyncpa [#allocation5], 0 }
   0x3   :  { %14 = vsyncpa [#allocation5 + $0x1], 0  ;;  %s5393_s15 = smov 0   ;;  %s5395_s16 = smov 0  }
   0x4   :  { %s5397_s17 = smov 0   ;;  %s5399_s18 = smov 0  }
   0x5 LB: > { %s4688_s19 = sadd.s32 4294967295, %s5360_s18   ;;  %s5413_s20 = sadd.s32 1, %s5360_s18   ;;  %s5360_s18 = sphi %s5399_s18, %s6609_s18   ;;  %s5356_s17 = sphi %s5397_s17, %s6608_s17   ;;  %s5352_s16 = sphi %s5395_s16, %s6607_s16   ;;  %s5348_s15 = sphi %s5393_s15, %s6606_s15  }
   0x6   : > { %s45_s21 = ssub.s32 %s5360_s18, %s5413_s20  ;;  %s48_s22 = sadd.s32 1, %s5356_s17 }
   0x7   : > { %p46_p0 = scmp.eq.s32.totalorder %s45_s21, 0  ;;  %p55_p1 = scmp.ne.s32.totalorder %s5356_s17, %s5352_s16 }
   0x8   : > { %p56_p2 = scmp.eq.s32.totalorder %s5360_s18, 0  ;;  %p61_p3 = scmp.ne.s32.totalorder %s5352_s16, %s5348_s15 }
   0x9   : > { %s5423_s23 = scalar_select %p46_p0, %s5356_s17, %s48_s22  }
   0xa   : > { %p57_p4 = por %p56_p2, %p55_p1  ;;  %p62_p5 = scmp.eq.s32.totalorder %s4688_s19, 0 }
   0xb   : > { %p5191_p6 = scmp.lt.s32.totalorder %s5360_s18, 2  ;;  %s5433_s25 = sand.u32 1, %s5356_s17  }
   0xc   : > { %p5428_p7 = por %p62_p5, %p61_p3  ;;  %s5171_s26 = smul.u32 5120, %s5433_s25 }
   0xd   : > { %s4697_s27 = smul.u32 640, %s5360_s18  ;;  %p5437_p8 = pnand %p5191_p6, %p57_p4 }
   0xe   : > { %s6601_s24 = scalar_select %p5428_p7, 1, 0 }
   0xf   : > { %s5444_s5 = scalar_lea.hbm %s6596_s1, %s4697_s27  ;;  %s170_s6 = scalar_lea.vmem [#allocation2], %s5171_s26 }
  0x10   : > { %s177_s7 = sshll.u32 %s170_s6, 4  ;;  %s167_s8 = scalar_lea.sflag [#allocation3], %s5433_s25  ;;  %s5446_s7 = int_to_ptr.vmem [resolvable:$true] %s177_s7 }
  0x11   : > { %s5262_s9 = scalar_lea.hbm %s5444_s5, 81920  ;;  %p5264_p10 = pneg %p5437_p8 }
  0x12   : > { %p5263_p9 = scmp.ne.s32.totalorder %s5444_s5, %s5262_s9  ;;  %s5267_s12 = scalar_lea.hbm %s6596_s1, 163840 }
  0x13   : > { %p5268_p13 = scmp.lt.u32.totalorder %s5444_s5, %s6596_s1  ;;  %p5269_p0 = scmp.lt.u32.totalorder %s5267_s12, %s5262_s9 }
  0x14   : > { %p5265_p11 = pnand %p5264_p10, %p5263_p9  ;;  %p5271_p2 = scmp.lt.u32.totalorder %s5262_s9, %s5444_s5 }
  0x15   : > { %p5270_p1 = por %p5269_p0, %p5268_p13 }
  0x16   : > { %p5266_p12 = pneg %p5265_p11 }
  0x17   : > { %p5272_p3 = por %p5271_p2, %p5270_p1 }
  0x19   : > { %p5273_p4 = pnand %p5272_p3, %p5266_p12 }
  0x1b   : > { %5276 = shalt.err (!%p5273_p4)
}
  0x1c   : > { %s5277_s15 = scalar_lea.vmem %s5446_s7, 81920  ;;  %s5362_s21 = smov [#allocation2]  }
  0x1d   : > { %p5278_p5 = scmp.ne.s32.totalorder %s5446_s7, %s5277_s15  ;;  %s5282_s22 = sshll.u32 %s5362_s21, 4  ;;  %s5283_s22 = int_to_ptr.vmem [resolvable:$false] %s5282_s22 }
  0x1e   : > { %s5284_s26 = scalar_lea.vmem %s5283_s22, 163840  ;;  %p5285_p11 = scmp.lt.s32.totalorder %s5446_s7, %s5283_s22 }
  0x1f   : > { %p5280_p6 = pnand %p5278_p5, %p5264_p10  ;;  %p5286_p13 = scmp.lt.s32.totalorder %s5284_s26, %s5277_s15 }
  0x21   : > { %p5281_p9 = pneg %p5280_p6  ;;  %p5287_p0 = por %p5286_p13, %p5285_p11 }
  0x23   : > { %p5288_p1 = pnand %p5287_p0, %p5281_p9 }
  0x25   : > { %5291 = shalt.err (!%p5288_p1)
}
  0x26   : > { %s5363_s27 = smov 1280   ;;  %s5364_s29 = smov 640  }
  0x27   : > { %s5365_s30 = smov 40   ;;  %p4694_p12 = scmp.ge.s32.totalorder %s5360_s18, 1 }
  0x28   : > { %5187 = dma.hbm_to_vmem [thread:$0]  (!%p5437_p8), %s5444_s5, 81920, %s5446_s7, %s167_s8, %s5363_s27, %s5364_s29, %s5365_s30  }
  0x29   : > { %p212_p2 = scmp.lt.s32.totalorder %s5360_s18, 3  ;;  %s5172_s6 = smul.u32 5, %s5433_s25 }
  0x2a   : > { %s4698_s10 = smul.u32 80, %s5360_s18  ;;  %s188_s5 = scalar_lea.sflag [#allocation5], %s5433_s25 }
  0x2b   : > { %p5479_p3 = pnand %p4694_p12, %p212_p2  ;;  %s191_s14 = scalar_lea.vmem [#allocation4], %s5172_s6 }
  0x2c   : > { %s5487_s13 = scalar_lea.hbm %s6597_s2, %s4698_s10  ;;  %s199_s15 = sshll.u32 %s191_s14, 4  ;;  %s200_s15 = int_to_ptr.vmem [resolvable:$true] %s199_s15 }
  0x2d   : > { %s6603_s9 = scalar_select %p5479_p3, 1, 0 }
  0x2e   : > { %s5292_s7 = scalar_lea.hbm %s5487_s13, 80  ;;  %s5297_s22 = scalar_lea.hbm %s6597_s2, 160 }
  0x2f   : > { %p5293_p4 = scmp.ne.s32.totalorder %s5487_s13, %s5292_s7  ;;  %p5298_p9 = scmp.lt.u32.totalorder %s5487_s13, %s6597_s2 }
  0x30   : > { %p5299_p11 = scmp.lt.u32.totalorder %s5297_s22, %s5292_s7  ;;  %p5301_p0 = scmp.lt.u32.totalorder %s5292_s7, %s5487_s13 }
  0x31   : > { %p5295_p5 = pnand %p5293_p4, %p5264_p10 }
  0x32   : > { %p5300_p13 = por %p5299_p11, %p5298_p9 }
  0x33   : > { %p5296_p6 = pneg %p5295_p5 }
  0x34   : > { %p5302_p1 = por %p5301_p0, %p5300_p13 }
  0x36   : > { %p5303_p12 = pnand %p5302_p1, %p5296_p6 }
  0x38   : > { %5306 = shalt.err (!%p5303_p12)
}
  0x39   : > { %s5307_s25 = scalar_lea.vmem %s200_s15, 80  ;;  %s5366_s29 = smov [#allocation4]  }
  0x3a   : > { %p5308_p2 = scmp.ne.s32.totalorder %s200_s15, %s5307_s25  ;;  %s5312_s30 = sshll.u32 %s5366_s29, 4  ;;  %s5313_s30 = int_to_ptr.vmem [resolvable:$false] %s5312_s30 }
  0x3b   : > { %s5314_s6 = scalar_lea.vmem %s5313_s30, 160  ;;  %p5315_p7 = scmp.lt.s32.totalorder %s200_s15, %s5313_s30 }
  0x3c   : > { %p5310_p4 = pnand %p5308_p2, %p5264_p10  ;;  %p5316_p3 = scmp.lt.s32.totalorder %s5314_s6, %s5307_s25 }
  0x3e   : > { %p5311_p5 = pneg %p5310_p4  ;;  %p5317_p9 = por %p5316_p3, %p5315_p7 }
  0x40   : > { %p5318_p11 = pnand %p5317_p9, %p5311_p5 }
  0x42   : > { %5321 = shalt.err (!%p5318_p11)
}
  0x43   : > { %5190 = dma.hbm_to_vmem [thread:$0]  (!%p5437_p8), %s5487_s13, 80, %s200_s15, %s188_s5  }
  0x44   : > { %p6604_p6 = scmp.ne.s32.totalorder %s6603_s9, 0 }
  0x45   : > { %s218_s10 = sand.u32 (!%p6604_p6), 1, %s5352_s16   ;;  %p6605_p10 = scmp.ne.s32.totalorder (!%p6604_p6), %s6601_s24, 0 }
  0x46   : > { %216 = sbr.rel (%p6604_p6) target bundleno = 1652 (0x674), region = 36  ;;  %s219_s12 = scalar_lea.sflag (!%p6604_p6), [#allocation3], %s218_s10 }
  0x47   : > { %s5173_s11 = smul.u32 (!%p6604_p6), 5120, %s218_s10 }
  0x49   : > { %s5512_s14 = scalar_lea.vmem (!%p6604_p6), [#allocation2], %s5173_s11 }
  0x4d   : > { %5339 = dma.done.wait (%p6605_p10), %s219_s12, 81920  }
  0x4e   : > { %5341 = vsyncadd (%p6605_p10), %s219_s12, 4294885376  ;;  %s5174_s7 = smul.u32 5, %s218_s10  ;;  %s228_s28 = scalar_lea.sflag [#allocation5], %s218_s10 }
  0x50   : > { %s5518_s8 = scalar_lea.vmem [#allocation4], %s5174_s7 }
  0x51   : > { %5343 = dma.done.wait (%p6605_p10), %s228_s28, 80  }
  0x52   : > { %5345 = vsyncadd (%p6605_p10), %s228_s28, 4294967216  ;;  %v278_v0 = vld [vmem:[%s5512_s14 + $0x8] sm:$0xff]  ;;  %v280_v1 = vld [vmem:[%s5512_s14 + $0x18] sm:$0xff]  ;;  %v5367_v18 = vmov 1966171168   ;;  %v2209_v20 = vlaneseq  ;;  %s266_s27 = smul.u32 5, %s4688_s19 }
  0x53   : > { %v277_v2 = vld [vmem:[%s5512_s14] sm:$0xff]  ;;  %v918_v3 = vunpack.c.l.s8.bf16 %v278_v0  ;;  %v923_v4 = vunpack.c.h.s8.bf16 %v278_v0  ;;  %v920_v5 = vunpack.c.l.s8.bf16 %v280_v1  ;;  %v925_v6 = vunpack.c.h.s8.bf16 %v280_v1  ;;  %v279_v7 = vld [vmem:[%s5512_s14 + $0x10] sm:$0xff]  ;;  %v282_v16 = vld [vmem:[%s5512_s14 + $0x28] sm:$0xff] }
  0x54   : > { %v917_v8 = vunpack.c.l.s8.bf16 %v277_v2  ;;  %v919_v9 = vunpack.c.l.s8.bf16 %v279_v7  ;;  %v283_v10 = vld [vmem:[%s5512_s14 + $0x30] sm:$0xff]  ;;  %v285_v11 = vld [vmem:[%s5512_s14 + $0x40] sm:$0xff]  ;;  %v922_v12 = vunpack.c.h.s8.bf16 %v277_v2  ;;  %v924_v13 = vunpack.c.h.s8.bf16 %v279_v7  ;;  %v284_v17 = vld [vmem:[%s5512_s14 + $0x38] sm:$0xff]  ;;  %p267_p7 = scmp.lt.s32.totalorder %s266_s27, 9 }
  0x55   : > { %2433 = vmatprep.subr.bf16.mxu0 %v918_v3  ;;  %3089 = vmatprep.subr.bf16.mxu1 %v920_v5  ;;  %v928_v14 = vunpack.c.l.s8.bf16 %v283_v10  ;;  %v930_v15 = vunpack.c.l.s8.bf16 %v285_v11  ;;  %v2207_v19 = vunpack.c.l.s4 %v5367_v18  ;;  %v927_v21 = vunpack.c.l.s8.bf16 %v282_v16  ;;  %v288_v27 = vld [vmem:[%s5512_s14 + $0x58] sm:$0xff]  ;;  %v290_v28 = vld [vmem:[%s5512_s14 + $0x68] sm:$0xff]  ;;  %v287_v33 = vld [vmem:[%s5512_s14 + $0x50] sm:$0xff] }
  0x56   : > { %2434 = vmatpush1.bf16.msra.mxu0 %v917_v8  ;;  %3090 = vmatpush1.bf16.msra.mxu1 %v919_v9  ;;  %v929_v22 = vunpack.c.l.s8.bf16 %v284_v17  ;;  %v933_v23 = vunpack.c.h.s8.bf16 %v283_v10  ;;  %v935_v24 = vunpack.c.h.s8.bf16 %v285_v11  ;;  %v5533_v26 = vshrl.u32 %v2209_v20, 7  ;;  %v289_v34 = vld [vmem:[%s5512_s14 + $0x60] sm:$0xff]  ;;  %v295_v43 = vld [vmem:[%s5512_s14 + $0x90] sm:$0xff]  ;;  %v292_v49 = vld [vmem:[%s5512_s14 + $0x78] sm:$0xff]  ;;  %s6611_s27 = smov (!%p267_p7, %s266_s27), 9 }
  0x57   : > { %2435 = vmatprep.subr.bf16.mxu0 %v923_v4  ;;  %3091 = vmatprep.subr.bf16.mxu1 %v925_v6  ;;  %v2208_v25 = vunpack.c.0.s8 %v2207_v19  ;;  %v932_v29 = vunpack.c.h.s8.bf16 %v282_v16  ;;  %v934_v30 = vunpack.c.h.s8.bf16 %v284_v17  ;;  %v938_v31 = vunpack.c.l.s8.bf16 %v288_v27  ;;  %v5545_v36 = vld [vmem:[%s6595_s0] sm:$0xff]  ;;  %v294_v50 = vld [vmem:[%s5512_s14 + $0x88] sm:$0xff]  ;;  %v300_v57 = vld [vmem:[%s5512_s14 + $0xb8] sm:$0xff]  ;;  %s269_s25 = scalar_lea.vmem %s6598_s3, %s6611_s27  ;;  %s274_s6 = scalar_lea.vmem %s6599_s4, %s6611_s27 }
  0x58   : > { %v940_v32 = vunpack.c.l.s8.bf16 %v290_v28  ;;  %v937_v37 = vunpack.c.l.s8.bf16 %v287_v33  ;;  %v939_v38 = vunpack.c.l.s8.bf16 %v289_v34  ;;  %v943_v39 = vunpack.c.h.s8.bf16 %v288_v27  ;;  %v293_v42 = vld [vmem:[%s5512_s14 + $0x80] sm:$0xff]  ;;  %v298_v56 = vld [vmem:[%s5512_s14 + $0xa8] sm:$0xff]  ;;  %v299_v63 = vld [vmem:[%s5512_s14 + $0xb0] sm:$0xff] }
  0x59   : > { %v5540_v35 = vsub.s32 %v2208_v25, %v5533_v26  ;;  %v945_v40 = vunpack.c.h.s8.bf16 %v290_v28  ;;  %v942_v45 = vunpack.c.h.s8.bf16 %v287_v33  ;;  %v944_v46 = vunpack.c.h.s8.bf16 %v289_v34  ;;  %v297_v62 = vld [vmem:[%s5512_s14 + $0xa0] sm:$0xff]  ;;  %v303_v4 = vld [vmem:[%s5512_s14 + $0xd0] sm:$0xff]  ;;  %v302_v10 = vld [vmem:[%s5512_s14 + $0xc8] sm:$0xff] }
  0x5a   : > { %2436 = vmatpush1.bf16.msra.mxu0 %v922_v12  ;;  %3092 = vmatpush1.bf16.msra.mxu1 %v924_v13  ;;  %v948_v47 = vunpack.c.l.s8.bf16 %v293_v42  ;;  %v950_v48 = vunpack.c.l.s8.bf16 %v295_v43  ;;  %v947_v52 = vunpack.c.l.s8.bf16 %v292_v49  ;;  %v949_v53 = vunpack.c.l.s8.bf16 %v294_v50  ;;  %v305_v5 = vld [vmem:[%s5512_s14 + $0xe0] sm:$0xff]  ;;  %v304_v11 = vld [vmem:[%s5512_s14 + $0xd8] sm:$0xff]  ;;  %v310_v17 = vld [vmem:[%s5512_s14 + $0x108] sm:$0xff] }
  0x5b   : > { %2437 = vmatprep.subr.bf16.mxu0 %v928_v14  ;;  %3093 = vmatprep.subr.bf16.mxu1 %v930_v15  ;;  %v5549_v41 = vrot.slane %v5545_v36, %v5540_v35  ;;  %v953_v54 = vunpack.c.h.s8.bf16 %v293_v42  ;;  %v955_v55 = vunpack.c.h.s8.bf16 %v295_v43  ;;  %v952_v58 = vunpack.c.h.s8.bf16 %v292_v49  ;;  %v308_v16 = vld [vmem:[%s5512_s14 + $0xf8] sm:$0xff] }
  0x5c   : > { %v954_v59 = vunpack.c.h.s8.bf16 %v294_v50  ;;  %v958_v60 = vunpack.c.l.s8.bf16 %v298_v56  ;;  %v960_v61 = vunpack.c.l.s8.bf16 %v300_v57  ;;  %v957_v0 = vunpack.c.l.s8.bf16 %v297_v62 }
  0x5d   : > { %v2220_v44 = vcombine.high %v5549_v41, %v5549_v41  ;;  %v959_v1 = vunpack.c.l.s8.bf16 %v299_v63  ;;  %v963_v2 = vunpack.c.h.s8.bf16 %v298_v56  ;;  %v965_v3 = vunpack.c.h.s8.bf16 %v300_v57 }
  0x5e   : > { %2438 = vmatpush1.bf16.msra.mxu0 %v927_v21  ;;  %3094 = vmatpush1.bf16.msra.mxu1 %v929_v22  ;;  %v962_v6 = vunpack.c.h.s8.bf16 %v297_v62  ;;  %v964_v7 = vunpack.c.h.s8.bf16 %v299_v63  ;;  %v968_v8 = vunpack.c.l.s8.bf16 %v303_v4  ;;  %v970_v9 = vunpack.c.l.s8.bf16 %v305_v5 }
  0x5f   : > { %2439 = vmatprep.subr.bf16.mxu0 %v933_v23  ;;  %3095 = vmatprep.subr.bf16.mxu1 %v935_v24  ;;  %v5558_v51 = vrot.slane %v2220_v44, %v5540_v35  ;;  %v967_v12 = vunpack.c.l.s8.bf16 %v302_v10  ;;  %v969_v13 = vunpack.c.l.s8.bf16 %v304_v11  ;;  %v973_v14 = vunpack.c.h.s8.bf16 %v303_v4  ;;  %v307_v23 = vld [vmem:[%s5512_s14 + $0xf0] sm:$0xff]  ;;  %v309_v24 = vld [vmem:[%s5512_s14 + $0x100] sm:$0xff] }
  0x60   : > { %v975_v15 = vunpack.c.h.s8.bf16 %v305_v5  ;;  %v972_v18 = vunpack.c.h.s8.bf16 %v302_v10  ;;  %v974_v19 = vunpack.c.h.s8.bf16 %v304_v11  ;;  %v978_v21 = vunpack.c.l.s8.bf16 %v308_v16 }
  0x61   : > { %2465 = vmatprep.mubr.bf16.mxu0 %v5558_v51  ;;  %3121 = vmatprep.mubr.bf16.mxu1 %v5558_v51  ;;  %v980_v22 = vunpack.c.l.s8.bf16 %v310_v17  ;;  %v977_v25 = vunpack.c.l.s8.bf16 %v307_v23  ;;  %v979_v27 = vunpack.c.l.s8.bf16 %v309_v24  ;;  %v983_v28 = vunpack.c.h.s8.bf16 %v308_v16 }
  0x62   : > { %2440 = vmatpush1.bf16.msra.mxu0 %v932_v29  ;;  %3096 = vmatpush1.bf16.msra.mxu1 %v934_v30  ;;  %v985_v29 = vunpack.c.h.s8.bf16 %v310_v17  ;;  %v313_v30 = vld [vmem:[%s5512_s14 + $0x120] sm:$0xff]  ;;  %v984_v33 = vunpack.c.h.s8.bf16 %v309_v24  ;;  %vm4592_vm10 = vcmp.lt.s32.totalorder %v2209_v20, 640 }
  0x63   : > { %2441 = vmatprep.subr.bf16.mxu0 %v938_v31  ;;  %3097 = vmatprep.subr.bf16.mxu1 %v940_v32  ;;  %v315_v31 = vld [vmem:[%s5512_s14 + $0x130] sm:$0xff]  ;;  %v982_v32 = vunpack.c.h.s8.bf16 %v307_v23  ;;  %v988_v34 = vunpack.c.l.s8.bf16 %v313_v30  ;;  %v993_v43 = vunpack.c.h.s8.bf16 %v313_v30 }
  0x64   : > { %v995_v44 = vunpack.c.h.s8.bf16 %v315_v31 }
  0x66   : > { %2442 = vmatpush1.bf16.msra.mxu0 %v937_v37  ;;  %3098 = vmatpush1.bf16.msra.mxu1 %v939_v38  ;;  %v990_v37 = vunpack.c.l.s8.bf16 %v315_v31  ;;  %v312_v38 = vld [vmem:[%s5512_s14 + $0x118] sm:$0xff] }
  0x67   : > { %2443 = vmatprep.subr.bf16.mxu0 %v943_v39  ;;  %3099 = vmatprep.subr.bf16.mxu1 %v945_v40  ;;  %v314_v39 = vld [vmem:[%s5512_s14 + $0x128] sm:$0xff]  ;;  %v987_v40 = vunpack.c.l.s8.bf16 %v312_v38 }
  0x68   : > { %v989_v42 = vunpack.c.l.s8.bf16 %v314_v39 }
  0x6a   : > { %2444 = vmatpush1.bf16.msra.mxu0 %v942_v45  ;;  %3100 = vmatpush1.bf16.msra.mxu1 %v944_v46  ;;  %v318_v45 = vld [vmem:[%s5512_s14 + $0x148] sm:$0xff]  ;;  %v320_v46 = vld [vmem:[%s5512_s14 + $0x158] sm:$0xff] }
  0x6b   : > { %2445 = vmatprep.subr.bf16.mxu0 %v948_v47  ;;  %3101 = vmatprep.subr.bf16.mxu1 %v950_v48  ;;  %v992_v47 = vunpack.c.h.s8.bf16 %v312_v38  ;;  %v994_v48 = vunpack.c.h.s8.bf16 %v314_v39  ;;  %v998_v49 = vunpack.c.l.s8.bf16 %v318_v45  ;;  %v1000_v50 = vunpack.c.l.s8.bf16 %v320_v46 }
  0x6c   : > { %v1003_v57 = vunpack.c.h.s8.bf16 %v318_v45 }
  0x6e   : > { %2446 = vmatpush1.bf16.msra.mxu0 %v947_v52  ;;  %3102 = vmatpush1.bf16.msra.mxu1 %v949_v53  ;;  %v317_v52 = vld [vmem:[%s5512_s14 + $0x140] sm:$0xff]  ;;  %v319_v53 = vld [vmem:[%s5512_s14 + $0x150] sm:$0xff] }
  0x6f   : > { %2447 = vmatprep.subr.bf16.mxu0 %v953_v54  ;;  %3103 = vmatprep.subr.bf16.mxu1 %v955_v55  ;;  %v5584_v54 = vrot.slane %v5549_v41, %v5540_v35  ;;  %v997_v55 = vunpack.c.l.s8.bf16 %v317_v52  ;;  %v999_v56 = vunpack.c.l.s8.bf16 %v319_v53  ;;  %v1002_v41 = vunpack.c.h.s8.bf16 %v317_v52 }
  0x70   : > { %v1004_v62 = vunpack.c.h.s8.bf16 %v319_v53 }
  0x72   : > { %2448 = vmatpush1.bf16.msra.mxu0 %v952_v58  ;;  %3104 = vmatpush1.bf16.msra.mxu1 %v954_v59  ;;  %v1005_v58 = vunpack.c.h.s8.bf16 %v320_v46  ;;  %v323_v59 = vld [vmem:[%s5512_s14 + $0x170] sm:$0xff] }
  0x73   : > { %2449 = vmatprep.subr.bf16.mxu0 %v958_v60  ;;  %3105 = vmatprep.subr.bf16.mxu1 %v960_v61  ;;  %v325_v60 = vld [vmem:[%s5512_s14 + $0x180] sm:$0xff]  ;;  %v5590_v61 = vcombine.high %v5558_v51, %v5558_v51  ;;  %v1008_v63 = vunpack.c.l.s8.bf16 %v323_v59  ;;  %v1013_v5 = vunpack.c.h.s8.bf16 %v323_v59 }
  0x76   : > { %2450 = vmatpush1.bf16.msra.mxu0 %v957_v0  ;;  %3106 = vmatpush1.bf16.msra.mxu1 %v959_v1  ;;  %v1010_v0 = vunpack.c.l.s8.bf16 %v325_v60  ;;  %v322_v1 = vld [vmem:[%s5512_s14 + $0x168] sm:$0xff] }
  0x77   : > { %2451 = vmatprep.subr.bf16.mxu0 %v963_v2  ;;  %3107 = vmatprep.subr.bf16.mxu1 %v965_v3  ;;  %v324_v2 = vld [vmem:[%s5512_s14 + $0x178] sm:$0xff]  ;;  %v1007_v3 = vunpack.c.l.s8.bf16 %v322_v1 }
  0x78   : > { %v1009_v4 = vunpack.c.l.s8.bf16 %v324_v2  ;;  %v1014_v10 = vunpack.c.h.s8.bf16 %v324_v2 }
  0x7a   : > { %2452 = vmatpush1.bf16.msra.mxu0 %v962_v6  ;;  %3108 = vmatpush1.bf16.msra.mxu1 %v964_v7  ;;  %v1015_v6 = vunpack.c.h.s8.bf16 %v325_v60  ;;  %v328_v7 = vld [vmem:[%s5512_s14 + $0x198] sm:$0xff] }
  0x7b   : > { %2453 = vmatprep.subr.bf16.mxu0 %v968_v8  ;;  %3109 = vmatprep.subr.bf16.mxu1 %v970_v9  ;;  %v330_v8 = vld [vmem:[%s5512_s14 + $0x1a8] sm:$0xff]  ;;  %v1012_v9 = vunpack.c.h.s8.bf16 %v322_v1  ;;  %v1018_v11 = vunpack.c.l.s8.bf16 %v328_v7  ;;  %v1023_v17 = vunpack.c.h.s8.bf16 %v328_v7 }
  0x7e   : > { %2454 = vmatpush1.bf16.msra.mxu0 %v967_v12  ;;  %3110 = vmatpush1.bf16.msra.mxu1 %v969_v13  ;;  %v1020_v12 = vunpack.c.l.s8.bf16 %v330_v8  ;;  %v327_v13 = vld [vmem:[%s5512_s14 + $0x190] sm:$0xff] }
  0x7f   : > { %2455 = vmatprep.subr.bf16.mxu0 %v973_v14  ;;  %3111 = vmatprep.subr.bf16.mxu1 %v975_v15  ;;  %v329_v14 = vld [vmem:[%s5512_s14 + $0x1a0] sm:$0xff]  ;;  %v1017_v15 = vunpack.c.l.s8.bf16 %v327_v13 }
  0x80   : > { %v1019_v16 = vunpack.c.l.s8.bf16 %v329_v14  ;;  %v1024_v23 = vunpack.c.h.s8.bf16 %v329_v14 }
  0x82   : > { %2456 = vmatpush1.bf16.msra.mxu0 %v972_v18  ;;  %3112 = vmatpush1.bf16.msra.mxu1 %v974_v19  ;;  %v1025_v18 = vunpack.c.h.s8.bf16 %v330_v8  ;;  %v333_v19 = vld [vmem:[%s5512_s14 + $0x1c0] sm:$0xff] }
  0x83   : > { %2457 = vmatprep.subr.bf16.mxu0 %v978_v21  ;;  %3113 = vmatprep.subr.bf16.mxu1 %v980_v22  ;;  %v335_v21 = vld [vmem:[%s5512_s14 + $0x1d0] sm:$0xff]  ;;  %v1022_v22 = vunpack.c.h.s8.bf16 %v327_v13  ;;  %v1028_v24 = vunpack.c.l.s8.bf16 %v333_v19  ;;  %v1033_v31 = vunpack.c.h.s8.bf16 %v333_v19 }
  0x86   : > { %2458 = vmatpush1.bf16.msra.mxu0 %v977_v25  ;;  %3114 = vmatpush1.bf16.msra.mxu1 %v979_v27  ;;  %v1030_v25 = vunpack.c.l.s8.bf16 %v335_v21  ;;  %v332_v27 = vld [vmem:[%s5512_s14 + $0x1b8] sm:$0xff] }
  0x87   : > { %2459 = vmatprep.subr.bf16.mxu0 %v983_v28  ;;  %3115 = vmatprep.subr.bf16.mxu1 %v985_v29  ;;  %v334_v28 = vld [vmem:[%s5512_s14 + $0x1c8] sm:$0xff]  ;;  %v1027_v29 = vunpack.c.l.s8.bf16 %v332_v27 }
  0x88   : > { %v1029_v30 = vunpack.c.l.s8.bf16 %v334_v28  ;;  %v1034_v38 = vunpack.c.h.s8.bf16 %v334_v28 }
  0x8a   : > { %2460 = vmatpush1.bf16.msra.mxu0 %v982_v32  ;;  %3116 = vmatpush1.bf16.msra.mxu1 %v984_v33  ;;  %v1035_v32 = vunpack.c.h.s8.bf16 %v335_v21  ;;  %v338_v33 = vld [vmem:[%s5512_s14 + $0x1e8] sm:$0xff] }
  0x8b   : > { %2461 = vmatprep.subr.bf16.mxu0 %v988_v34  ;;  %3117 = vmatprep.subr.bf16.mxu1 %v990_v37  ;;  %v340_v34 = vld [vmem:[%s5512_s14 + $0x1f8] sm:$0xff]  ;;  %v1032_v37 = vunpack.c.h.s8.bf16 %v332_v27  ;;  %v1038_v39 = vunpack.c.l.s8.bf16 %v338_v33  ;;  %v1043_v46 = vunpack.c.h.s8.bf16 %v338_v33 }
  0x8e   : > { %2462 = vmatpush1.bf16.msra.mxu0 %v987_v40  ;;  %3118 = vmatpush1.bf16.msra.mxu1 %v989_v42  ;;  %v1040_v40 = vunpack.c.l.s8.bf16 %v340_v34  ;;  %v337_v42 = vld [vmem:[%s5512_s14 + $0x1e0] sm:$0xff] }
  0x8f   : > { %2463 = vmatprep.subr.bf16.mxu0 %v993_v43  ;;  %3119 = vmatprep.subr.bf16.mxu1 %v995_v44  ;;  %v339_v43 = vld [vmem:[%s5512_s14 + $0x1f0] sm:$0xff]  ;;  %v1037_v44 = vunpack.c.l.s8.bf16 %v337_v42 }
  0x90   : > { %v1039_v45 = vunpack.c.l.s8.bf16 %v339_v43  ;;  %v1044_v52 = vunpack.c.h.s8.bf16 %v339_v43  ;;  %v365_v43 = vld [vmem:[%s5512_s14 + $0x2c0] sm:$0xff] }
  0x92   : > { %2464 = vmatpush1.bf16.msra.mxu0 %v992_v47  ;;  %3120 = vmatpush1.bf16.msra.mxu1 %v994_v48  ;;  %v1045_v47 = vunpack.c.h.s8.bf16 %v340_v34  ;;  %v343_v48 = vld [vmem:[%s5512_s14 + $0x210] sm:$0xff]  ;;  %v5635_v34 = vcombine.high %v5584_v54, %v5584_v54 }
  0x93   : > { %2474 = vmatprep.subr.bf16.mxu0 %v998_v49  ;;  %3130 = vmatprep.subr.bf16.mxu1 %v1000_v50  ;;  %v345_v49 = vld [vmem:[%s5512_s14 + $0x220] sm:$0xff]  ;;  %v1042_v50 = vunpack.c.h.s8.bf16 %v337_v42  ;;  %v1048_v53 = vunpack.c.l.s8.bf16 %v343_v48  ;;  %v1053_v60 = vunpack.c.h.s8.bf16 %v343_v48  ;;  %v363_v42 = vld [vmem:[%s5512_s14 + $0x2b0] sm:$0xff]  ;;  %v1090_v48 = vunpack.c.l.s8.bf16 %v365_v43 }
  0x95   : > { %2466 = vmatmul.mubr.bf16.vlgmr.msra.gmra.mrb[0].mxu0 %v5584_v54  ;;  %3122 = vmatmul.mubr.bf16.vlgmr.msra.gmra.mrb[0].mxu1 %v5584_v54 }
  0x96   : > { %2475 = vmatpush1.bf16.msra.mxu0 %v997_v55  ;;  %3131 = vmatpush1.bf16.msra.mxu1 %v999_v56  ;;  %v1050_v55 = vunpack.c.l.s8.bf16 %v345_v49  ;;  %v342_v56 = vld [vmem:[%s5512_s14 + $0x208] sm:$0xff] }
  0x97   : > { %2476 = vmatprep.subr.bf16.mxu0 %v1003_v57  ;;  %3132 = vmatprep.subr.bf16.mxu1 %v1005_v58  ;;  %v344_v57 = vld [vmem:[%s5512_s14 + $0x218] sm:$0xff]  ;;  %v1047_v58 = vunpack.c.l.s8.bf16 %v342_v56 }
  0x98   : > { %2506 = vmatprep.mubr.bf16.mxu0 %v5590_v61  ;;  %3162 = vmatprep.mubr.bf16.mxu1 %v5590_v61  ;;  %v1049_v59 = vunpack.c.l.s8.bf16 %v344_v57  ;;  %v1054_v1 = vunpack.c.h.s8.bf16 %v344_v57  ;;  %v368_v57 = vld [vmem:[%s5512_s14 + $0x2d8] sm:$0xff] }
  0x9a   : > { %2477 = vmatpush1.bf16.msra.mxu0 %v1002_v41  ;;  %3133 = vmatpush1.bf16.msra.mxu1 %v1004_v62  ;;  %v1055_v41 = vunpack.c.h.s8.bf16 %v345_v49  ;;  %v348_v62 = vld [vmem:[%s5512_s14 + $0x238] sm:$0xff]  ;;  %v362_v49 = vld [vmem:[%s5512_s14 + $0x2a8] sm:$0xff] }
  0x9b   : > { %2478 = vmatprep.subr.bf16.mxu0 %v1008_v63  ;;  %3134 = vmatprep.subr.bf16.mxu1 %v1010_v0  ;;  %v350_v63 = vld [vmem:[%s5512_s14 + $0x248] sm:$0xff]  ;;  %v1052_v0 = vunpack.c.h.s8.bf16 %v342_v56  ;;  %v1058_v2 = vunpack.c.l.s8.bf16 %v348_v62  ;;  %v1063_v8 = vunpack.c.h.s8.bf16 %v348_v62  ;;  %v1095_v56 = vunpack.c.h.s8.bf16 %v365_v43 }
  0x9e   : > { %2479 = vmatpush1.bf16.msra.mxu0 %v1007_v3  ;;  %3135 = vmatpush1.bf16.msra.mxu1 %v1009_v4  ;;  %v1060_v3 = vunpack.c.l.s8.bf16 %v350_v63  ;;  %v347_v4 = vld [vmem:[%s5512_s14 + $0x230] sm:$0xff] }
  0x9f   : > { %2480 = vmatprep.subr.bf16.mxu0 %v1013_v5  ;;  %3136 = vmatprep.subr.bf16.mxu1 %v1015_v6  ;;  %v349_v5 = vld [vmem:[%s5512_s14 + $0x240] sm:$0xff]  ;;  %v1057_v6 = vunpack.c.l.s8.bf16 %v347_v4 }
  0xa0   : > { %v1059_v7 = vunpack.c.l.s8.bf16 %v349_v5  ;;  %v1064_v13 = vunpack.c.h.s8.bf16 %v349_v5  ;;  %v373_v5 = vld [vmem:[%s5512_s14 + $0x300] sm:$0xff] }
  0xa2   : > { %2481 = vmatpush1.bf16.msra.mxu0 %v1012_v9  ;;  %3137 = vmatpush1.bf16.msra.mxu1 %v1014_v10  ;;  %v1065_v9 = vunpack.c.h.s8.bf16 %v350_v63  ;;  %v353_v10 = vld [vmem:[%s5512_s14 + $0x260] sm:$0xff]  ;;  %v367_v63 = vld [vmem:[%s5512_s14 + $0x2d0] sm:$0xff] }
  0xa3   : > { %2482 = vmatprep.subr.bf16.mxu0 %v1018_v11  ;;  %3138 = vmatprep.subr.bf16.mxu1 %v1020_v12  ;;  %v355_v11 = vld [vmem:[%s5512_s14 + $0x270] sm:$0xff]  ;;  %v1062_v12 = vunpack.c.h.s8.bf16 %v347_v4  ;;  %v1068_v14 = vunpack.c.l.s8.bf16 %v353_v10 }
  0xa6   : > { %2483 = vmatpush1.bf16.msra.mxu0 %v1017_v15  ;;  %3139 = vmatpush1.bf16.msra.mxu1 %v1019_v16  ;;  %v1070_v15 = vunpack.c.l.s8.bf16 %v355_v11  ;;  %v352_v16 = vld [vmem:[%s5512_s14 + $0x258] sm:$0xff] }
  0xa7   : > { %2484 = vmatprep.subr.bf16.mxu0 %v1023_v17  ;;  %3140 = vmatprep.subr.bf16.mxu1 %v1025_v18  ;;  %v354_v17 = vld [vmem:[%s5512_s14 + $0x268] sm:$0xff]  ;;  %v2205_v18 = vcombine.high %v5545_v36, %v5545_v36  ;;  %v1067_v19 = vunpack.c.l.s8.bf16 %v352_v16  ;;  %v1072_v28 = vunpack.c.h.s8.bf16 %v352_v16 }
  0xa8   : > { %v1069_v21 = vunpack.c.l.s8.bf16 %v354_v17 }
  0xa9   : > { %v5627_v27 = vrot.slane %v2205_v18, %v5540_v35  ;;  %v380_v18 = vld [vmem:[%s5512_s14 + $0x338] sm:$0xff] }
  0xaa   : > { %2485 = vmatpush1.bf16.msra.mxu0 %v1022_v22  ;;  %3141 = vmatpush1.bf16.msra.mxu1 %v1024_v23  ;;  %v1073_v22 = vunpack.c.h.s8.bf16 %v353_v10  ;;  %v1075_v23 = vunpack.c.h.s8.bf16 %v355_v11  ;;  %v372_v11 = vld [vmem:[%s5512_s14 + $0x2f8] sm:$0xff] }
  0xab   : > { %2486 = vmatprep.subr.bf16.mxu0 %v1028_v24  ;;  %3142 = vmatprep.subr.bf16.mxu1 %v1030_v25  ;;  %v358_v24 = vld [vmem:[%s5512_s14 + $0x288] sm:$0xff]  ;;  %v360_v25 = vld [vmem:[%s5512_s14 + $0x298] sm:$0xff]  ;;  %v2221_v33 = vcombine.high %v5627_v27, %v5627_v27 }
  0xac   : > { %v1078_v36 = vunpack.c.l.s8.bf16 %v358_v24 }
  0xae   : > { %2487 = vmatpush1.bf16.msra.mxu0 %v1027_v29  ;;  %3143 = vmatpush1.bf16.msra.mxu1 %v1029_v30  ;;  %v1074_v29 = vunpack.c.h.s8.bf16 %v354_v17  ;;  %v1080_v30 = vunpack.c.l.s8.bf16 %v360_v25  ;;  %v378_v17 = vld [vmem:[%s5512_s14 + $0x328] sm:$0xff] }
  0xaf   : > { %2488 = vmatprep.subr.bf16.mxu0 %v1033_v31  ;;  %3144 = vmatprep.subr.bf16.mxu1 %v1035_v32  ;;  %v357_v31 = vld [vmem:[%s5512_s14 + $0x280] sm:$0xff]  ;;  %v359_v32 = vld [vmem:[%s5512_s14 + $0x290] sm:$0xff] }
  0xb2   : > { %2489 = vmatpush1.bf16.msra.mxu0 %v1032_v37  ;;  %3145 = vmatpush1.bf16.msra.mxu1 %v1034_v38  ;;  %v1077_v37 = vunpack.c.l.s8.bf16 %v357_v31  ;;  %v1079_v38 = vunpack.c.l.s8.bf16 %v359_v32 }
  0xb3   : > { %2490 = vmatprep.subr.bf16.mxu0 %v1038_v39  ;;  %3146 = vmatprep.subr.bf16.mxu1 %v1040_v40  ;;  %v1083_v39 = vunpack.c.h.s8.bf16 %v358_v24  ;;  %v1085_v40 = vunpack.c.h.s8.bf16 %v360_v25  ;;  %v377_v24 = vld [vmem:[%s5512_s14 + $0x320] sm:$0xff]  ;;  %v379_v25 = vld [vmem:[%s5512_s14 + $0x330] sm:$0xff] }
  0xb6   : > { %2491 = vmatpush1.bf16.msra.mxu0 %v1037_v44  ;;  %3147 = vmatpush1.bf16.msra.mxu1 %v1039_v45  ;;  %v5640_v44 = vrot.slane %v2221_v33, %v5540_v35  ;;  %v1082_v45 = vunpack.c.h.s8.bf16 %v357_v31  ;;  %v383_v31 = vld [vmem:[%s5512_s14 + $0x350] sm:$0xff]  ;;  %v1122_v33 = vunpack.c.h.s8.bf16 %v377_v24 }
  0xb7   : > { %2492 = vmatprep.subr.bf16.mxu0 %v1043_v46  ;;  %3148 = vmatprep.subr.bf16.mxu1 %v1045_v47  ;;  %v1084_v46 = vunpack.c.h.s8.bf16 %v359_v32  ;;  %v1088_v47 = vunpack.c.l.s8.bf16 %v363_v42  ;;  %v385_v32 = vld [vmem:[%s5512_s14 + $0x360] sm:$0xff] }
  0xba   : > { %2493 = vmatpush1.bf16.msra.mxu0 %v1042_v50  ;;  %3149 = vmatpush1.bf16.msra.mxu1 %v1044_v52  ;;  %v364_v50 = vld [vmem:[%s5512_s14 + $0x2b8] sm:$0xff]  ;;  %v1087_v52 = vunpack.c.l.s8.bf16 %v362_v49 }
  0xbb   : > { %2494 = vmatprep.subr.bf16.mxu0 %v1048_v53  ;;  %3150 = vmatprep.subr.bf16.mxu1 %v1050_v55  ;;  %v1089_v53 = vunpack.c.l.s8.bf16 %v364_v50  ;;  %v1093_v55 = vunpack.c.h.s8.bf16 %v363_v42  ;;  %v384_v42 = vld [vmem:[%s5512_s14 + $0x358] sm:$0xff] }
  0xbe   : > { %2495 = vmatpush1.bf16.msra.mxu0 %v1047_v58  ;;  %3151 = vmatpush1.bf16.msra.mxu1 %v1049_v59  ;;  %v370_v58 = vld [vmem:[%s5512_s14 + $0x2e8] sm:$0xff]  ;;  %v1092_v59 = vunpack.c.h.s8.bf16 %v362_v49 }
  0xbf   : > { %2496 = vmatprep.subr.bf16.mxu0 %v1053_v60  ;;  %3152 = vmatprep.subr.bf16.mxu1 %v1055_v41  ;;  %v1094_v60 = vunpack.c.h.s8.bf16 %v364_v50  ;;  %v1098_v41 = vunpack.c.l.s8.bf16 %v368_v57  ;;  %v1100_v62 = vunpack.c.l.s8.bf16 %v370_v58  ;;  %v1105_v4 = vunpack.c.h.s8.bf16 %v370_v58  ;;  %v390_v49 = vld [vmem:[%s5512_s14 + $0x388] sm:$0xff] }
  0xc2   : > { %2497 = vmatpush1.bf16.msra.mxu0 %v1052_v0  ;;  %3153 = vmatpush1.bf16.msra.mxu1 %v1054_v1  ;;  %v369_v0 = vld [vmem:[%s5512_s14 + $0x2e0] sm:$0xff]  ;;  %v1097_v1 = vunpack.c.l.s8.bf16 %v367_v63 }
  0xc3   : > { %2498 = vmatprep.subr.bf16.mxu0 %v1058_v2  ;;  %3154 = vmatprep.subr.bf16.mxu1 %v1060_v3  ;;  %v1099_v2 = vunpack.c.l.s8.bf16 %v369_v0  ;;  %v1103_v3 = vunpack.c.h.s8.bf16 %v368_v57  ;;  %v389_v57 = vld [vmem:[%s5512_s14 + $0x380] sm:$0xff] }
  0xc6   : > { %2499 = vmatpush1.bf16.msra.mxu0 %v1057_v6  ;;  %3155 = vmatpush1.bf16.msra.mxu1 %v1059_v7  ;;  %v375_v6 = vld [vmem:[%s5512_s14 + $0x310] sm:$0xff]  ;;  %v1102_v7 = vunpack.c.h.s8.bf16 %v367_v63 }
  0xc7   : > { %2500 = vmatprep.subr.bf16.mxu0 %v1063_v8  ;;  %3156 = vmatprep.subr.bf16.mxu1 %v1065_v9  ;;  %v1104_v8 = vunpack.c.h.s8.bf16 %v369_v0  ;;  %v1108_v9 = vunpack.c.l.s8.bf16 %v373_v5  ;;  %v1110_v10 = vunpack.c.l.s8.bf16 %v375_v6  ;;  %v1115_v16 = vunpack.c.h.s8.bf16 %v375_v6  ;;  %v395_v63 = vld [vmem:[%s5512_s14 + $0x3b0] sm:$0xff] }
  0xca   : > { %2501 = vmatpush1.bf16.msra.mxu0 %v1062_v12  ;;  %3157 = vmatpush1.bf16.msra.mxu1 %v1064_v13  ;;  %v374_v12 = vld [vmem:[%s5512_s14 + $0x308] sm:$0xff]  ;;  %v1107_v13 = vunpack.c.l.s8.bf16 %v372_v11 }
  0xcb   : > { %2502 = vmatprep.subr.bf16.mxu0 %v1068_v14  ;;  %3158 = vmatprep.subr.bf16.mxu1 %v1070_v15  ;;  %v1109_v14 = vunpack.c.l.s8.bf16 %v374_v12  ;;  %v1113_v15 = vunpack.c.h.s8.bf16 %v373_v5  ;;  %v394_v5 = vld [vmem:[%s5512_s14 + $0x3a8] sm:$0xff] }
  0xce   : > { %2503 = vmatpush1.bf16.msra.mxu0 %v1067_v19  ;;  %3159 = vmatpush1.bf16.msra.mxu1 %v1069_v21  ;;  %v1112_v19 = vunpack.c.h.s8.bf16 %v372_v11  ;;  %v1114_v21 = vunpack.c.h.s8.bf16 %v374_v12  ;;  %v400_v11 = vld [vmem:[%s5512_s14 + $0x3d8] sm:$0xff] }
  0xcf   : > { %2504 = vmatprep.subr.bf16.mxu0 %v1073_v22  ;;  %3160 = vmatprep.subr.bf16.mxu1 %v1075_v23  ;;  %v1118_v22 = vunpack.c.l.s8.bf16 %v378_v17  ;;  %v1120_v23 = vunpack.c.l.s8.bf16 %v380_v18 }
  0xd2   : > { %2505 = vmatpush1.bf16.msra.mxu0 %v1072_v28  ;;  %3161 = vmatpush1.bf16.msra.mxu1 %v1074_v29  ;;  %v1117_v28 = vunpack.c.l.s8.bf16 %v377_v24  ;;  %v1119_v29 = vunpack.c.l.s8.bf16 %v379_v25  ;;  %v403_v24 = vld [vmem:[%s5512_s14 + $0x3f0] sm:$0xff] }
  0xd3   : > { %2515 = vmatprep.subr.bf16.mxu0 %v1078_v36  ;;  %3171 = vmatprep.subr.bf16.mxu1 %v1080_v30  ;;  %v1123_v36 = vunpack.c.h.s8.bf16 %v378_v17  ;;  %v1125_v30 = vunpack.c.h.s8.bf16 %v380_v18  ;;  %v399_v17 = vld [vmem:[%s5512_s14 + $0x3d0] sm:$0xff]  ;;  %v5678_v18 = vrot.slane %v5627_v27, %v5540_v35 }
  0xd5   : > { %2507 = vmatmul.mubr.bf16.vlgmr.msra.gmra.mrb[0].mxu0 %v5635_v34  ;;  %3163 = vmatmul.mubr.bf16.vlgmr.msra.gmra.mrb[0].mxu1 %v5635_v34 }
  0xd6   : > { %2516 = vmatpush1.bf16.msra.mxu0 %v1077_v37  ;;  %3172 = vmatpush1.bf16.msra.mxu1 %v1079_v38  ;;  %v1124_v37 = vunpack.c.h.s8.bf16 %v379_v25  ;;  %v1128_v38 = vunpack.c.l.s8.bf16 %v383_v31  ;;  %v405_v25 = vld [vmem:[%s5512_s14 + $0x400] sm:$0xff] }
  0xd7   : > { %2517 = vmatprep.subr.bf16.mxu0 %v1083_v39  ;;  %3173 = vmatprep.subr.bf16.mxu1 %v1085_v40  ;;  %v1130_v39 = vunpack.c.l.s8.bf16 %v385_v32  ;;  %v382_v40 = vld [vmem:[%s5512_s14 + $0x348] sm:$0xff] }
  0xd8   : > { %2547 = vmatprep.mubr.bf16.mxu0 %v5640_v44  ;;  %3203 = vmatprep.mubr.bf16.mxu1 %v5640_v44  ;;  %v1127_v43 = vunpack.c.l.s8.bf16 %v382_v40  ;;  %v1132_v50 = vunpack.c.h.s8.bf16 %v382_v40  ;;  %v408_v40 = vld [vmem:[%s5512_s14 + $0x418] sm:$0xff] }
  0xda   : > { %2518 = vmatpush1.bf16.msra.mxu0 %v1082_v45  ;;  %3174 = vmatpush1.bf16.msra.mxu1 %v1084_v46  ;;  %v1129_v45 = vunpack.c.l.s8.bf16 %v384_v42  ;;  %v1133_v46 = vunpack.c.h.s8.bf16 %v383_v31  ;;  %v402_v31 = vld [vmem:[%s5512_s14 + $0x3e8] sm:$0xff] }
  0xdb   : > { %2519 = vmatprep.subr.bf16.mxu0 %v1088_v47  ;;  %3175 = vmatprep.subr.bf16.mxu1 %v1090_v48  ;;  %v1135_v47 = vunpack.c.h.s8.bf16 %v385_v32  ;;  %v388_v48 = vld [vmem:[%s5512_s14 + $0x378] sm:$0xff] }
  0xdc   : > { %v404_v32 = vld [vmem:[%s5512_s14 + $0x3f8] sm:$0xff] }
  0xde   : > { %2520 = vmatpush1.bf16.msra.mxu0 %v1087_v52  ;;  %3176 = vmatpush1.bf16.msra.mxu1 %v1089_v53  ;;  %v1134_v52 = vunpack.c.h.s8.bf16 %v384_v42  ;;  %v1138_v53 = vunpack.c.l.s8.bf16 %v388_v48  ;;  %v410_v42 = vld [vmem:[%s5512_s14 + $0x428] sm:$0xff] }
  0xdf   : > { %2521 = vmatprep.subr.bf16.mxu0 %v1093_v55  ;;  %3177 = vmatprep.subr.bf16.mxu1 %v1095_v56  ;;  %v1140_v55 = vunpack.c.l.s8.bf16 %v390_v49  ;;  %v387_v56 = vld [vmem:[%s5512_s14 + $0x370] sm:$0xff] }
  0xe0   : > { %v1137_v58 = vunpack.c.l.s8.bf16 %v387_v56  ;;  %v1142_v0 = vunpack.c.h.s8.bf16 %v387_v56  ;;  %v413_v56 = vld [vmem:[%s5512_s14 + $0x440] sm:$0xff] }
  0xe2   : > { %2522 = vmatpush1.bf16.msra.mxu0 %v1092_v59  ;;  %3178 = vmatpush1.bf16.msra.mxu1 %v1094_v60  ;;  %v1139_v59 = vunpack.c.l.s8.bf16 %v389_v57  ;;  %v1143_v60 = vunpack.c.h.s8.bf16 %v388_v48  ;;  %v407_v48 = vld [vmem:[%s5512_s14 + $0x410] sm:$0xff] }
  0xe3   : > { %2523 = vmatprep.subr.bf16.mxu0 %v1098_v41  ;;  %3179 = vmatprep.subr.bf16.mxu1 %v1100_v62  ;;  %v1145_v41 = vunpack.c.h.s8.bf16 %v390_v49  ;;  %v393_v62 = vld [vmem:[%s5512_s14 + $0x3a0] sm:$0xff] }
  0xe4   : > { %v409_v49 = vld [vmem:[%s5512_s14 + $0x420] sm:$0xff] }
  0xe6   : > { %2524 = vmatpush1.bf16.msra.mxu0 %v1097_v1  ;;  %3180 = vmatpush1.bf16.msra.mxu1 %v1099_v2  ;;  %v1144_v1 = vunpack.c.h.s8.bf16 %v389_v57  ;;  %v1148_v2 = vunpack.c.l.s8.bf16 %v393_v62  ;;  %v415_v57 = vld [vmem:[%s5512_s14 + $0x450] sm:$0xff] }
  0xe7   : > { %2525 = vmatprep.subr.bf16.mxu0 %v1103_v3  ;;  %3181 = vmatprep.subr.bf16.mxu1 %v1105_v4  ;;  %v1150_v3 = vunpack.c.l.s8.bf16 %v395_v63  ;;  %v392_v4 = vld [vmem:[%s5512_s14 + $0x398] sm:$0xff] }
  0xe8   : > { %v1147_v6 = vunpack.c.l.s8.bf16 %v392_v4  ;;  %v1152_v12 = vunpack.c.h.s8.bf16 %v392_v4  ;;  %v418_v4 = vld [vmem:[%s5512_s14 + $0x468] sm:$0xff] }
  0xea   : > { %2526 = vmatpush1.bf16.msra.mxu0 %v1102_v7  ;;  %3182 = vmatpush1.bf16.msra.mxu1 %v1104_v8  ;;  %v1149_v7 = vunpack.c.l.s8.bf16 %v394_v5  ;;  %v1153_v8 = vunpack.c.h.s8.bf16 %v393_v62  ;;  %v412_v62 = vld [vmem:[%s5512_s14 + $0x438] sm:$0xff] }
  0xeb   : > { %2527 = vmatprep.subr.bf16.mxu0 %v1108_v9  ;;  %3183 = vmatprep.subr.bf16.mxu1 %v1110_v10  ;;  %v1155_v9 = vunpack.c.h.s8.bf16 %v395_v63  ;;  %v398_v10 = vld [vmem:[%s5512_s14 + $0x3c8] sm:$0xff] }
  0xec   : > { %v414_v63 = vld [vmem:[%s5512_s14 + $0x448] sm:$0xff] }
  0xee   : > { %2528 = vmatpush1.bf16.msra.mxu0 %v1107_v13  ;;  %3184 = vmatpush1.bf16.msra.mxu1 %v1109_v14  ;;  %v1154_v13 = vunpack.c.h.s8.bf16 %v394_v5  ;;  %v1158_v14 = vunpack.c.l.s8.bf16 %v398_v10  ;;  %v420_v5 = vld [vmem:[%s5512_s14 + $0x478] sm:$0xff] }
  0xef   : > { %2529 = vmatprep.subr.bf16.mxu0 %v1113_v15  ;;  %3185 = vmatprep.subr.bf16.mxu1 %v1115_v16  ;;  %v1160_v15 = vunpack.c.l.s8.bf16 %v400_v11  ;;  %v397_v16 = vld [vmem:[%s5512_s14 + $0x3c0] sm:$0xff] }
  0xf0   : > { %v1162_v27 = vunpack.c.h.s8.bf16 %v397_v16 }
  0xf2   : > { %2530 = vmatpush1.bf16.msra.mxu0 %v1112_v19  ;;  %3186 = vmatpush1.bf16.msra.mxu1 %v1114_v21  ;;  %v1157_v19 = vunpack.c.l.s8.bf16 %v397_v16  ;;  %v1159_v21 = vunpack.c.l.s8.bf16 %v399_v17  ;;  %v423_v16 = vld [vmem:[%s5512_s14 + $0x490] sm:$0xff] }
  0xf3   : > { %2531 = vmatprep.subr.bf16.mxu0 %v1118_v22  ;;  %3187 = vmatprep.subr.bf16.mxu1 %v1120_v23  ;;  %v1163_v22 = vunpack.c.h.s8.bf16 %v398_v10  ;;  %v1165_v23 = vunpack.c.h.s8.bf16 %v400_v11  ;;  %v417_v10 = vld [vmem:[%s5512_s14 + $0x460] sm:$0xff]  ;;  %v419_v11 = vld [vmem:[%s5512_s14 + $0x470] sm:$0xff] }
  0xf6   : > { %2532 = vmatpush1.bf16.msra.mxu0 %v1117_v28  ;;  %3188 = vmatpush1.bf16.msra.mxu1 %v1119_v29  ;;  %v5684_v28 = vcombine.high %v5640_v44, %v5640_v44  ;;  %v1164_v29 = vunpack.c.h.s8.bf16 %v399_v17  ;;  %v425_v17 = vld [vmem:[%s5512_s14 + $0x4a0] sm:$0xff] }
  0xf7   : > { %2533 = vmatprep.subr.bf16.mxu0 %v1123_v36  ;;  %3189 = vmatprep.subr.bf16.mxu1 %v1125_v30  ;;  %v1168_v36 = vunpack.c.l.s8.bf16 %v403_v24  ;;  %v1170_v30 = vunpack.c.l.s8.bf16 %v405_v25 }
  0xfa   : > { %2534 = vmatpush1.bf16.msra.mxu0 %v1122_v33  ;;  %3190 = vmatpush1.bf16.msra.mxu1 %v1124_v37  ;;  %v1167_v33 = vunpack.c.l.s8.bf16 %v402_v31  ;;  %v1169_v37 = vunpack.c.l.s8.bf16 %v404_v32 }
  0xfb   : > { %2535 = vmatprep.subr.bf16.mxu0 %v1128_v38  ;;  %3191 = vmatprep.subr.bf16.mxu1 %v1130_v39  ;;  %v1173_v38 = vunpack.c.h.s8.bf16 %v403_v24  ;;  %v1175_v39 = vunpack.c.h.s8.bf16 %v405_v25  ;;  %v422_v24 = vld [vmem:[%s5512_s14 + $0x488] sm:$0xff]  ;;  %v424_v25 = vld [vmem:[%s5512_s14 + $0x498] sm:$0xff] }
  0xfe   : > { %2536 = vmatpush1.bf16.msra.mxu0 %v1127_v43  ;;  %3192 = vmatpush1.bf16.msra.mxu1 %v1129_v45  ;;  %v1172_v43 = vunpack.c.h.s8.bf16 %v402_v31  ;;  %v1174_v45 = vunpack.c.h.s8.bf16 %v404_v32  ;;  %v428_v31 = vld [vmem:[%s5512_s14 + $0x4b8] sm:$0xff]  ;;  %v430_v32 = vld [vmem:[%s5512_s14 + $0x4c8] sm:$0xff] }
  0xff   : > { %2537 = vmatprep.subr.bf16.mxu0 %v1133_v46  ;;  %3193 = vmatprep.subr.bf16.mxu1 %v1135_v47  ;;  %v1178_v46 = vunpack.c.l.s8.bf16 %v408_v40  ;;  %v1180_v47 = vunpack.c.l.s8.bf16 %v410_v42 }
 0x102   : > { %2538 = vmatpush1.bf16.msra.mxu0 %v1132_v50  ;;  %3194 = vmatpush1.bf16.msra.mxu1 %v1134_v52  ;;  %v1177_v50 = vunpack.c.l.s8.bf16 %v407_v48  ;;  %v1179_v52 = vunpack.c.l.s8.bf16 %v409_v49 }
 0x103   : > { %2539 = vmatprep.subr.bf16.mxu0 %v1138_v53  ;;  %3195 = vmatprep.subr.bf16.mxu1 %v1140_v55  ;;  %v1183_v53 = vunpack.c.h.s8.bf16 %v408_v40  ;;  %v1185_v55 = vunpack.c.h.s8.bf16 %v410_v42  ;;  %v427_v40 = vld [vmem:[%s5512_s14 + $0x4b0] sm:$0xff]  ;;  %v429_v42 = vld [vmem:[%s5512_s14 + $0x4c0] sm:$0xff] }
 0x106   : > { %2540 = vmatpush1.bf16.msra.mxu0 %v1137_v58  ;;  %3196 = vmatpush1.bf16.msra.mxu1 %v1139_v59  ;;  %v1182_v58 = vunpack.c.h.s8.bf16 %v407_v48  ;;  %v1184_v59 = vunpack.c.h.s8.bf16 %v409_v49  ;;  %v433_v48 = vld [vmem:[%s5512_s14 + $0x4e0] sm:$0xff]  ;;  %v435_v49 = vld [vmem:[%s5512_s14 + $0x4f0] sm:$0xff] }
 0x107   : > { %2541 = vmatprep.subr.bf16.mxu0 %v1143_v60  ;;  %3197 = vmatprep.subr.bf16.mxu1 %v1145_v41  ;;  %v1188_v60 = vunpack.c.l.s8.bf16 %v413_v56  ;;  %v1190_v41 = vunpack.c.l.s8.bf16 %v415_v57 }
 0x10a   : > { %2542 = vmatpush1.bf16.msra.mxu0 %v1142_v0  ;;  %3198 = vmatpush1.bf16.msra.mxu1 %v1144_v1  ;;  %v1187_v0 = vunpack.c.l.s8.bf16 %v412_v62  ;;  %v1189_v1 = vunpack.c.l.s8.bf16 %v414_v63 }
 0x10b   : > { %2543 = vmatprep.subr.bf16.mxu0 %v1148_v2  ;;  %3199 = vmatprep.subr.bf16.mxu1 %v1150_v3  ;;  %v1193_v2 = vunpack.c.h.s8.bf16 %v413_v56  ;;  %v1195_v3 = vunpack.c.h.s8.bf16 %v415_v57  ;;  %v432_v56 = vld [vmem:[%s5512_s14 + $0x4d8] sm:$0xff]  ;;  %v434_v57 = vld [vmem:[%s5512_s14 + $0x4e8] sm:$0xff] }
 0x10e   : > { %2544 = vmatpush1.bf16.msra.mxu0 %v1147_v6  ;;  %3200 = vmatpush1.bf16.msra.mxu1 %v1149_v7  ;;  %v1192_v6 = vunpack.c.h.s8.bf16 %v412_v62  ;;  %v1194_v7 = vunpack.c.h.s8.bf16 %v414_v63  ;;  %v1235_v62 = vunpack.c.h.s8.bf16 %v435_v49  ;;  %v438_v63 = vld [vmem:[%s5512_s14 + $0x508] sm:$0xff] }
 0x10f   : > { %2545 = vmatprep.subr.bf16.mxu0 %v1153_v8  ;;  %3201 = vmatprep.subr.bf16.mxu1 %v1155_v9  ;;  %v1198_v8 = vunpack.c.l.s8.bf16 %v418_v4  ;;  %v1200_v9 = vunpack.c.l.s8.bf16 %v420_v5 }
 0x112   : > { %2546 = vmatpush1.bf16.msra.mxu0 %v1152_v12  ;;  %3202 = vmatpush1.bf16.msra.mxu1 %v1154_v13  ;;  %v1197_v12 = vunpack.c.l.s8.bf16 %v417_v10  ;;  %v1199_v13 = vunpack.c.l.s8.bf16 %v419_v11 }
 0x113   : > { %2556 = vmatprep.subr.bf16.mxu0 %v1158_v14  ;;  %3212 = vmatprep.subr.bf16.mxu1 %v1160_v15  ;;  %v1203_v14 = vunpack.c.h.s8.bf16 %v418_v4  ;;  %v1205_v15 = vunpack.c.h.s8.bf16 %v420_v5  ;;  %v1238_v4 = vunpack.c.l.s8.bf16 %v438_v63 }
 0x115   : > { %2548 = vmatmul.mubr.bf16.vlgmr.msra.gmra.mrb[0].mxu0 %v5678_v18  ;;  %3204 = vmatmul.mubr.bf16.vlgmr.msra.gmra.mrb[0].mxu1 %v5678_v18 }
 0x116   : > { %2557 = vmatpush1.bf16.msra.mxu0 %v1157_v19  ;;  %3213 = vmatpush1.bf16.msra.mxu1 %v1159_v21  ;;  %v1202_v19 = vunpack.c.h.s8.bf16 %v417_v10  ;;  %v1204_v21 = vunpack.c.h.s8.bf16 %v419_v11 }
 0x117   : > { %2558 = vmatprep.subr.bf16.mxu0 %v1163_v22  ;;  %3214 = vmatprep.subr.bf16.mxu1 %v1165_v23  ;;  %v1208_v22 = vunpack.c.l.s8.bf16 %v423_v16  ;;  %v1210_v23 = vunpack.c.l.s8.bf16 %v425_v17 }
 0x118   : > { %2588 = vmatprep.mubr.bf16.mxu0 %v5684_v28  ;;  %3244 = vmatprep.mubr.bf16.mxu1 %v5684_v28 }
 0x11a   : > { %2559 = vmatpush1.bf16.msra.mxu0 %v1162_v27  ;;  %3215 = vmatpush1.bf16.msra.mxu1 %v1164_v29  ;;  %v1207_v27 = vunpack.c.l.s8.bf16 %v422_v24  ;;  %v1209_v29 = vunpack.c.l.s8.bf16 %v424_v25 }
 0x11b   : > { %2560 = vmatprep.subr.bf16.mxu0 %v1168_v36  ;;  %3216 = vmatprep.subr.bf16.mxu1 %v1170_v30  ;;  %v1213_v36 = vunpack.c.h.s8.bf16 %v423_v16  ;;  %v1215_v30 = vunpack.c.h.s8.bf16 %v425_v17 }
 0x11e   : > { %2561 = vmatpush1.bf16.msra.mxu0 %v1167_v33  ;;  %3217 = vmatpush1.bf16.msra.mxu1 %v1169_v37  ;;  %v1212_v33 = vunpack.c.h.s8.bf16 %v422_v24  ;;  %v1214_v37 = vunpack.c.h.s8.bf16 %v424_v25  ;;  %v444_v24 = vld [vmem:[%s5512_s14 + $0x538] sm:$0xff] }
 0x11f   : > { %2562 = vmatprep.subr.bf16.mxu0 %v1173_v38  ;;  %3218 = vmatprep.subr.bf16.mxu1 %v1175_v39  ;;  %v1218_v38 = vunpack.c.l.s8.bf16 %v428_v31  ;;  %v1220_v39 = vunpack.c.l.s8.bf16 %v430_v32 }
 0x122   : > { %2563 = vmatpush1.bf16.msra.mxu0 %v1172_v43  ;;  %3219 = vmatpush1.bf16.msra.mxu1 %v1174_v45  ;;  %v1217_v43 = vunpack.c.l.s8.bf16 %v427_v40  ;;  %v1219_v45 = vunpack.c.l.s8.bf16 %v429_v42 }
 0x123   : > { %2564 = vmatprep.subr.bf16.mxu0 %v1178_v46  ;;  %3220 = vmatprep.subr.bf16.mxu1 %v1180_v47  ;;  %v1223_v46 = vunpack.c.h.s8.bf16 %v428_v31  ;;  %v1225_v47 = vunpack.c.h.s8.bf16 %v430_v32  ;;  %v450_v31 = vld [vmem:[%s5512_s14 + $0x568] sm:$0xff] }
 0x126   : > { %2565 = vmatpush1.bf16.msra.mxu0 %v1177_v50  ;;  %3221 = vmatpush1.bf16.msra.mxu1 %v1179_v52  ;;  %v1222_v50 = vunpack.c.h.s8.bf16 %v427_v40  ;;  %v1224_v52 = vunpack.c.h.s8.bf16 %v429_v42  ;;  %v449_v40 = vld [vmem:[%s5512_s14 + $0x560] sm:$0xff] }
 0x127   : > { %2566 = vmatprep.subr.bf16.mxu0 %v1183_v53  ;;  %3222 = vmatprep.subr.bf16.mxu1 %v1185_v55  ;;  %v1228_v53 = vunpack.c.l.s8.bf16 %v433_v48  ;;  %v1230_v55 = vunpack.c.l.s8.bf16 %v435_v49 }
 0x12a   : > { %2567 = vmatpush1.bf16.msra.mxu0 %v1182_v58  ;;  %3223 = vmatpush1.bf16.msra.mxu1 %v1184_v59  ;;  %v5719_v58 = vld [vmem:[%s6595_s0 + $0x8] sm:$0xff]  ;;  %v1227_v59 = vunpack.c.l.s8.bf16 %v432_v56 }
 0x12b   : > { %2568 = vmatprep.subr.bf16.mxu0 %v1188_v60  ;;  %3224 = vmatprep.subr.bf16.mxu1 %v1190_v41  ;;  %v1229_v60 = vunpack.c.l.s8.bf16 %v434_v57  ;;  %v1233_v41 = vunpack.c.h.s8.bf16 %v433_v48  ;;  %v455_v48 = vld [vmem:[%s5512_s14 + $0x590] sm:$0xff] }
 0x12e   : > { %2569 = vmatpush1.bf16.msra.mxu0 %v1187_v0  ;;  %3225 = vmatpush1.bf16.msra.mxu1 %v1189_v1  ;;  %v440_v0 = vld [vmem:[%s5512_s14 + $0x518] sm:$0xff]  ;;  %v5725_v1 = vrot.slane %v5719_v58, %v5540_v35 }
 0x12f   : > { %2570 = vmatprep.subr.bf16.mxu0 %v1193_v2  ;;  %3226 = vmatprep.subr.bf16.mxu1 %v1195_v3  ;;  %v1232_v2 = vunpack.c.h.s8.bf16 %v432_v56  ;;  %v1234_v3 = vunpack.c.h.s8.bf16 %v434_v57  ;;  %v1240_v5 = vunpack.c.l.s8.bf16 %v440_v0  ;;  %v454_v56 = vld [vmem:[%s5512_s14 + $0x588] sm:$0xff] }
 0x132   : > { %2571 = vmatpush1.bf16.msra.mxu0 %v1192_v6  ;;  %3227 = vmatpush1.bf16.msra.mxu1 %v1194_v7  ;;  %v437_v6 = vld [vmem:[%s5512_s14 + $0x500] sm:$0xff]  ;;  %v439_v7 = vld [vmem:[%s5512_s14 + $0x510] sm:$0xff] }
 0x133   : > { %2572 = vmatprep.subr.bf16.mxu0 %v1198_v8  ;;  %3228 = vmatprep.subr.bf16.mxu1 %v1200_v9  ;;  %v2269_v8 = vcombine.high %v5725_v1, %v5725_v1  ;;  %v5733_v9 = vcombine.high %v5678_v18, %v5678_v18  ;;  %v1237_v10 = vunpack.c.l.s8.bf16 %v437_v6  ;;  %v1239_v11 = vunpack.c.l.s8.bf16 %v439_v7 }
 0x134   : > { %v1242_v17 = vunpack.c.h.s8.bf16 %v437_v6  ;;  %v459_v6 = vld [vmem:[%s5512_s14 + $0x5b0] sm:$0xff] }
 0x135   : > { %v5738_v16 = vrot.slane %v2269_v8, %v5540_v35  ;;  %v1279_v8 = vunpack.c.l.s8.bf16 %v459_v6 }
 0x136   : > { %2573 = vmatpush1.bf16.msra.mxu0 %v1197_v12  ;;  %3229 = vmatpush1.bf16.msra.mxu1 %v1199_v13  ;;  %v1243_v12 = vunpack.c.h.s8.bf16 %v438_v63  ;;  %v1245_v13 = vunpack.c.h.s8.bf16 %v440_v0  ;;  %v460_v63 = vld [vmem:[%s5512_s14 + $0x5b8] sm:$0xff] }
 0x137   : > { %2574 = vmatprep.subr.bf16.mxu0 %v1203_v14  ;;  %3230 = vmatprep.subr.bf16.mxu1 %v1205_v15  ;;  %v443_v14 = vld [vmem:[%s5512_s14 + $0x530] sm:$0xff]  ;;  %v445_v15 = vld [vmem:[%s5512_s14 + $0x540] sm:$0xff] }
 0x13a   : > { %2575 = vmatpush1.bf16.msra.mxu0 %v1202_v19  ;;  %3231 = vmatpush1.bf16.msra.mxu1 %v1204_v21  ;;  %v1244_v19 = vunpack.c.h.s8.bf16 %v439_v7  ;;  %v1248_v21 = vunpack.c.l.s8.bf16 %v443_v14 }
 0x13b   : > { %2576 = vmatprep.subr.bf16.mxu0 %v1208_v22  ;;  %3232 = vmatprep.subr.bf16.mxu1 %v1210_v23  ;;  %v1250_v22 = vunpack.c.l.s8.bf16 %v445_v15  ;;  %v442_v23 = vld [vmem:[%s5512_s14 + $0x528] sm:$0xff] }
 0x13c   : > { %v1247_v25 = vunpack.c.l.s8.bf16 %v442_v23  ;;  %v1252_v32 = vunpack.c.h.s8.bf16 %v442_v23 }
 0x13e   : > { %2577 = vmatpush1.bf16.msra.mxu0 %v1207_v27  ;;  %3233 = vmatpush1.bf16.msra.mxu1 %v1209_v29  ;;  %v1249_v27 = vunpack.c.l.s8.bf16 %v444_v24  ;;  %v1253_v29 = vunpack.c.h.s8.bf16 %v443_v14 }
 0x13f   : > { %2578 = vmatprep.subr.bf16.mxu0 %v1213_v36  ;;  %3234 = vmatprep.subr.bf16.mxu1 %v1215_v30  ;;  %v1255_v36 = vunpack.c.h.s8.bf16 %v445_v15  ;;  %v448_v30 = vld [vmem:[%s5512_s14 + $0x558] sm:$0xff]  ;;  %v1284_v15 = vunpack.c.h.s8.bf16 %v459_v6 }
 0x142   : > { %2579 = vmatpush1.bf16.msra.mxu0 %v1212_v33  ;;  %3235 = vmatpush1.bf16.msra.mxu1 %v1214_v37  ;;  %v1254_v33 = vunpack.c.h.s8.bf16 %v444_v24  ;;  %v1258_v37 = vunpack.c.l.s8.bf16 %v448_v30 }
 0x143   : > { %2580 = vmatprep.subr.bf16.mxu0 %v1218_v38  ;;  %3236 = vmatprep.subr.bf16.mxu1 %v1220_v39  ;;  %v1260_v38 = vunpack.c.l.s8.bf16 %v450_v31  ;;  %v447_v39 = vld [vmem:[%s5512_s14 + $0x550] sm:$0xff] }
 0x144   : > { %v1257_v42 = vunpack.c.l.s8.bf16 %v447_v39  ;;  %v1262_v49 = vunpack.c.h.s8.bf16 %v447_v39 }
 0x146   : > { %2581 = vmatpush1.bf16.msra.mxu0 %v1217_v43  ;;  %3237 = vmatpush1.bf16.msra.mxu1 %v1219_v45  ;;  %v1259_v43 = vunpack.c.l.s8.bf16 %v449_v40  ;;  %v1263_v45 = vunpack.c.h.s8.bf16 %v448_v30 }
 0x147   : > { %2582 = vmatprep.subr.bf16.mxu0 %v1223_v46  ;;  %3238 = vmatprep.subr.bf16.mxu1 %v1225_v47  ;;  %v1265_v46 = vunpack.c.h.s8.bf16 %v450_v31  ;;  %v453_v47 = vld [vmem:[%s5512_s14 + $0x580] sm:$0xff] }
 0x14a   : > { %2583 = vmatpush1.bf16.msra.mxu0 %v1222_v50  ;;  %3239 = vmatpush1.bf16.msra.mxu1 %v1224_v52  ;;  %v1264_v50 = vunpack.c.h.s8.bf16 %v449_v40  ;;  %v1268_v52 = vunpack.c.l.s8.bf16 %v453_v47 }
 0x14b   : > { %2584 = vmatprep.subr.bf16.mxu0 %v1228_v53  ;;  %3240 = vmatprep.subr.bf16.mxu1 %v1230_v55  ;;  %v1270_v53 = vunpack.c.l.s8.bf16 %v455_v48  ;;  %v452_v55 = vld [vmem:[%s5512_s14 + $0x578] sm:$0xff] }
 0x14c   : > { %v1267_v57 = vunpack.c.l.s8.bf16 %v452_v55  ;;  %v1272_v0 = vunpack.c.h.s8.bf16 %v452_v55 }
 0x14e   : > { %2585 = vmatpush1.bf16.msra.mxu0 %v1227_v59  ;;  %3241 = vmatpush1.bf16.msra.mxu1 %v1229_v60  ;;  %v1269_v59 = vunpack.c.l.s8.bf16 %v454_v56  ;;  %v1273_v60 = vunpack.c.h.s8.bf16 %v453_v47 }
 0x14f   : > { %2586 = vmatprep.subr.bf16.mxu0 %v1233_v41  ;;  %3242 = vmatprep.subr.bf16.mxu1 %v1235_v62  ;;  %v1275_v41 = vunpack.c.h.s8.bf16 %v455_v48  ;;  %v458_v62 = vld [vmem:[%s5512_s14 + $0x5a8] sm:$0xff] }
 0x152   : > { %2587 = vmatpush1.bf16.msra.mxu0 %v1232_v2  ;;  %3243 = vmatpush1.bf16.msra.mxu1 %v1234_v3  ;;  %v1274_v2 = vunpack.c.h.s8.bf16 %v454_v56  ;;  %v1278_v3 = vunpack.c.l.s8.bf16 %v458_v62 }
 0x153   : > { %2597 = vmatprep.subr.bf16.mxu0 %v1238_v4  ;;  %3253 = vmatprep.subr.bf16.mxu1 %v1240_v5  ;;  %v1280_v4 = vunpack.c.l.s8.bf16 %v460_v63  ;;  %v457_v5 = vld [vmem:[%s5512_s14 + $0x5a0] sm:$0xff] }
 0x154   : > { %v1277_v7 = vunpack.c.l.s8.bf16 %v457_v5  ;;  %v1282_v14 = vunpack.c.h.s8.bf16 %v457_v5  ;;  %v5776_v5 = vrot.slane %v5725_v1, %v5540_v35 }
 0x155   : > { %2589 = vmatmul.mubr.bf16.vlgmr.msra.gmra.mrb[0].mxu0 %v5733_v9  ;;  %3245 = vmatmul.mubr.bf16.vlgmr.msra.gmra.mrb[0].mxu1 %v5733_v9 }
 0x156   : > { %2598 = vmatpush1.bf16.msra.mxu0 %v1237_v10  ;;  %3254 = vmatpush1.bf16.msra.mxu1 %v1239_v11  ;;  %v1283_v10 = vunpack.c.h.s8.bf16 %v458_v62  ;;  %v1285_v11 = vunpack.c.h.s8.bf16 %v460_v63 }
 0x157   : > { %2599 = vmatprep.subr.bf16.mxu0 %v1243_v12  ;;  %3255 = vmatprep.subr.bf16.mxu1 %v1245_v13  ;;  %v463_v12 = vld [vmem:[%s5512_s14 + $0x5d0] sm:$0xff]  ;;  %v465_v13 = vld [vmem:[%s5512_s14 + $0x5e0] sm:$0xff] }
 0x158   : > { %2629 = vmatprep.mubr.bf16.mxu0 %v5738_v16  ;;  %3285 = vmatprep.mubr.bf16.mxu1 %v5738_v16 }
 0x15a   : > { %2600 = vmatpush1.bf16.msra.mxu0 %v1242_v17  ;;  %3256 = vmatpush1.bf16.msra.mxu1 %v1244_v19  ;;  %v1288_v17 = vunpack.c.l.s8.bf16 %v463_v12  ;;  %v1290_v19 = vunpack.c.l.s8.bf16 %v465_v13 }
 0x15b   : > { %2601 = vmatprep.subr.bf16.mxu0 %v1248_v21  ;;  %3257 = vmatprep.subr.bf16.mxu1 %v1250_v22  ;;  %v462_v21 = vld [vmem:[%s5512_s14 + $0x5c8] sm:$0xff]  ;;  %v464_v22 = vld [vmem:[%s5512_s14 + $0x5d8] sm:$0xff] }
 0x15c   : > { %v1287_v23 = vunpack.c.l.s8.bf16 %v462_v21  ;;  %v1289_v24 = vunpack.c.l.s8.bf16 %v464_v22  ;;  %v1292_v30 = vunpack.c.h.s8.bf16 %v462_v21  ;;  %v1294_v31 = vunpack.c.h.s8.bf16 %v464_v22  ;;  %v484_v21 = vld [vmem:[%s5512_s14 + $0x678] sm:$0xff] }
 0x15e   : > { %2602 = vmatpush1.bf16.msra.mxu0 %v1247_v25  ;;  %3258 = vmatpush1.bf16.msra.mxu1 %v1249_v27  ;;  %v1293_v25 = vunpack.c.h.s8.bf16 %v463_v12  ;;  %v1295_v27 = vunpack.c.h.s8.bf16 %v465_v13  ;;  %v485_v12 = vld [vmem:[%s5512_s14 + $0x680] sm:$0xff]  ;;  %v5782_v13 = vcombine.high %v5738_v16, %v5738_v16 }
 0x15f   : > { %2603 = vmatprep.subr.bf16.mxu0 %v1253_v29  ;;  %3259 = vmatprep.subr.bf16.mxu1 %v1255_v36  ;;  %v468_v29 = vld [vmem:[%s5512_s14 + $0x5f8] sm:$0xff]  ;;  %v470_v36 = vld [vmem:[%s5512_s14 + $0x608] sm:$0xff] }
 0x162   : > { %2604 = vmatpush1.bf16.msra.mxu0 %v1252_v32  ;;  %3260 = vmatpush1.bf16.msra.mxu1 %v1254_v33  ;;  %v1298_v32 = vunpack.c.l.s8.bf16 %v468_v29  ;;  %v1300_v33 = vunpack.c.l.s8.bf16 %v470_v36 }
 0x163   : > { %2605 = vmatprep.subr.bf16.mxu0 %v1258_v37  ;;  %3261 = vmatprep.subr.bf16.mxu1 %v1260_v38  ;;  %v467_v37 = vld [vmem:[%s5512_s14 + $0x5f0] sm:$0xff]  ;;  %v469_v38 = vld [vmem:[%s5512_s14 + $0x600] sm:$0xff] }
 0x164   : > { %v1297_v39 = vunpack.c.l.s8.bf16 %v467_v37  ;;  %v1299_v40 = vunpack.c.l.s8.bf16 %v469_v38  ;;  %v1302_v47 = vunpack.c.h.s8.bf16 %v467_v37  ;;  %v1304_v48 = vunpack.c.h.s8.bf16 %v469_v38  ;;  %v489_v37 = vld [vmem:[%s5512_s14 + $0x6a0] sm:$0xff] }
 0x166   : > { %2606 = vmatpush1.bf16.msra.mxu0 %v1257_v42  ;;  %3262 = vmatpush1.bf16.msra.mxu1 %v1259_v43  ;;  %v1303_v42 = vunpack.c.h.s8.bf16 %v468_v29  ;;  %v1305_v43 = vunpack.c.h.s8.bf16 %v470_v36  ;;  %v490_v29 = vld [vmem:[%s5512_s14 + $0x6a8] sm:$0xff] }
 0x167   : > { %2607 = vmatprep.subr.bf16.mxu0 %v1263_v45  ;;  %3263 = vmatprep.subr.bf16.mxu1 %v1265_v46  ;;  %v473_v45 = vld [vmem:[%s5512_s14 + $0x620] sm:$0xff]  ;;  %v475_v46 = vld [vmem:[%s5512_s14 + $0x630] sm:$0xff] }
 0x16a   : > { %2608 = vmatpush1.bf16.msra.mxu0 %v1262_v49  ;;  %3264 = vmatpush1.bf16.msra.mxu1 %v1264_v50  ;;  %v1308_v49 = vunpack.c.l.s8.bf16 %v473_v45  ;;  %v1310_v50 = vunpack.c.l.s8.bf16 %v475_v46 }
 0x16b   : > { %2609 = vmatprep.subr.bf16.mxu0 %v1268_v52  ;;  %3265 = vmatprep.subr.bf16.mxu1 %v1270_v53  ;;  %v472_v52 = vld [vmem:[%s5512_s14 + $0x618] sm:$0xff]  ;;  %v474_v53 = vld [vmem:[%s5512_s14 + $0x628] sm:$0xff] }
 0x16c   : > { %v1307_v55 = vunpack.c.l.s8.bf16 %v472_v52  ;;  %v1309_v56 = vunpack.c.l.s8.bf16 %v474_v53  ;;  %v1312_v62 = vunpack.c.h.s8.bf16 %v472_v52  ;;  %v1314_v63 = vunpack.c.h.s8.bf16 %v474_v53  ;;  %v494_v52 = vld [vmem:[%s5512_s14 + $0x6c8] sm:$0xff] }
 0x16e   : > { %2610 = vmatpush1.bf16.msra.mxu0 %v1267_v57  ;;  %3266 = vmatpush1.bf16.msra.mxu1 %v1269_v59  ;;  %v1313_v57 = vunpack.c.h.s8.bf16 %v473_v45  ;;  %v1315_v59 = vunpack.c.h.s8.bf16 %v475_v46  ;;  %v495_v45 = vld [vmem:[%s5512_s14 + $0x6d0] sm:$0xff] }
 0x16f   : > { %2611 = vmatprep.subr.bf16.mxu0 %v1273_v60  ;;  %3267 = vmatprep.subr.bf16.mxu1 %v1275_v41  ;;  %v478_v60 = vld [vmem:[%s5512_s14 + $0x648] sm:$0xff]  ;;  %v480_v41 = vld [vmem:[%s5512_s14 + $0x658] sm:$0xff] }
 0x172   : > { %2612 = vmatpush1.bf16.msra.mxu0 %v1272_v0  ;;  %3268 = vmatpush1.bf16.msra.mxu1 %v1274_v2  ;;  %v1318_v0 = vunpack.c.l.s8.bf16 %v478_v60  ;;  %v1320_v2 = vunpack.c.l.s8.bf16 %v480_v41 }
 0x173   : > { %2613 = vmatprep.subr.bf16.mxu0 %v1278_v3  ;;  %3269 = vmatprep.subr.bf16.mxu1 %v1280_v4  ;;  %v477_v3 = vld [vmem:[%s5512_s14 + $0x640] sm:$0xff]  ;;  %v479_v4 = vld [vmem:[%s5512_s14 + $0x650] sm:$0xff] }
 0x174   : > { %v1317_v6 = vunpack.c.l.s8.bf16 %v477_v3  ;;  %v1322_v1 = vunpack.c.h.s8.bf16 %v477_v3  ;;  %v499_v3 = vld [vmem:[%s5512_s14 + $0x6f0] sm:$0xff] }
 0x176   : > { %2614 = vmatpush1.bf16.msra.mxu0 %v1277_v7  ;;  %3270 = vmatpush1.bf16.msra.mxu1 %v1279_v8  ;;  %v1319_v7 = vunpack.c.l.s8.bf16 %v479_v4  ;;  %v1323_v8 = vunpack.c.h.s8.bf16 %v478_v60  ;;  %v500_v60 = vld [vmem:[%s5512_s14 + $0x6f8] sm:$0xff] }
 0x177   : > { %2615 = vmatprep.subr.bf16.mxu0 %v1283_v10  ;;  %3271 = vmatprep.subr.bf16.mxu1 %v1285_v11  ;;  %v1325_v10 = vunpack.c.h.s8.bf16 %v480_v41  ;;  %v483_v11 = vld [vmem:[%s5512_s14 + $0x670] sm:$0xff] }
 0x17a   : > { %2616 = vmatpush1.bf16.msra.mxu0 %v1282_v14  ;;  %3272 = vmatpush1.bf16.msra.mxu1 %v1284_v15  ;;  %v1324_v14 = vunpack.c.h.s8.bf16 %v479_v4  ;;  %v1328_v15 = vunpack.c.l.s8.bf16 %v483_v11 }
 0x17b   : > { %2617 = vmatprep.subr.bf16.mxu0 %v1288_v17  ;;  %3273 = vmatprep.subr.bf16.mxu1 %v1290_v19  ;;  %v1330_v17 = vunpack.c.l.s8.bf16 %v485_v12  ;;  %v482_v19 = vld [vmem:[%s5512_s14 + $0x668] sm:$0xff] }
 0x17c   : > { %v1327_v22 = vunpack.c.l.s8.bf16 %v482_v19  ;;  %v1332_v36 = vunpack.c.h.s8.bf16 %v482_v19  ;;  %v504_v19 = vld [vmem:[%s5512_s14 + $0x718] sm:$0xff] }
 0x17e   : > { %2618 = vmatpush1.bf16.msra.mxu0 %v1287_v23  ;;  %3274 = vmatpush1.bf16.msra.mxu1 %v1289_v24  ;;  %v1329_v23 = vunpack.c.l.s8.bf16 %v484_v21  ;;  %v1333_v24 = vunpack.c.h.s8.bf16 %v483_v11  ;;  %v505_v11 = vld [vmem:[%s5512_s14 + $0x720] sm:$0xff] }
 0x17f   : > { %2619 = vmatprep.subr.bf16.mxu0 %v1293_v25  ;;  %3275 = vmatprep.subr.bf16.mxu1 %v1295_v27  ;;  %v1335_v25 = vunpack.c.h.s8.bf16 %v485_v12  ;;  %v488_v27 = vld [vmem:[%s5512_s14 + $0x698] sm:$0xff] }
 0x182   : > { %2620 = vmatpush1.bf16.msra.mxu0 %v1292_v30  ;;  %3276 = vmatpush1.bf16.msra.mxu1 %v1294_v31  ;;  %v1334_v30 = vunpack.c.h.s8.bf16 %v484_v21  ;;  %v1338_v31 = vunpack.c.l.s8.bf16 %v488_v27 }
 0x183   : > { %2621 = vmatprep.subr.bf16.mxu0 %v1298_v32  ;;  %3277 = vmatprep.subr.bf16.mxu1 %v1300_v33  ;;  %v1340_v32 = vunpack.c.l.s8.bf16 %v490_v29  ;;  %v487_v33 = vld [vmem:[%s5512_s14 + $0x690] sm:$0xff] }
 0x184   : > { %v1337_v38 = vunpack.c.l.s8.bf16 %v487_v33  ;;  %v1342_v46 = vunpack.c.h.s8.bf16 %v487_v33  ;;  %v509_v33 = vld [vmem:[%s5512_s14 + $0x740] sm:$0xff] }
 0x186   : > { %2622 = vmatpush1.bf16.msra.mxu0 %v1297_v39  ;;  %3278 = vmatpush1.bf16.msra.mxu1 %v1299_v40  ;;  %v1339_v39 = vunpack.c.l.s8.bf16 %v489_v37  ;;  %v1343_v40 = vunpack.c.h.s8.bf16 %v488_v27  ;;  %v510_v27 = vld [vmem:[%s5512_s14 + $0x748] sm:$0xff] }
 0x187   : > { %2623 = vmatprep.subr.bf16.mxu0 %v1303_v42  ;;  %3279 = vmatprep.subr.bf16.mxu1 %v1305_v43  ;;  %v1345_v42 = vunpack.c.h.s8.bf16 %v490_v29  ;;  %v493_v43 = vld [vmem:[%s5512_s14 + $0x6c0] sm:$0xff] }
 0x18a   : > { %2624 = vmatpush1.bf16.msra.mxu0 %v1302_v47  ;;  %3280 = vmatpush1.bf16.msra.mxu1 %v1304_v48  ;;  %v1344_v47 = vunpack.c.h.s8.bf16 %v489_v37  ;;  %v1348_v48 = vunpack.c.l.s8.bf16 %v493_v43 }
 0x18b   : > { %2625 = vmatprep.subr.bf16.mxu0 %v1308_v49  ;;  %3281 = vmatprep.subr.bf16.mxu1 %v1310_v50  ;;  %v1350_v49 = vunpack.c.l.s8.bf16 %v495_v45  ;;  %v492_v50 = vld [vmem:[%s5512_s14 + $0x6b8] sm:$0xff] }
 0x18c   : > { %v1347_v53 = vunpack.c.l.s8.bf16 %v492_v50  ;;  %v1352_v41 = vunpack.c.h.s8.bf16 %v492_v50  ;;  %v514_v50 = vld [vmem:[%s5512_s14 + $0x768] sm:$0xff] }
 0x18e   : > { %2626 = vmatpush1.bf16.msra.mxu0 %v1307_v55  ;;  %3282 = vmatpush1.bf16.msra.mxu1 %v1309_v56  ;;  %v1349_v55 = vunpack.c.l.s8.bf16 %v494_v52  ;;  %v1353_v56 = vunpack.c.h.s8.bf16 %v493_v43  ;;  %v515_v43 = vld [vmem:[%s5512_s14 + $0x770] sm:$0xff] }
 0x18f   : > { %2627 = vmatprep.subr.bf16.mxu0 %v1313_v57  ;;  %3283 = vmatprep.subr.bf16.mxu1 %v1315_v59  ;;  %v1355_v57 = vunpack.c.h.s8.bf16 %v495_v45  ;;  %v498_v59 = vld [vmem:[%s5512_s14 + $0x6e8] sm:$0xff] }
 0x192   : > { %2628 = vmatpush1.bf16.msra.mxu0 %v1312_v62  ;;  %3284 = vmatpush1.bf16.msra.mxu1 %v1314_v63  ;;  %v1354_v62 = vunpack.c.h.s8.bf16 %v494_v52  ;;  %v1358_v63 = vunpack.c.l.s8.bf16 %v498_v59  ;;  %v2254_v52 = vcombine.high %v5719_v58, %v5719_v58 }
 0x193   : > { %2638 = vmatprep.subr.bf16.mxu0 %v1318_v0  ;;  %3294 = vmatprep.subr.bf16.mxu1 %v1320_v2  ;;  %v1360_v0 = vunpack.c.l.s8.bf16 %v500_v60  ;;  %v497_v2 = vld [vmem:[%s5512_s14 + $0x6e0] sm:$0xff] }
 0x194   : > { %v1357_v4 = vunpack.c.l.s8.bf16 %v497_v2  ;;  %v1362_v12 = vunpack.c.h.s8.bf16 %v497_v2  ;;  %v517_v2 = vld [vmem:[%s5512_s14 + $0x780] sm:$0xff] }
 0x195   : > { %2630 = vmatmul.mubr.bf16.vlgmr.msra.gmra.mrb[0].mxu0 %v5776_v5  ;;  %3286 = vmatmul.mubr.bf16.vlgmr.msra.gmra.mrb[0].mxu1 %v5776_v5 }
 0x196   : > { %2639 = vmatpush1.bf16.msra.mxu0 %v1317_v6  ;;  %3295 = vmatpush1.bf16.msra.mxu1 %v1319_v7  ;;  %v1359_v6 = vunpack.c.l.s8.bf16 %v499_v3  ;;  %v1363_v7 = vunpack.c.h.s8.bf16 %v498_v59  ;;  %v518_v59 = vld [vmem:[%s5512_s14 + $0x788] sm:$0xff] }
 0x197   : > { %2640 = vmatprep.subr.bf16.mxu0 %v1323_v8  ;;  %3296 = vmatprep.subr.bf16.mxu1 %v1325_v10  ;;  %v1365_v8 = vunpack.c.h.s8.bf16 %v500_v60  ;;  %v503_v10 = vld [vmem:[%s5512_s14 + $0x710] sm:$0xff]  ;;  %v520_v60 = vld [vmem:[%s5512_s14 + $0x798] sm:$0xff]  ;;  %v1398_v58 = vunpack.c.l.s8.bf16 %v518_v59 }
 0x198   : > { %2670 = vmatprep.mubr.bf16.mxu0 %v5782_v13  ;;  %3326 = vmatprep.mubr.bf16.mxu1 %v5782_v13 }
 0x19a   : > { %2641 = vmatpush1.bf16.msra.mxu0 %v1322_v1  ;;  %3297 = vmatpush1.bf16.msra.mxu1 %v1324_v14  ;;  %v1364_v1 = vunpack.c.h.s8.bf16 %v499_v3  ;;  %v1368_v14 = vunpack.c.l.s8.bf16 %v503_v10  ;;  %v519_v3 = vld [vmem:[%s5512_s14 + $0x790] sm:$0xff] }
 0x19b   : > { %2642 = vmatprep.subr.bf16.mxu0 %v1328_v15  ;;  %3298 = vmatprep.subr.bf16.mxu1 %v1330_v17  ;;  %v1370_v15 = vunpack.c.l.s8.bf16 %v505_v11  ;;  %v502_v17 = vld [vmem:[%s5512_s14 + $0x708] sm:$0xff] }
 0x19c   : > { %v1367_v21 = vunpack.c.l.s8.bf16 %v502_v17  ;;  %v1372_v29 = vunpack.c.h.s8.bf16 %v502_v17  ;;  %v1404_v17 = vunpack.c.h.s8.bf16 %v519_v3 }
 0x19e   : > { %2643 = vmatpush1.bf16.msra.mxu0 %v1327_v22  ;;  %3299 = vmatpush1.bf16.msra.mxu1 %v1329_v23  ;;  %v1369_v22 = vunpack.c.l.s8.bf16 %v504_v19  ;;  %v1373_v23 = vunpack.c.h.s8.bf16 %v503_v10  ;;  %v1403_v10 = vunpack.c.h.s8.bf16 %v518_v59 }
 0x19f   : > { %2644 = vmatprep.subr.bf16.mxu0 %v1333_v24  ;;  %3300 = vmatprep.subr.bf16.mxu1 %v1335_v25  ;;  %v1375_v24 = vunpack.c.h.s8.bf16 %v505_v11  ;;  %v508_v25 = vld [vmem:[%s5512_s14 + $0x738] sm:$0xff]  ;;  %v1405_v11 = vunpack.c.h.s8.bf16 %v520_v60 }
 0x1a2   : > { %2645 = vmatpush1.bf16.msra.mxu0 %v1332_v36  ;;  %3301 = vmatpush1.bf16.msra.mxu1 %v1334_v30  ;;  %v1374_v36 = vunpack.c.h.s8.bf16 %v504_v19  ;;  %v1378_v30 = vunpack.c.l.s8.bf16 %v508_v25 }
 0x1a3   : > { %2646 = vmatprep.subr.bf16.mxu0 %v1338_v31  ;;  %3302 = vmatprep.subr.bf16.mxu1 %v1340_v32  ;;  %v1380_v31 = vunpack.c.l.s8.bf16 %v510_v27  ;;  %v507_v32 = vld [vmem:[%s5512_s14 + $0x730] sm:$0xff] }
 0x1a4   : > { %v1377_v37 = vunpack.c.l.s8.bf16 %v507_v32  ;;  %v1382_v45 = vunpack.c.h.s8.bf16 %v507_v32 }
 0x1a6   : > { %2647 = vmatpush1.bf16.msra.mxu0 %v1337_v38  ;;  %3303 = vmatpush1.bf16.msra.mxu1 %v1339_v39  ;;  %v1379_v38 = vunpack.c.l.s8.bf16 %v509_v33  ;;  %v1383_v39 = vunpack.c.h.s8.bf16 %v508_v25 }
 0x1a7   : > { %2648 = vmatprep.subr.bf16.mxu0 %v1343_v40  ;;  %3304 = vmatprep.subr.bf16.mxu1 %v1345_v42  ;;  %v1385_v40 = vunpack.c.h.s8.bf16 %v510_v27  ;;  %v513_v42 = vld [vmem:[%s5512_s14 + $0x760] sm:$0xff] }
 0x1aa   : > { %2649 = vmatpush1.bf16.msra.mxu0 %v1342_v46  ;;  %3305 = vmatpush1.bf16.msra.mxu1 %v1344_v47  ;;  %v1384_v46 = vunpack.c.h.s8.bf16 %v509_v33  ;;  %v1388_v47 = vunpack.c.l.s8.bf16 %v513_v42 }
 0x1ab   : > { %2650 = vmatprep.subr.bf16.mxu0 %v1348_v48  ;;  %3306 = vmatprep.subr.bf16.mxu1 %v1350_v49  ;;  %v1390_v48 = vunpack.c.l.s8.bf16 %v515_v43  ;;  %v512_v49 = vld [vmem:[%s5512_s14 + $0x758] sm:$0xff] }
 0x1ae   : > { %2651 = vmatpush1.bf16.msra.mxu0 %v1347_v53  ;;  %3307 = vmatpush1.bf16.msra.mxu1 %v1349_v55  ;;  %v1387_v53 = vunpack.c.l.s8.bf16 %v512_v49  ;;  %v1389_v55 = vunpack.c.l.s8.bf16 %v514_v50 }
 0x1af   : > { %2652 = vmatprep.subr.bf16.mxu0 %v1353_v56  ;;  %3308 = vmatprep.subr.bf16.mxu1 %v1355_v57  ;;  %v1393_v56 = vunpack.c.h.s8.bf16 %v513_v42  ;;  %v1395_v57 = vunpack.c.h.s8.bf16 %v515_v43 }
 0x1b2   : > { %2653 = vmatpush1.bf16.msra.mxu0 %v1352_v41  ;;  %3309 = vmatpush1.bf16.msra.mxu1 %v1354_v62  ;;  %v5819_v41 = vrot.slane %v2254_v52, %v5540_v35  ;;  %v1392_v62 = vunpack.c.h.s8.bf16 %v512_v49 }
 0x1b3   : > { %2654 = vmatprep.subr.bf16.mxu0 %v1358_v63  ;;  %3310 = vmatprep.subr.bf16.mxu1 %v1360_v0  ;;  %v1394_v63 = vunpack.c.h.s8.bf16 %v514_v50  ;;  %v1400_v0 = vunpack.c.l.s8.bf16 %v520_v60 }
 0x1b6   : > { %2655 = vmatpush1.bf16.msra.mxu0 %v1357_v4  ;;  %3311 = vmatpush1.bf16.msra.mxu1 %v1359_v6  ;;  %v2270_v4 = vcombine.high %v5819_v41, %v5819_v41  ;;  %v5827_v6 = vcombine.high %v5776_v5, %v5776_v5 }
 0x1b7   : > { %2656 = vmatprep.subr.bf16.mxu0 %v1363_v7  ;;  %3312 = vmatprep.subr.bf16.mxu1 %v1365_v8  ;;  %v1397_v7 = vunpack.c.l.s8.bf16 %v517_v2  ;;  %v1399_v8 = vunpack.c.l.s8.bf16 %v519_v3 }
 0x1ba   : > { %2657 = vmatpush1.bf16.msra.mxu0 %v1362_v12  ;;  %3313 = vmatpush1.bf16.msra.mxu1 %v1364_v1  ;;  %v523_v12 = vld [vmem:[%s5512_s14 + $0x7b0] sm:$0xff]  ;;  %v525_v1 = vld [vmem:[%s5512_s14 + $0x7c0] sm:$0xff] }
 0x1bb   : > { %2658 = vmatprep.subr.bf16.mxu0 %v1368_v14  ;;  %3314 = vmatprep.subr.bf16.mxu1 %v1370_v15  ;;  %v5832_v14 = vrot.slane %v2270_v4, %v5540_v35  ;;  %v1402_v15 = vunpack.c.h.s8.bf16 %v517_v2  ;;  %v1408_v19 = vunpack.c.l.s8.bf16 %v523_v12  ;;  %v1413_v27 = vunpack.c.h.s8.bf16 %v523_v12  ;;  %v537_v4 = vld [vmem:[%s5512_s14 + $0x820] sm:$0xff] }
 0x1be   : > { %2659 = vmatpush1.bf16.msra.mxu0 %v1367_v21  ;;  %3315 = vmatpush1.bf16.msra.mxu1 %v1369_v22  ;;  %v1410_v21 = vunpack.c.l.s8.bf16 %v525_v1  ;;  %v522_v22 = vld [vmem:[%s5512_s14 + $0x7a8] sm:$0xff] }
 0x1bf   : > { %2660 = vmatprep.subr.bf16.mxu0 %v1373_v23  ;;  %3316 = vmatprep.subr.bf16.mxu1 %v1375_v24  ;;  %v524_v23 = vld [vmem:[%s5512_s14 + $0x7b8] sm:$0xff]  ;;  %v1407_v24 = vunpack.c.l.s8.bf16 %v522_v22 }
 0x1c0   : > { %v1409_v25 = vunpack.c.l.s8.bf16 %v524_v23  ;;  %v1414_v32 = vunpack.c.h.s8.bf16 %v524_v23  ;;  %v542_v23 = vld [vmem:[%s5512_s14 + $0x848] sm:$0xff] }
 0x1c2   : > { %2661 = vmatpush1.bf16.msra.mxu0 %v1372_v29  ;;  %3317 = vmatpush1.bf16.msra.mxu1 %v1374_v36  ;;  %v1415_v29 = vunpack.c.h.s8.bf16 %v525_v1  ;;  %v528_v36 = vld [vmem:[%s5512_s14 + $0x7d8] sm:$0xff]  ;;  %v543_v1 = vld [vmem:[%s5512_s14 + $0x850] sm:$0xff] }
 0x1c3   : > { %2662 = vmatprep.subr.bf16.mxu0 %v1378_v30  ;;  %3318 = vmatprep.subr.bf16.mxu1 %v1380_v31  ;;  %v530_v30 = vld [vmem:[%s5512_s14 + $0x7e8] sm:$0xff]  ;;  %v1412_v31 = vunpack.c.h.s8.bf16 %v522_v22  ;;  %v1418_v33 = vunpack.c.l.s8.bf16 %v528_v36  ;;  %v1423_v43 = vunpack.c.h.s8.bf16 %v528_v36 }
 0x1c6   : > { %2663 = vmatpush1.bf16.msra.mxu0 %v1377_v37  ;;  %3319 = vmatpush1.bf16.msra.mxu1 %v1379_v38  ;;  %v1420_v37 = vunpack.c.l.s8.bf16 %v530_v30  ;;  %v527_v38 = vld [vmem:[%s5512_s14 + $0x7d0] sm:$0xff] }
 0x1c7   : > { %2664 = vmatprep.subr.bf16.mxu0 %v1383_v39  ;;  %3320 = vmatprep.subr.bf16.mxu1 %v1385_v40  ;;  %v529_v39 = vld [vmem:[%s5512_s14 + $0x7e0] sm:$0xff]  ;;  %v1417_v40 = vunpack.c.l.s8.bf16 %v527_v38 }
 0x1c8   : > { %v1419_v42 = vunpack.c.l.s8.bf16 %v529_v39  ;;  %v1424_v49 = vunpack.c.h.s8.bf16 %v529_v39  ;;  %v547_v39 = vld [vmem:[%s5512_s14 + $0x870] sm:$0xff] }
 0x1ca   : > { %2665 = vmatpush1.bf16.msra.mxu0 %v1382_v45  ;;  %3321 = vmatpush1.bf16.msra.mxu1 %v1384_v46  ;;  %v1425_v45 = vunpack.c.h.s8.bf16 %v530_v30  ;;  %v533_v46 = vld [vmem:[%s5512_s14 + $0x800] sm:$0xff]  ;;  %v548_v30 = vld [vmem:[%s5512_s14 + $0x878] sm:$0xff] }
 0x1cb   : > { %2666 = vmatprep.subr.bf16.mxu0 %v1388_v47  ;;  %3322 = vmatprep.subr.bf16.mxu1 %v1390_v48  ;;  %v535_v47 = vld [vmem:[%s5512_s14 + $0x810] sm:$0xff]  ;;  %v1422_v48 = vunpack.c.h.s8.bf16 %v527_v38  ;;  %v1428_v50 = vunpack.c.l.s8.bf16 %v533_v46  ;;  %v1433_v59 = vunpack.c.h.s8.bf16 %v533_v46 }
 0x1cc   : > { %v1430_v52 = vunpack.c.l.s8.bf16 %v535_v47  ;;  %v1435_v60 = vunpack.c.h.s8.bf16 %v535_v47  ;;  %v553_v47 = vld [vmem:[%s5512_s14 + $0x8a0] sm:$0xff] }
 0x1ce   : > { %2667 = vmatpush1.bf16.msra.mxu0 %v1387_v53  ;;  %3323 = vmatpush1.bf16.msra.mxu1 %v1389_v55  ;;  %v532_v53 = vld [vmem:[%s5512_s14 + $0x7f8] sm:$0xff]  ;;  %v534_v55 = vld [vmem:[%s5512_s14 + $0x808] sm:$0xff] }
 0x1cf   : > { %2668 = vmatprep.subr.bf16.mxu0 %v1393_v56  ;;  %3324 = vmatprep.subr.bf16.mxu1 %v1395_v57  ;;  %v1427_v56 = vunpack.c.l.s8.bf16 %v532_v53  ;;  %v1429_v57 = vunpack.c.l.s8.bf16 %v534_v55 }
 0x1d2   : > { %2669 = vmatpush1.bf16.msra.mxu0 %v1392_v62  ;;  %3325 = vmatpush1.bf16.msra.mxu1 %v1394_v63  ;;  %v538_v62 = vld [vmem:[%s5512_s14 + $0x828] sm:$0xff]  ;;  %v540_v63 = vld [vmem:[%s5512_s14 + $0x838] sm:$0xff] }
 0x1d3   : > { %2679 = vmatprep.subr.bf16.mxu0 %v1398_v58  ;;  %3335 = vmatprep.subr.bf16.mxu1 %v1400_v0  ;;  %v1432_v58 = vunpack.c.h.s8.bf16 %v532_v53  ;;  %v1434_v0 = vunpack.c.h.s8.bf16 %v534_v55  ;;  %v1438_v2 = vunpack.c.l.s8.bf16 %v538_v62  ;;  %v1440_v3 = vunpack.c.l.s8.bf16 %v540_v63  ;;  %v552_v55 = vld [vmem:[%s5512_s14 + $0x898] sm:$0xff] }
 0x1d4   : > { %v1445_v12 = vunpack.c.h.s8.bf16 %v540_v63  ;;  %v558_v63 = vld [vmem:[%s5512_s14 + $0x8c8] sm:$0xff] }
 0x1d5   : > { %2671 = vmatmul.mubr.bf16.vlgmr.msra.gmra.mrb[0].mxu0 %v5827_v6  ;;  %3327 = vmatmul.mubr.bf16.vlgmr.msra.gmra.mrb[0].mxu1 %v5827_v6 }
 0x1d6   : > { %2680 = vmatpush1.bf16.msra.mxu0 %v1397_v7  ;;  %3336 = vmatpush1.bf16.msra.mxu1 %v1399_v8  ;;  %v539_v7 = vld [vmem:[%s5512_s14 + $0x830] sm:$0xff]  ;;  %v1437_v8 = vunpack.c.l.s8.bf16 %v537_v4 }
 0x1d7   : > { %2681 = vmatprep.subr.bf16.mxu0 %v1403_v10  ;;  %3337 = vmatprep.subr.bf16.mxu1 %v1405_v11  ;;  %v1439_v10 = vunpack.c.l.s8.bf16 %v539_v7  ;;  %v1443_v11 = vunpack.c.h.s8.bf16 %v538_v62 }
 0x1d8   : > { %2711 = vmatprep.mubr.bf16.mxu0 %v5832_v14  ;;  %3367 = vmatprep.mubr.bf16.mxu1 %v5832_v14 }
 0x1da   : > { %2682 = vmatpush1.bf16.msra.mxu0 %v1402_v15  ;;  %3338 = vmatpush1.bf16.msra.mxu1 %v1404_v17  ;;  %v545_v15 = vld [vmem:[%s5512_s14 + $0x860] sm:$0xff]  ;;  %v1442_v17 = vunpack.c.h.s8.bf16 %v537_v4 }
 0x1db   : > { %2683 = vmatprep.subr.bf16.mxu0 %v1408_v19  ;;  %3339 = vmatprep.subr.bf16.mxu1 %v1410_v21  ;;  %v1444_v19 = vunpack.c.h.s8.bf16 %v539_v7  ;;  %v1448_v21 = vunpack.c.l.s8.bf16 %v543_v1  ;;  %v1450_v22 = vunpack.c.l.s8.bf16 %v545_v15  ;;  %v1455_v36 = vunpack.c.h.s8.bf16 %v545_v15  ;;  %v557_v7 = vld [vmem:[%s5512_s14 + $0x8c0] sm:$0xff] }
 0x1de   : > { %2684 = vmatpush1.bf16.msra.mxu0 %v1407_v24  ;;  %3340 = vmatpush1.bf16.msra.mxu1 %v1409_v25  ;;  %v544_v24 = vld [vmem:[%s5512_s14 + $0x858] sm:$0xff]  ;;  %v1447_v25 = vunpack.c.l.s8.bf16 %v542_v23 }
 0x1df   : > { %2685 = vmatprep.subr.bf16.mxu0 %v1413_v27  ;;  %3341 = vmatprep.subr.bf16.mxu1 %v1415_v29  ;;  %v1449_v27 = vunpack.c.l.s8.bf16 %v544_v24  ;;  %v1453_v29 = vunpack.c.h.s8.bf16 %v543_v1  ;;  %v1483_v1 = vunpack.c.h.s8.bf16 %v558_v63 }
 0x1e2   : > { %2686 = vmatpush1.bf16.msra.mxu0 %v1412_v31  ;;  %3342 = vmatpush1.bf16.msra.mxu1 %v1414_v32  ;;  %v550_v31 = vld [vmem:[%s5512_s14 + $0x888] sm:$0xff]  ;;  %v1452_v32 = vunpack.c.h.s8.bf16 %v542_v23 }
 0x1e3   : > { %2687 = vmatprep.subr.bf16.mxu0 %v1418_v33  ;;  %3343 = vmatprep.subr.bf16.mxu1 %v1420_v37  ;;  %v1454_v33 = vunpack.c.h.s8.bf16 %v544_v24  ;;  %v1458_v37 = vunpack.c.l.s8.bf16 %v548_v30  ;;  %v1460_v38 = vunpack.c.l.s8.bf16 %v550_v31  ;;  %v1465_v46 = vunpack.c.h.s8.bf16 %v550_v31 }
 0x1e6   : > { %2688 = vmatpush1.bf16.msra.mxu0 %v1417_v40  ;;  %3344 = vmatpush1.bf16.msra.mxu1 %v1419_v42  ;;  %v549_v40 = vld [vmem:[%s5512_s14 + $0x880] sm:$0xff]  ;;  %v1457_v42 = vunpack.c.l.s8.bf16 %v547_v39 }
 0x1e7   : > { %2689 = vmatprep.subr.bf16.mxu0 %v1423_v43  ;;  %3345 = vmatprep.subr.bf16.mxu1 %v1425_v45  ;;  %v1459_v43 = vunpack.c.l.s8.bf16 %v549_v40  ;;  %v1463_v45 = vunpack.c.h.s8.bf16 %v548_v30 }
 0x1ea   : > { %2690 = vmatpush1.bf16.msra.mxu0 %v1422_v48  ;;  %3346 = vmatpush1.bf16.msra.mxu1 %v1424_v49  ;;  %v555_v48 = vld [vmem:[%s5512_s14 + $0x8b0] sm:$0xff]  ;;  %v1462_v49 = vunpack.c.h.s8.bf16 %v547_v39 }
 0x1eb   : > { %2691 = vmatprep.subr.bf16.mxu0 %v1428_v50  ;;  %3347 = vmatprep.subr.bf16.mxu1 %v1430_v52  ;;  %v1464_v50 = vunpack.c.h.s8.bf16 %v549_v40  ;;  %v1468_v52 = vunpack.c.l.s8.bf16 %v553_v47  ;;  %v1470_v53 = vunpack.c.l.s8.bf16 %v555_v48  ;;  %v1475_v62 = vunpack.c.h.s8.bf16 %v555_v48 }
 0x1ee   : > { %2692 = vmatpush1.bf16.msra.mxu0 %v1427_v56  ;;  %3348 = vmatpush1.bf16.msra.mxu1 %v1429_v57  ;;  %v554_v56 = vld [vmem:[%s5512_s14 + $0x8a8] sm:$0xff]  ;;  %v1467_v57 = vunpack.c.l.s8.bf16 %v552_v55 }
 0x1ef   : > { %2693 = vmatprep.subr.bf16.mxu0 %v1433_v59  ;;  %3349 = vmatprep.subr.bf16.mxu1 %v1435_v60  ;;  %v1469_v59 = vunpack.c.l.s8.bf16 %v554_v56  ;;  %v1473_v60 = vunpack.c.h.s8.bf16 %v553_v47 }
 0x1f2   : > { %2694 = vmatpush1.bf16.msra.mxu0 %v1432_v58  ;;  %3350 = vmatpush1.bf16.msra.mxu1 %v1434_v0  ;;  %v560_v58 = vld [vmem:[%s5512_s14 + $0x8d8] sm:$0xff]  ;;  %v1472_v0 = vunpack.c.h.s8.bf16 %v552_v55 }
 0x1f3   : > { %2695 = vmatprep.subr.bf16.mxu0 %v1438_v2  ;;  %3351 = vmatprep.subr.bf16.mxu1 %v1440_v3  ;;  %v1474_v2 = vunpack.c.h.s8.bf16 %v554_v56  ;;  %v1478_v3 = vunpack.c.l.s8.bf16 %v558_v63  ;;  %v1480_v4 = vunpack.c.l.s8.bf16 %v560_v58  ;;  %v1485_v15 = vunpack.c.h.s8.bf16 %v560_v58 }
 0x1f6   : > { %2696 = vmatpush1.bf16.msra.mxu0 %v1437_v8  ;;  %3352 = vmatpush1.bf16.msra.mxu1 %v1439_v10  ;;  %v559_v8 = vld [vmem:[%s5512_s14 + $0x8d0] sm:$0xff]  ;;  %v5870_v10 = vrot.slane %v5819_v41, %v5540_v35  ;;  %v1482_v41 = vunpack.c.h.s8.bf16 %v557_v7 }
 0x1f7   : > { %2697 = vmatprep.subr.bf16.mxu0 %v1443_v11  ;;  %3353 = vmatprep.subr.bf16.mxu1 %v1445_v12  ;;  %v1477_v11 = vunpack.c.l.s8.bf16 %v557_v7  ;;  %v1479_v12 = vunpack.c.l.s8.bf16 %v559_v8 }
 0x1fa   : > { %2698 = vmatpush1.bf16.msra.mxu0 %v1442_v17  ;;  %3354 = vmatpush1.bf16.msra.mxu1 %v1444_v19  ;;  %v563_v17 = vld [vmem:[%s5512_s14 + $0x8f0] sm:$0xff]  ;;  %v565_v19 = vld [vmem:[%s5512_s14 + $0x900] sm:$0xff] }
 0x1fb   : > { %2699 = vmatprep.subr.bf16.mxu0 %v1448_v21  ;;  %3355 = vmatprep.subr.bf16.mxu1 %v1450_v22  ;;  %v5876_v21 = vcombine.high %v5832_v14, %v5832_v14  ;;  %v1484_v22 = vunpack.c.h.s8.bf16 %v559_v8  ;;  %v1488_v23 = vunpack.c.l.s8.bf16 %v563_v17  ;;  %v1490_v24 = vunpack.c.l.s8.bf16 %v565_v19 }
 0x1fc   : > { %v1493_v30 = vunpack.c.h.s8.bf16 %v563_v17  ;;  %v1495_v31 = vunpack.c.h.s8.bf16 %v565_v19 }
 0x1fe   : > { %2700 = vmatpush1.bf16.msra.mxu0 %v1447_v25  ;;  %3356 = vmatpush1.bf16.msra.mxu1 %v1449_v27  ;;  %v562_v25 = vld [vmem:[%s5512_s14 + $0x8e8] sm:$0xff]  ;;  %v564_v27 = vld [vmem:[%s5512_s14 + $0x8f8] sm:$0xff] }
 0x1ff   : > { %2701 = vmatprep.subr.bf16.mxu0 %v1453_v29  ;;  %3357 = vmatprep.subr.bf16.mxu1 %v1455_v36  ;;  %v1487_v29 = vunpack.c.l.s8.bf16 %v562_v25  ;;  %v1489_v36 = vunpack.c.l.s8.bf16 %v564_v27 }
 0x202   : > { %2702 = vmatpush1.bf16.msra.mxu0 %v1452_v32  ;;  %3358 = vmatpush1.bf16.msra.mxu1 %v1454_v33  ;;  %v568_v32 = vld [vmem:[%s5512_s14 + $0x918] sm:$0xff]  ;;  %v570_v33 = vld [vmem:[%s5512_s14 + $0x928] sm:$0xff] }
 0x203   : > { %2703 = vmatprep.subr.bf16.mxu0 %v1458_v37  ;;  %3359 = vmatprep.subr.bf16.mxu1 %v1460_v38  ;;  %v1492_v37 = vunpack.c.h.s8.bf16 %v562_v25  ;;  %v1494_v38 = vunpack.c.h.s8.bf16 %v564_v27  ;;  %v1498_v39 = vunpack.c.l.s8.bf16 %v568_v32  ;;  %v1500_v40 = vunpack.c.l.s8.bf16 %v570_v33 }
 0x204   : > { %v1503_v47 = vunpack.c.h.s8.bf16 %v568_v32  ;;  %v1505_v48 = vunpack.c.h.s8.bf16 %v570_v33 }
 0x206   : > { %2704 = vmatpush1.bf16.msra.mxu0 %v1457_v42  ;;  %3360 = vmatpush1.bf16.msra.mxu1 %v1459_v43  ;;  %v567_v42 = vld [vmem:[%s5512_s14 + $0x910] sm:$0xff]  ;;  %v569_v43 = vld [vmem:[%s5512_s14 + $0x920] sm:$0xff] }
 0x207   : > { %2705 = vmatprep.subr.bf16.mxu0 %v1463_v45  ;;  %3361 = vmatprep.subr.bf16.mxu1 %v1465_v46  ;;  %v1497_v45 = vunpack.c.l.s8.bf16 %v567_v42  ;;  %v1499_v46 = vunpack.c.l.s8.bf16 %v569_v43 }
 0x20a   : > { %2706 = vmatpush1.bf16.msra.mxu0 %v1462_v49  ;;  %3362 = vmatpush1.bf16.msra.mxu1 %v1464_v50  ;;  %v573_v49 = vld [vmem:[%s5512_s14 + $0x940] sm:$0xff]  ;;  %v575_v50 = vld [vmem:[%s5512_s14 + $0x950] sm:$0xff] }
 0x20b   : > { %2707 = vmatprep.subr.bf16.mxu0 %v1468_v52  ;;  %3363 = vmatprep.subr.bf16.mxu1 %v1470_v53  ;;  %v1502_v52 = vunpack.c.h.s8.bf16 %v567_v42  ;;  %v1504_v53 = vunpack.c.h.s8.bf16 %v569_v43  ;;  %v1508_v55 = vunpack.c.l.s8.bf16 %v573_v49  ;;  %v1510_v56 = vunpack.c.l.s8.bf16 %v575_v50 }
 0x20c   : > { %v1513_v63 = vunpack.c.h.s8.bf16 %v573_v49  ;;  %v1515_v58 = vunpack.c.h.s8.bf16 %v575_v50 }
 0x20e   : > { %2708 = vmatpush1.bf16.msra.mxu0 %v1467_v57  ;;  %3364 = vmatpush1.bf16.msra.mxu1 %v1469_v59  ;;  %v572_v57 = vld [vmem:[%s5512_s14 + $0x938] sm:$0xff]  ;;  %v574_v59 = vld [vmem:[%s5512_s14 + $0x948] sm:$0xff] }
 0x20f   : > { %2709 = vmatprep.subr.bf16.mxu0 %v1473_v60  ;;  %3365 = vmatprep.subr.bf16.mxu1 %v1475_v62  ;;  %v1507_v60 = vunpack.c.l.s8.bf16 %v572_v57  ;;  %v1509_v62 = vunpack.c.l.s8.bf16 %v574_v59 }
 0x212   : > { %2710 = vmatpush1.bf16.msra.mxu0 %v1472_v0  ;;  %3366 = vmatpush1.bf16.msra.mxu1 %v1474_v2  ;;  %v578_v0 = vld [vmem:[%s5512_s14 + $0x968] sm:$0xff]  ;;  %v580_v2 = vld [vmem:[%s5512_s14 + $0x978] sm:$0xff] }
 0x213   : > { %2720 = vmatprep.subr.bf16.mxu0 %v1478_v3  ;;  %3376 = vmatprep.subr.bf16.mxu1 %v1480_v4  ;;  %v1512_v3 = vunpack.c.h.s8.bf16 %v572_v57  ;;  %v1514_v4 = vunpack.c.h.s8.bf16 %v574_v59  ;;  %v1518_v7 = vunpack.c.l.s8.bf16 %v578_v0  ;;  %v1520_v8 = vunpack.c.l.s8.bf16 %v580_v2 }
 0x214   : > { %v1523_v17 = vunpack.c.h.s8.bf16 %v578_v0  ;;  %v1525_v19 = vunpack.c.h.s8.bf16 %v580_v2 }
 0x215   : > { %2712 = vmatmul.mubr.bf16.vlgmr.msra.gmra.mrb[0].mxu0 %v5870_v10  ;;  %3368 = vmatmul.mubr.bf16.vlgmr.msra.gmra.mrb[0].mxu1 %v5870_v10 }
 0x216   : > { %2721 = vmatpush1.bf16.msra.mxu0 %v1477_v11  ;;  %3377 = vmatpush1.bf16.msra.mxu1 %v1479_v12  ;;  %v577_v11 = vld [vmem:[%s5512_s14 + $0x960] sm:$0xff]  ;;  %v579_v12 = vld [vmem:[%s5512_s14 + $0x970] sm:$0xff] }
 0x217   : > { %2722 = vmatprep.subr.bf16.mxu0 %v1483_v1  ;;  %3378 = vmatprep.subr.bf16.mxu1 %v1485_v15  ;;  %v1517_v1 = vunpack.c.l.s8.bf16 %v577_v11  ;;  %v1519_v15 = vunpack.c.l.s8.bf16 %v579_v12 }
 0x218   : > { %2752 = vmatprep.mubr.bf16.mxu0 %v5876_v21  ;;  %3408 = vmatprep.mubr.bf16.mxu1 %v5876_v21 }
 0x21a   : > { %2723 = vmatpush1.bf16.msra.mxu0 %v1482_v41  ;;  %3379 = vmatpush1.bf16.msra.mxu1 %v1484_v22  ;;  %v583_v41 = vld [vmem:[%s5512_s14 + $0x990] sm:$0xff]  ;;  %v585_v22 = vld [vmem:[%s5512_s14 + $0x9a0] sm:$0xff] }
 0x21b   : > { %2724 = vmatprep.subr.bf16.mxu0 %v1488_v23  ;;  %3380 = vmatprep.subr.bf16.mxu1 %v1490_v24  ;;  %v1522_v23 = vunpack.c.h.s8.bf16 %v577_v11  ;;  %v1524_v24 = vunpack.c.h.s8.bf16 %v579_v12  ;;  %v1528_v25 = vunpack.c.l.s8.bf16 %v583_v41  ;;  %v1530_v27 = vunpack.c.l.s8.bf16 %v585_v22 }
 0x21c   : > { %v1533_v32 = vunpack.c.h.s8.bf16 %v583_v41  ;;  %v1535_v33 = vunpack.c.h.s8.bf16 %v585_v22  ;;  %v5925_v22 = vcombine.high %v5870_v10, %v5870_v10 }
 0x21e   : > { %2725 = vmatpush1.bf16.msra.mxu0 %v1487_v29  ;;  %3381 = vmatpush1.bf16.msra.mxu1 %v1489_v36  ;;  %v582_v29 = vld [vmem:[%s5512_s14 + $0x988] sm:$0xff]  ;;  %v584_v36 = vld [vmem:[%s5512_s14 + $0x998] sm:$0xff] }
 0x21f   : > { %2726 = vmatprep.subr.bf16.mxu0 %v1493_v30  ;;  %3382 = vmatprep.subr.bf16.mxu1 %v1495_v31  ;;  %v1527_v30 = vunpack.c.l.s8.bf16 %v582_v29  ;;  %v1529_v31 = vunpack.c.l.s8.bf16 %v584_v36 }
 0x222   : > { %2727 = vmatpush1.bf16.msra.mxu0 %v1492_v37  ;;  %3383 = vmatpush1.bf16.msra.mxu1 %v1494_v38  ;;  %v588_v37 = vld [vmem:[%s5512_s14 + $0x9b8] sm:$0xff]  ;;  %v590_v38 = vld [vmem:[%s5512_s14 + $0x9c8] sm:$0xff] }
 0x223   : > { %2728 = vmatprep.subr.bf16.mxu0 %v1498_v39  ;;  %3384 = vmatprep.subr.bf16.mxu1 %v1500_v40  ;;  %v1532_v39 = vunpack.c.h.s8.bf16 %v582_v29  ;;  %v1534_v40 = vunpack.c.h.s8.bf16 %v584_v36  ;;  %v1538_v42 = vunpack.c.l.s8.bf16 %v588_v37  ;;  %v1540_v43 = vunpack.c.l.s8.bf16 %v590_v38  ;;  %v603_v29 = vld [vmem:[%s5512_s14 + $0xa30] sm:$0xff]  ;;  %v605_v36 = vld [vmem:[%s5512_s14 + $0xa40] sm:$0xff] }
 0x224   : > { %v1543_v49 = vunpack.c.h.s8.bf16 %v588_v37  ;;  %v1545_v50 = vunpack.c.h.s8.bf16 %v590_v38  ;;  %v1570_v37 = vunpack.c.l.s8.bf16 %v605_v36  ;;  %v602_v38 = vld [vmem:[%s5512_s14 + $0xa28] sm:$0xff] }
 0x226   : > { %2729 = vmatpush1.bf16.msra.mxu0 %v1497_v45  ;;  %3385 = vmatpush1.bf16.msra.mxu1 %v1499_v46  ;;  %v587_v45 = vld [vmem:[%s5512_s14 + $0x9b0] sm:$0xff]  ;;  %v589_v46 = vld [vmem:[%s5512_s14 + $0x9c0] sm:$0xff] }
 0x227   : > { %2730 = vmatprep.subr.bf16.mxu0 %v1503_v47  ;;  %3386 = vmatprep.subr.bf16.mxu1 %v1505_v48  ;;  %v1537_v47 = vunpack.c.l.s8.bf16 %v587_v45  ;;  %v1539_v48 = vunpack.c.l.s8.bf16 %v589_v46 }
 0x22a   : > { %2731 = vmatpush1.bf16.msra.mxu0 %v1502_v52  ;;  %3387 = vmatpush1.bf16.msra.mxu1 %v1504_v53  ;;  %v593_v52 = vld [vmem:[%s5512_s14 + $0x9e0] sm:$0xff]  ;;  %v595_v53 = vld [vmem:[%s5512_s14 + $0x9f0] sm:$0xff] }
 0x22b   : > { %2732 = vmatprep.subr.bf16.mxu0 %v1508_v55  ;;  %3388 = vmatprep.subr.bf16.mxu1 %v1510_v56  ;;  %v1542_v55 = vunpack.c.h.s8.bf16 %v587_v45  ;;  %v1544_v56 = vunpack.c.h.s8.bf16 %v589_v46  ;;  %v1548_v57 = vunpack.c.l.s8.bf16 %v593_v52  ;;  %v1550_v59 = vunpack.c.l.s8.bf16 %v595_v53  ;;  %v608_v46 = vld [vmem:[%s5512_s14 + $0xa58] sm:$0xff] }
 0x22c   : > { %v1553_v2 = vunpack.c.h.s8.bf16 %v593_v52  ;;  %v1575_v45 = vunpack.c.h.s8.bf16 %v605_v36  ;;  %v619_v36 = vld [vmem:[%s5512_s14 + $0xab0] sm:$0xff] }
 0x22e   : > { %2733 = vmatpush1.bf16.msra.mxu0 %v1507_v60  ;;  %3389 = vmatpush1.bf16.msra.mxu1 %v1509_v62  ;;  %v592_v60 = vld [vmem:[%s5512_s14 + $0x9d8] sm:$0xff]  ;;  %v594_v62 = vld [vmem:[%s5512_s14 + $0x9e8] sm:$0xff] }
 0x22f   : > { %2734 = vmatprep.subr.bf16.mxu0 %v1513_v63  ;;  %3390 = vmatprep.subr.bf16.mxu1 %v1515_v58  ;;  %v5911_v63 = vld [vmem:[%s6595_s0 + $0x10] sm:$0xff]  ;;  %v1547_v58 = vunpack.c.l.s8.bf16 %v592_v60  ;;  %v1549_v0 = vunpack.c.l.s8.bf16 %v594_v62  ;;  %v1552_v11 = vunpack.c.h.s8.bf16 %v592_v60  ;;  %v1554_v12 = vunpack.c.h.s8.bf16 %v594_v62  ;;  %v613_v62 = vld [vmem:[%s5512_s14 + $0xa80] sm:$0xff] }
 0x232   : > { %2735 = vmatpush1.bf16.msra.mxu0 %v1512_v3  ;;  %3391 = vmatpush1.bf16.msra.mxu1 %v1514_v4  ;;  %v1555_v3 = vunpack.c.h.s8.bf16 %v595_v53  ;;  %v598_v4 = vld [vmem:[%s5512_s14 + $0xa08] sm:$0xff]  ;;  %v607_v53 = vld [vmem:[%s5512_s14 + $0xa50] sm:$0xff] }
 0x233   : > { %2736 = vmatprep.subr.bf16.mxu0 %v1518_v7  ;;  %3392 = vmatprep.subr.bf16.mxu1 %v1520_v8  ;;  %v600_v7 = vld [vmem:[%s5512_s14 + $0xa18] sm:$0xff]  ;;  %v5917_v8 = vrot.slane %v5911_v63, %v5540_v35 }
 0x235   : > { %v2318_v41 = vcombine.high %v5917_v8, %v5917_v8 }
 0x236   : > { %2737 = vmatpush1.bf16.msra.mxu0 %v1517_v1  ;;  %3393 = vmatpush1.bf16.msra.mxu1 %v1519_v15  ;;  %v1558_v1 = vunpack.c.l.s8.bf16 %v598_v4  ;;  %v1560_v15 = vunpack.c.l.s8.bf16 %v600_v7 }
 0x237   : > { %2738 = vmatprep.subr.bf16.mxu0 %v1523_v17  ;;  %3394 = vmatprep.subr.bf16.mxu1 %v1525_v19  ;;  %v597_v17 = vld [vmem:[%s5512_s14 + $0xa00] sm:$0xff]  ;;  %v599_v19 = vld [vmem:[%s5512_s14 + $0xa10] sm:$0xff] }
 0x23a   : > { %2739 = vmatpush1.bf16.msra.mxu0 %v1522_v23  ;;  %3395 = vmatpush1.bf16.msra.mxu1 %v1524_v24  ;;  %v1557_v23 = vunpack.c.l.s8.bf16 %v597_v17  ;;  %v1559_v24 = vunpack.c.l.s8.bf16 %v599_v19 }
 0x23b   : > { %2740 = vmatprep.subr.bf16.mxu0 %v1528_v25  ;;  %3396 = vmatprep.subr.bf16.mxu1 %v1530_v27  ;;  %v1563_v25 = vunpack.c.h.s8.bf16 %v598_v4  ;;  %v1565_v27 = vunpack.c.h.s8.bf16 %v600_v7  ;;  %v612_v7 = vld [vmem:[%s5512_s14 + $0xa78] sm:$0xff] }
 0x23e   : > { %2741 = vmatpush1.bf16.msra.mxu0 %v1527_v30  ;;  %3397 = vmatpush1.bf16.msra.mxu1 %v1529_v31  ;;  %v5930_v30 = vrot.slane %v2318_v41, %v5540_v35  ;;  %v1562_v31 = vunpack.c.h.s8.bf16 %v597_v17  ;;  %v620_v41 = vld [vmem:[%s5512_s14 + $0xab8] sm:$0xff] }
 0x23f   : > { %2742 = vmatprep.subr.bf16.mxu0 %v1533_v32  ;;  %3398 = vmatprep.subr.bf16.mxu1 %v1535_v33  ;;  %v1564_v32 = vunpack.c.h.s8.bf16 %v599_v19  ;;  %v1568_v33 = vunpack.c.l.s8.bf16 %v603_v29  ;;  %v618_v19 = vld [vmem:[%s5512_s14 + $0xaa8] sm:$0xff] }
 0x242   : > { %2743 = vmatpush1.bf16.msra.mxu0 %v1532_v39  ;;  %3399 = vmatpush1.bf16.msra.mxu1 %v1534_v40  ;;  %v604_v39 = vld [vmem:[%s5512_s14 + $0xa38] sm:$0xff]  ;;  %v1567_v40 = vunpack.c.l.s8.bf16 %v602_v38 }
 0x243   : > { %2744 = vmatprep.subr.bf16.mxu0 %v1538_v42  ;;  %3400 = vmatprep.subr.bf16.mxu1 %v1540_v43  ;;  %v1569_v42 = vunpack.c.l.s8.bf16 %v604_v39  ;;  %v1573_v43 = vunpack.c.h.s8.bf16 %v603_v29  ;;  %v617_v29 = vld [vmem:[%s5512_s14 + $0xaa0] sm:$0xff] }
 0x246   : > { %2745 = vmatpush1.bf16.msra.mxu0 %v1537_v47  ;;  %3401 = vmatpush1.bf16.msra.mxu1 %v1539_v48  ;;  %v610_v47 = vld [vmem:[%s5512_s14 + $0xa68] sm:$0xff]  ;;  %v1572_v48 = vunpack.c.h.s8.bf16 %v602_v38  ;;  %v623_v38 = vld [vmem:[%s5512_s14 + $0xad0] sm:$0xff] }
 0x247   : > { %2746 = vmatprep.subr.bf16.mxu0 %v1543_v49  ;;  %3402 = vmatprep.subr.bf16.mxu1 %v1545_v50  ;;  %v1574_v49 = vunpack.c.h.s8.bf16 %v604_v39  ;;  %v1578_v50 = vunpack.c.l.s8.bf16 %v608_v46  ;;  %v1580_v52 = vunpack.c.l.s8.bf16 %v610_v47  ;;  %v1585_v60 = vunpack.c.h.s8.bf16 %v610_v47  ;;  %v625_v39 = vld [vmem:[%s5512_s14 + $0xae0] sm:$0xff]  ;;  %v624_v47 = vld [vmem:[%s5512_s14 + $0xad8] sm:$0xff] }
 0x24a   : > { %2747 = vmatpush1.bf16.msra.mxu0 %v1542_v55  ;;  %3403 = vmatpush1.bf16.msra.mxu1 %v1544_v56  ;;  %v609_v55 = vld [vmem:[%s5512_s14 + $0xa60] sm:$0xff]  ;;  %v1577_v56 = vunpack.c.l.s8.bf16 %v607_v53 }
 0x24b   : > { %2748 = vmatprep.subr.bf16.mxu0 %v1548_v57  ;;  %3404 = vmatprep.subr.bf16.mxu1 %v1550_v59  ;;  %v1579_v57 = vunpack.c.l.s8.bf16 %v609_v55  ;;  %v1583_v59 = vunpack.c.h.s8.bf16 %v608_v46  ;;  %v622_v46 = vld [vmem:[%s5512_s14 + $0xac8] sm:$0xff] }
 0x24e   : > { %2749 = vmatpush1.bf16.msra.mxu0 %v1547_v58  ;;  %3405 = vmatpush1.bf16.msra.mxu1 %v1549_v0  ;;  %v615_v58 = vld [vmem:[%s5512_s14 + $0xa90] sm:$0xff]  ;;  %v1582_v0 = vunpack.c.h.s8.bf16 %v607_v53  ;;  %v628_v53 = vld [vmem:[%s5512_s14 + $0xaf8] sm:$0xff] }
 0x24f   : > { %2750 = vmatprep.subr.bf16.mxu0 %v1553_v2  ;;  %3406 = vmatprep.subr.bf16.mxu1 %v1555_v3  ;;  %v1584_v2 = vunpack.c.h.s8.bf16 %v609_v55  ;;  %v1588_v3 = vunpack.c.l.s8.bf16 %v613_v62  ;;  %v1590_v4 = vunpack.c.l.s8.bf16 %v615_v58  ;;  %v1595_v17 = vunpack.c.h.s8.bf16 %v615_v58  ;;  %v630_v55 = vld [vmem:[%s5512_s14 + $0xb08] sm:$0xff]  ;;  %v629_v58 = vld [vmem:[%s5512_s14 + $0xb00] sm:$0xff] }
 0x252   : > { %2751 = vmatpush1.bf16.msra.mxu0 %v1552_v11  ;;  %3407 = vmatpush1.bf16.msra.mxu1 %v1554_v12  ;;  %v614_v11 = vld [vmem:[%s5512_s14 + $0xa88] sm:$0xff]  ;;  %v1587_v12 = vunpack.c.l.s8.bf16 %v612_v7 }
 0x253   : > { %2761 = vmatprep.subr.bf16.mxu0 %v1558_v1  ;;  %3417 = vmatprep.subr.bf16.mxu1 %v1560_v15  ;;  %v1589_v1 = vunpack.c.l.s8.bf16 %v614_v11  ;;  %v1593_v15 = vunpack.c.h.s8.bf16 %v613_v62  ;;  %v627_v62 = vld [vmem:[%s5512_s14 + $0xaf0] sm:$0xff] }
 0x255   : > { %2753 = vmatmul.mubr.bf16.vlgmr.msra.gmra.mrb[0].mxu0 %v5925_v22  ;;  %3409 = vmatmul.mubr.bf16.vlgmr.msra.gmra.mrb[0].mxu1 %v5925_v22 }
 0x256   : > { %2762 = vmatpush1.bf16.msra.mxu0 %v1557_v23  ;;  %3418 = vmatpush1.bf16.msra.mxu1 %v1559_v24  ;;  %v1592_v23 = vunpack.c.h.s8.bf16 %v612_v7  ;;  %v1594_v24 = vunpack.c.h.s8.bf16 %v614_v11  ;;  %v633_v7 = vld [vmem:[%s5512_s14 + $0xb20] sm:$0xff]  ;;  %v635_v11 = vld [vmem:[%s5512_s14 + $0xb30] sm:$0xff] }
 0x257   : > { %2763 = vmatprep.subr.bf16.mxu0 %v1563_v25  ;;  %3419 = vmatprep.subr.bf16.mxu1 %v1565_v27  ;;  %v1598_v25 = vunpack.c.l.s8.bf16 %v618_v19  ;;  %v1600_v27 = vunpack.c.l.s8.bf16 %v620_v41 }
 0x258   : > { %2793 = vmatprep.mubr.bf16.mxu0 %v5930_v30  ;;  %3449 = vmatprep.mubr.bf16.mxu1 %v5930_v30 }
 0x25a   : > { %2764 = vmatpush1.bf16.msra.mxu0 %v1562_v31  ;;  %3420 = vmatpush1.bf16.msra.mxu1 %v1564_v32  ;;  %v1597_v31 = vunpack.c.l.s8.bf16 %v617_v29  ;;  %v1599_v32 = vunpack.c.l.s8.bf16 %v619_v36 }
 0x25b   : > { %2765 = vmatprep.subr.bf16.mxu0 %v1568_v33  ;;  %3421 = vmatprep.subr.bf16.mxu1 %v1570_v37  ;;  %v1603_v33 = vunpack.c.h.s8.bf16 %v618_v19  ;;  %v1605_v37 = vunpack.c.h.s8.bf16 %v620_v41  ;;  %v632_v19 = vld [vmem:[%s5512_s14 + $0xb18] sm:$0xff]  ;;  %v634_v41 = vld [vmem:[%s5512_s14 + $0xb28] sm:$0xff] }
 0x25e   : > { %2766 = vmatpush1.bf16.msra.mxu0 %v1567_v40  ;;  %3422 = vmatpush1.bf16.msra.mxu1 %v1569_v42  ;;  %v1602_v40 = vunpack.c.h.s8.bf16 %v617_v29  ;;  %v1604_v42 = vunpack.c.h.s8.bf16 %v619_v36  ;;  %v638_v29 = vld [vmem:[%s5512_s14 + $0xb48] sm:$0xff]  ;;  %v640_v36 = vld [vmem:[%s5512_s14 + $0xb58] sm:$0xff] }
 0x25f   : > { %2767 = vmatprep.subr.bf16.mxu0 %v1573_v43  ;;  %3423 = vmatprep.subr.bf16.mxu1 %v1575_v45  ;;  %v1608_v43 = vunpack.c.l.s8.bf16 %v623_v38  ;;  %v1610_v45 = vunpack.c.l.s8.bf16 %v625_v39 }
 0x262   : > { %2768 = vmatpush1.bf16.msra.mxu0 %v1572_v48  ;;  %3424 = vmatpush1.bf16.msra.mxu1 %v1574_v49  ;;  %v1607_v48 = vunpack.c.l.s8.bf16 %v622_v46  ;;  %v1609_v49 = vunpack.c.l.s8.bf16 %v624_v47 }
 0x263   : > { %2769 = vmatprep.subr.bf16.mxu0 %v1578_v50  ;;  %3425 = vmatprep.subr.bf16.mxu1 %v1580_v52  ;;  %v1613_v50 = vunpack.c.h.s8.bf16 %v623_v38  ;;  %v1615_v52 = vunpack.c.h.s8.bf16 %v625_v39  ;;  %v637_v38 = vld [vmem:[%s5512_s14 + $0xb40] sm:$0xff]  ;;  %v639_v39 = vld [vmem:[%s5512_s14 + $0xb50] sm:$0xff] }
 0x266   : > { %2770 = vmatpush1.bf16.msra.mxu0 %v1577_v56  ;;  %3426 = vmatpush1.bf16.msra.mxu1 %v1579_v57  ;;  %v1612_v56 = vunpack.c.h.s8.bf16 %v622_v46  ;;  %v1614_v57 = vunpack.c.h.s8.bf16 %v624_v47  ;;  %v1645_v46 = vunpack.c.h.s8.bf16 %v640_v36  ;;  %v643_v47 = vld [vmem:[%s5512_s14 + $0xb70] sm:$0xff] }
 0x267   : > { %2771 = vmatprep.subr.bf16.mxu0 %v1583_v59  ;;  %3427 = vmatprep.subr.bf16.mxu1 %v1585_v60  ;;  %v1618_v59 = vunpack.c.l.s8.bf16 %v628_v53  ;;  %v1620_v60 = vunpack.c.l.s8.bf16 %v630_v55 }
 0x26a   : > { %2772 = vmatpush1.bf16.msra.mxu0 %v1582_v0  ;;  %3428 = vmatpush1.bf16.msra.mxu1 %v1584_v2  ;;  %v1617_v0 = vunpack.c.l.s8.bf16 %v627_v62  ;;  %v1619_v2 = vunpack.c.l.s8.bf16 %v629_v58 }
 0x26b   : > { %2773 = vmatprep.subr.bf16.mxu0 %v1588_v3  ;;  %3429 = vmatprep.subr.bf16.mxu1 %v1590_v4  ;;  %v1623_v3 = vunpack.c.h.s8.bf16 %v628_v53  ;;  %v1625_v4 = vunpack.c.h.s8.bf16 %v630_v55  ;;  %v642_v55 = vld [vmem:[%s5512_s14 + $0xb68] sm:$0xff] }
 0x26e   : > { %2774 = vmatpush1.bf16.msra.mxu0 %v1587_v12  ;;  %3430 = vmatpush1.bf16.msra.mxu1 %v1589_v1  ;;  %v1622_v12 = vunpack.c.h.s8.bf16 %v627_v62  ;;  %v1624_v1 = vunpack.c.h.s8.bf16 %v629_v58  ;;  %v648_v58 = vld [vmem:[%s5512_s14 + $0xb98] sm:$0xff] }
 0x26f   : > { %2775 = vmatprep.subr.bf16.mxu0 %v1593_v15  ;;  %3431 = vmatprep.subr.bf16.mxu1 %v1595_v17  ;;  %v1628_v15 = vunpack.c.l.s8.bf16 %v633_v7  ;;  %v1630_v17 = vunpack.c.l.s8.bf16 %v635_v11 }
 0x272   : > { %2776 = vmatpush1.bf16.msra.mxu0 %v1592_v23  ;;  %3432 = vmatpush1.bf16.msra.mxu1 %v1594_v24  ;;  %v1627_v23 = vunpack.c.l.s8.bf16 %v632_v19  ;;  %v1629_v24 = vunpack.c.l.s8.bf16 %v634_v41 }
 0x273   : > { %2777 = vmatprep.subr.bf16.mxu0 %v1598_v25  ;;  %3433 = vmatprep.subr.bf16.mxu1 %v1600_v27  ;;  %v1633_v25 = vunpack.c.h.s8.bf16 %v633_v7  ;;  %v1635_v27 = vunpack.c.h.s8.bf16 %v635_v11  ;;  %v647_v11 = vld [vmem:[%s5512_s14 + $0xb90] sm:$0xff] }
 0x276   : > { %2778 = vmatpush1.bf16.msra.mxu0 %v1597_v31  ;;  %3434 = vmatpush1.bf16.msra.mxu1 %v1599_v32  ;;  %v1632_v31 = vunpack.c.h.s8.bf16 %v632_v19  ;;  %v1634_v32 = vunpack.c.h.s8.bf16 %v634_v41  ;;  %v653_v41 = vld [vmem:[%s5512_s14 + $0xbc0] sm:$0xff] }
 0x277   : > { %2779 = vmatprep.subr.bf16.mxu0 %v1603_v33  ;;  %3435 = vmatprep.subr.bf16.mxu1 %v1605_v37  ;;  %v1638_v33 = vunpack.c.l.s8.bf16 %v638_v29  ;;  %v1640_v37 = vunpack.c.l.s8.bf16 %v640_v36  ;;  %v652_v36 = vld [vmem:[%s5512_s14 + $0xbb8] sm:$0xff] }
 0x27a   : > { %2780 = vmatpush1.bf16.msra.mxu0 %v1602_v40  ;;  %3436 = vmatpush1.bf16.msra.mxu1 %v1604_v42  ;;  %v5968_v40 = vrot.slane %v5917_v8, %v5540_v35  ;;  %v1637_v42 = vunpack.c.l.s8.bf16 %v637_v38  ;;  %v1642_v8 = vunpack.c.h.s8.bf16 %v637_v38 }
 0x27b   : > { %2781 = vmatprep.subr.bf16.mxu0 %v1608_v43  ;;  %3437 = vmatprep.subr.bf16.mxu1 %v1610_v45  ;;  %v1639_v43 = vunpack.c.l.s8.bf16 %v639_v39  ;;  %v1643_v45 = vunpack.c.h.s8.bf16 %v638_v29 }
 0x27e   : > { %2782 = vmatpush1.bf16.msra.mxu0 %v1607_v48  ;;  %3438 = vmatpush1.bf16.msra.mxu1 %v1609_v49  ;;  %v645_v48 = vld [vmem:[%s5512_s14 + $0xb80] sm:$0xff]  ;;  %v5974_v49 = vcombine.high %v5930_v30, %v5930_v30 }
 0x27f   : > { %2783 = vmatprep.subr.bf16.mxu0 %v1613_v50  ;;  %3439 = vmatprep.subr.bf16.mxu1 %v1615_v52  ;;  %v1644_v50 = vunpack.c.h.s8.bf16 %v639_v39  ;;  %v1648_v52 = vunpack.c.l.s8.bf16 %v643_v47  ;;  %v1650_v53 = vunpack.c.l.s8.bf16 %v645_v48  ;;  %v1655_v62 = vunpack.c.h.s8.bf16 %v645_v48  ;;  %v658_v39 = vld [vmem:[%s5512_s14 + $0xbe8] sm:$0xff]  ;;  %v657_v48 = vld [vmem:[%s5512_s14 + $0xbe0] sm:$0xff] }
 0x282   : > { %2784 = vmatpush1.bf16.msra.mxu0 %v1612_v56  ;;  %3440 = vmatpush1.bf16.msra.mxu1 %v1614_v57  ;;  %v644_v56 = vld [vmem:[%s5512_s14 + $0xb78] sm:$0xff]  ;;  %v1647_v57 = vunpack.c.l.s8.bf16 %v642_v55 }
 0x283   : > { %2785 = vmatprep.subr.bf16.mxu0 %v1618_v59  ;;  %3441 = vmatprep.subr.bf16.mxu1 %v1620_v60  ;;  %v1649_v59 = vunpack.c.l.s8.bf16 %v644_v56  ;;  %v1653_v60 = vunpack.c.h.s8.bf16 %v643_v47 }
 0x286   : > { %2786 = vmatpush1.bf16.msra.mxu0 %v1617_v0  ;;  %3442 = vmatpush1.bf16.msra.mxu1 %v1619_v2  ;;  %v650_v0 = vld [vmem:[%s5512_s14 + $0xba8] sm:$0xff]  ;;  %v1652_v2 = vunpack.c.h.s8.bf16 %v642_v55 }
 0x287   : > { %2787 = vmatprep.subr.bf16.mxu0 %v1623_v3  ;;  %3443 = vmatprep.subr.bf16.mxu1 %v1625_v4  ;;  %v1654_v3 = vunpack.c.h.s8.bf16 %v644_v56  ;;  %v1658_v4 = vunpack.c.l.s8.bf16 %v648_v58  ;;  %v1660_v7 = vunpack.c.l.s8.bf16 %v650_v0  ;;  %v1665_v19 = vunpack.c.h.s8.bf16 %v650_v0  ;;  %v663_v56 = vld [vmem:[%s5512_s14 + $0xc10] sm:$0xff]  ;;  %v662_v0 = vld [vmem:[%s5512_s14 + $0xc08] sm:$0xff] }
 0x28a   : > { %2788 = vmatpush1.bf16.msra.mxu0 %v1622_v12  ;;  %3444 = vmatpush1.bf16.msra.mxu1 %v1624_v1  ;;  %v649_v12 = vld [vmem:[%s5512_s14 + $0xba0] sm:$0xff]  ;;  %v1657_v1 = vunpack.c.l.s8.bf16 %v647_v11 }
 0x28b   : > { %2789 = vmatprep.subr.bf16.mxu0 %v1628_v15  ;;  %3445 = vmatprep.subr.bf16.mxu1 %v1630_v17  ;;  %v1659_v15 = vunpack.c.l.s8.bf16 %v649_v12  ;;  %v1663_v17 = vunpack.c.h.s8.bf16 %v648_v58 }
 0x28e   : > { %2790 = vmatpush1.bf16.msra.mxu0 %v1627_v23  ;;  %3446 = vmatpush1.bf16.msra.mxu1 %v1629_v24  ;;  %v655_v23 = vld [vmem:[%s5512_s14 + $0xbd0] sm:$0xff]  ;;  %v1662_v24 = vunpack.c.h.s8.bf16 %v647_v11 }
 0x28f   : > { %2791 = vmatprep.subr.bf16.mxu0 %v1633_v25  ;;  %3447 = vmatprep.subr.bf16.mxu1 %v1635_v27  ;;  %v1664_v25 = vunpack.c.h.s8.bf16 %v649_v12  ;;  %v1668_v27 = vunpack.c.l.s8.bf16 %v653_v41  ;;  %v1670_v29 = vunpack.c.l.s8.bf16 %v655_v23  ;;  %v1675_v38 = vunpack.c.h.s8.bf16 %v655_v23  ;;  %v668_v12 = vld [vmem:[%s5512_s14 + $0xc38] sm:$0xff]  ;;  %v667_v23 = vld [vmem:[%s5512_s14 + $0xc30] sm:$0xff] }
 0x292   : > { %2792 = vmatpush1.bf16.msra.mxu0 %v1632_v31  ;;  %3448 = vmatpush1.bf16.msra.mxu1 %v1634_v32  ;;  %v654_v31 = vld [vmem:[%s5512_s14 + $0xbc8] sm:$0xff]  ;;  %v1667_v32 = vunpack.c.l.s8.bf16 %v652_v36 }
 0x293   : > { %2802 = vmatprep.subr.bf16.mxu0 %v1638_v33  ;;  %3458 = vmatprep.subr.bf16.mxu1 %v1640_v37  ;;  %v1669_v33 = vunpack.c.l.s8.bf16 %v654_v31  ;;  %v1673_v37 = vunpack.c.h.s8.bf16 %v653_v41 }
 0x295   : > { %2794 = vmatmul.mubr.bf16.vlgmr.msra.gmra.mrb[0].mxu0 %v5968_v40  ;;  %3450 = vmatmul.mubr.bf16.vlgmr.msra.gmra.mrb[0].mxu1 %v5968_v40 }
 0x296   : > { %2803 = vmatpush1.bf16.msra.mxu0 %v1637_v42  ;;  %3459 = vmatpush1.bf16.msra.mxu1 %v1639_v43  ;;  %v660_v42 = vld [vmem:[%s5512_s14 + $0xbf8] sm:$0xff]  ;;  %v1672_v43 = vunpack.c.h.s8.bf16 %v652_v36 }
 0x297   : > { %2804 = vmatprep.subr.bf16.mxu0 %v1643_v45  ;;  %3460 = vmatprep.subr.bf16.mxu1 %v1645_v46  ;;  %v1674_v45 = vunpack.c.h.s8.bf16 %v654_v31  ;;  %v1678_v46 = vunpack.c.l.s8.bf16 %v658_v39  ;;  %v1680_v47 = vunpack.c.l.s8.bf16 %v660_v42  ;;  %v1685_v55 = vunpack.c.h.s8.bf16 %v660_v42  ;;  %v673_v31 = vld [vmem:[%s5512_s14 + $0xc60] sm:$0xff]  ;;  %v672_v42 = vld [vmem:[%s5512_s14 + $0xc58] sm:$0xff] }
 0x298   : > { %2834 = vmatprep.mubr.bf16.mxu0 %v5974_v49  ;;  %3490 = vmatprep.mubr.bf16.mxu1 %v5974_v49 }
 0x29a   : > { %2805 = vmatpush1.bf16.msra.mxu0 %v1642_v8  ;;  %3461 = vmatpush1.bf16.msra.mxu1 %v1644_v50  ;;  %v659_v8 = vld [vmem:[%s5512_s14 + $0xbf0] sm:$0xff]  ;;  %v1677_v50 = vunpack.c.l.s8.bf16 %v657_v48 }
 0x29b   : > { %2806 = vmatprep.subr.bf16.mxu0 %v1648_v52  ;;  %3462 = vmatprep.subr.bf16.mxu1 %v1650_v53  ;;  %v1679_v52 = vunpack.c.l.s8.bf16 %v659_v8  ;;  %v1683_v53 = vunpack.c.h.s8.bf16 %v658_v39 }
 0x29e   : > { %2807 = vmatpush1.bf16.msra.mxu0 %v1647_v57  ;;  %3463 = vmatpush1.bf16.msra.mxu1 %v1649_v59  ;;  %v665_v57 = vld [vmem:[%s5512_s14 + $0xc20] sm:$0xff]  ;;  %v1682_v59 = vunpack.c.h.s8.bf16 %v657_v48  ;;  %v1713_v48 = vunpack.c.h.s8.bf16 %v673_v31 }
 0x29f   : > { %2808 = vmatprep.subr.bf16.mxu0 %v1653_v60  ;;  %3464 = vmatprep.subr.bf16.mxu1 %v1655_v62  ;;  %v1684_v60 = vunpack.c.h.s8.bf16 %v659_v8  ;;  %v1688_v62 = vunpack.c.l.s8.bf16 %v663_v56  ;;  %v1690_v58 = vunpack.c.l.s8.bf16 %v665_v57  ;;  %v1695_v11 = vunpack.c.h.s8.bf16 %v665_v57 }
 0x2a2   : > { %2809 = vmatpush1.bf16.msra.mxu0 %v1652_v2  ;;  %3465 = vmatpush1.bf16.msra.mxu1 %v1654_v3  ;;  %v664_v2 = vld [vmem:[%s5512_s14 + $0xc18] sm:$0xff]  ;;  %v1687_v3 = vunpack.c.l.s8.bf16 %v662_v0 }
 0x2a3   : > { %2810 = vmatprep.subr.bf16.mxu0 %v1658_v4  ;;  %3466 = vmatprep.subr.bf16.mxu1 %v1660_v7  ;;  %v1689_v4 = vunpack.c.l.s8.bf16 %v664_v2  ;;  %v1693_v7 = vunpack.c.h.s8.bf16 %v663_v56 }
 0x2a6   : > { %2811 = vmatpush1.bf16.msra.mxu0 %v1657_v1  ;;  %3467 = vmatpush1.bf16.msra.mxu1 %v1659_v15  ;;  %v670_v1 = vld [vmem:[%s5512_s14 + $0xc48] sm:$0xff]  ;;  %v1692_v15 = vunpack.c.h.s8.bf16 %v662_v0 }
 0x2a7   : > { %2812 = vmatprep.subr.bf16.mxu0 %v1663_v17  ;;  %3468 = vmatprep.subr.bf16.mxu1 %v1665_v19  ;;  %v1694_v17 = vunpack.c.h.s8.bf16 %v664_v2  ;;  %v1698_v19 = vunpack.c.l.s8.bf16 %v668_v12  ;;  %v1700_v41 = vunpack.c.l.s8.bf16 %v670_v1  ;;  %v1705_v36 = vunpack.c.h.s8.bf16 %v670_v1 }
 0x2aa   : > { %2813 = vmatpush1.bf16.msra.mxu0 %v1662_v24  ;;  %3469 = vmatpush1.bf16.msra.mxu1 %v1664_v25  ;;  %v669_v24 = vld [vmem:[%s5512_s14 + $0xc40] sm:$0xff]  ;;  %v1697_v25 = vunpack.c.l.s8.bf16 %v667_v23 }
 0x2ab   : > { %2814 = vmatprep.subr.bf16.mxu0 %v1668_v27  ;;  %3470 = vmatprep.subr.bf16.mxu1 %v1670_v29  ;;  %v1699_v27 = vunpack.c.l.s8.bf16 %v669_v24  ;;  %v1703_v29 = vunpack.c.h.s8.bf16 %v668_v12 }
 0x2ae   : > { %2815 = vmatpush1.bf16.msra.mxu0 %v1667_v32  ;;  %3471 = vmatpush1.bf16.msra.mxu1 %v1669_v33  ;;  %v675_v32 = vld [vmem:[%s5512_s14 + $0xc70] sm:$0xff]  ;;  %v1702_v33 = vunpack.c.h.s8.bf16 %v667_v23  ;;  %v684_v23 = vld [vmem:[%s5512_s14 + $0xcb8] sm:$0xff] }
 0x2af   : > { %2816 = vmatprep.subr.bf16.mxu0 %v1673_v37  ;;  %3472 = vmatprep.subr.bf16.mxu1 %v1675_v38  ;;  %v1704_v37 = vunpack.c.h.s8.bf16 %v669_v24  ;;  %v1708_v38 = vunpack.c.l.s8.bf16 %v673_v31  ;;  %v1710_v39 = vunpack.c.l.s8.bf16 %v675_v32  ;;  %v1715_v8 = vunpack.c.h.s8.bf16 %v675_v32  ;;  %v690_v31 = vld [vmem:[%s5512_s14 + $0xce8] sm:$0xff] }
 0x2b2   : > { %2817 = vmatpush1.bf16.msra.mxu0 %v1672_v43  ;;  %3473 = vmatpush1.bf16.msra.mxu1 %v1674_v45  ;;  %v674_v43 = vld [vmem:[%s5512_s14 + $0xc68] sm:$0xff]  ;;  %v2303_v45 = vcombine.high %v5911_v63, %v5911_v63 }
 0x2b3   : > { %2818 = vmatprep.subr.bf16.mxu0 %v1678_v46  ;;  %3474 = vmatprep.subr.bf16.mxu1 %v1680_v47  ;;  %v1707_v46 = vunpack.c.l.s8.bf16 %v672_v42  ;;  %v1709_v47 = vunpack.c.l.s8.bf16 %v674_v43  ;;  %v1714_v56 = vunpack.c.h.s8.bf16 %v674_v43 }
 0x2b6   : > { %2819 = vmatpush1.bf16.msra.mxu0 %v1677_v50  ;;  %3475 = vmatpush1.bf16.msra.mxu1 %v1679_v52  ;;  %v678_v50 = vld [vmem:[%s5512_s14 + $0xc88] sm:$0xff]  ;;  %v680_v52 = vld [vmem:[%s5512_s14 + $0xc98] sm:$0xff] }
 0x2b7   : > { %2820 = vmatprep.subr.bf16.mxu0 %v1683_v53  ;;  %3476 = vmatprep.subr.bf16.mxu1 %v1685_v55  ;;  %v6011_v53 = vrot.slane %v2303_v45, %v5540_v35  ;;  %v1712_v55 = vunpack.c.h.s8.bf16 %v672_v42  ;;  %v1718_v63 = vunpack.c.l.s8.bf16 %v678_v50  ;;  %v1720_v57 = vunpack.c.l.s8.bf16 %v680_v52  ;;  %v689_v42 = vld [vmem:[%s5512_s14 + $0xce0] sm:$0xff] }
 0x2b8   : > { %v1739_v45 = vunpack.c.l.s8.bf16 %v689_v42 }
 0x2ba   : > { %2821 = vmatpush1.bf16.msra.mxu0 %v1682_v59  ;;  %3477 = vmatpush1.bf16.msra.mxu1 %v1684_v60  ;;  %v677_v59 = vld [vmem:[%s5512_s14 + $0xc80] sm:$0xff]  ;;  %v679_v60 = vld [vmem:[%s5512_s14 + $0xc90] sm:$0xff] }
 0x2bb   : > { %2822 = vmatprep.subr.bf16.mxu0 %v1688_v62  ;;  %3478 = vmatprep.subr.bf16.mxu1 %v1690_v58  ;;  %v2319_v62 = vcombine.high %v6011_v53, %v6011_v53  ;;  %v6019_v58 = vcombine.high %v5968_v40, %v5968_v40  ;;  %v1717_v0 = vunpack.c.l.s8.bf16 %v677_v59  ;;  %v1719_v2 = vunpack.c.l.s8.bf16 %v679_v60 }
 0x2bc   : > { %v1722_v1 = vunpack.c.h.s8.bf16 %v677_v59 }
 0x2bd   : > { %v6024_v12 = vrot.slane %v2319_v62, %v5540_v35 }
 0x2be   : > { %2823 = vmatpush1.bf16.msra.mxu0 %v1687_v3  ;;  %3479 = vmatpush1.bf16.msra.mxu1 %v1689_v4  ;;  %v1723_v3 = vunpack.c.h.s8.bf16 %v678_v50  ;;  %v1725_v4 = vunpack.c.h.s8.bf16 %v680_v52  ;;  %v1744_v52 = vunpack.c.h.s8.bf16 %v689_v42 }
 0x2bf   : > { %2824 = vmatprep.subr.bf16.mxu0 %v1693_v7  ;;  %3480 = vmatprep.subr.bf16.mxu1 %v1695_v11  ;;  %v683_v7 = vld [vmem:[%s5512_s14 + $0xcb0] sm:$0xff]  ;;  %v685_v11 = vld [vmem:[%s5512_s14 + $0xcc0] sm:$0xff] }
 0x2c2   : > { %2825 = vmatpush1.bf16.msra.mxu0 %v1692_v15  ;;  %3481 = vmatpush1.bf16.msra.mxu1 %v1694_v17  ;;  %v1724_v15 = vunpack.c.h.s8.bf16 %v679_v60  ;;  %v1728_v17 = vunpack.c.l.s8.bf16 %v683_v7 }
 0x2c3   : > { %2826 = vmatprep.subr.bf16.mxu0 %v1698_v19  ;;  %3482 = vmatprep.subr.bf16.mxu1 %v1700_v41  ;;  %v1730_v19 = vunpack.c.l.s8.bf16 %v685_v11  ;;  %v682_v41 = vld [vmem:[%s5512_s14 + $0xca8] sm:$0xff] }
 0x2c4   : > { %v1727_v24 = vunpack.c.l.s8.bf16 %v682_v41  ;;  %v1732_v32 = vunpack.c.h.s8.bf16 %v682_v41 }
 0x2c6   : > { %2827 = vmatpush1.bf16.msra.mxu0 %v1697_v25  ;;  %3483 = vmatpush1.bf16.msra.mxu1 %v1699_v27  ;;  %v1729_v25 = vunpack.c.l.s8.bf16 %v684_v23  ;;  %v1733_v27 = vunpack.c.h.s8.bf16 %v683_v7 }
 0x2c7   : > { %2828 = vmatprep.subr.bf16.mxu0 %v1703_v29  ;;  %3484 = vmatprep.subr.bf16.mxu1 %v1705_v36  ;;  %v1735_v29 = vunpack.c.h.s8.bf16 %v685_v11  ;;  %v688_v36 = vld [vmem:[%s5512_s14 + $0xcd8] sm:$0xff] }
 0x2ca   : > { %2829 = vmatpush1.bf16.msra.mxu0 %v1702_v33  ;;  %3485 = vmatpush1.bf16.msra.mxu1 %v1704_v37  ;;  %v1734_v33 = vunpack.c.h.s8.bf16 %v684_v23  ;;  %v1738_v37 = vunpack.c.l.s8.bf16 %v688_v36 }
 0x2cb   : > { %2830 = vmatprep.subr.bf16.mxu0 %v1708_v38  ;;  %3486 = vmatprep.subr.bf16.mxu1 %v1710_v39  ;;  %v1740_v38 = vunpack.c.l.s8.bf16 %v690_v31  ;;  %v687_v39 = vld [vmem:[%s5512_s14 + $0xcd0] sm:$0xff] }
 0x2cc   : > { %v1737_v43 = vunpack.c.l.s8.bf16 %v687_v39  ;;  %v1742_v50 = vunpack.c.h.s8.bf16 %v687_v39 }
 0x2ce   : > { %2831 = vmatpush1.bf16.msra.mxu0 %v1707_v46  ;;  %3487 = vmatpush1.bf16.msra.mxu1 %v1709_v47  ;;  %v1743_v46 = vunpack.c.h.s8.bf16 %v688_v36  ;;  %v1745_v47 = vunpack.c.h.s8.bf16 %v690_v31 }
 0x2cf   : > { %2832 = vmatprep.subr.bf16.mxu0 %v1713_v48  ;;  %3488 = vmatprep.subr.bf16.mxu1 %v1715_v8  ;;  %v693_v48 = vld [vmem:[%s5512_s14 + $0xd00] sm:$0xff]  ;;  %v695_v8 = vld [vmem:[%s5512_s14 + $0xd10] sm:$0xff] }
 0x2d0   : > { %v1753_v62 = vunpack.c.h.s8.bf16 %v693_v48 }
 0x2d2   : > { %2833 = vmatpush1.bf16.msra.mxu0 %v1712_v55  ;;  %3489 = vmatpush1.bf16.msra.mxu1 %v1714_v56  ;;  %v1748_v55 = vunpack.c.l.s8.bf16 %v693_v48  ;;  %v1750_v56 = vunpack.c.l.s8.bf16 %v695_v8 }
 0x2d3   : > { %2843 = vmatprep.subr.bf16.mxu0 %v1718_v63  ;;  %3499 = vmatprep.subr.bf16.mxu1 %v1720_v57  ;;  %v692_v63 = vld [vmem:[%s5512_s14 + $0xcf8] sm:$0xff]  ;;  %v694_v57 = vld [vmem:[%s5512_s14 + $0xd08] sm:$0xff] }
 0x2d4   : > { %v1747_v59 = vunpack.c.l.s8.bf16 %v692_v63  ;;  %v1749_v60 = vunpack.c.l.s8.bf16 %v694_v57  ;;  %v1754_v7 = vunpack.c.h.s8.bf16 %v694_v57 }
 0x2d5   : > { %2835 = vmatmul.mubr.bf16.vlgmr.msra.gmra.mrb[0].mxu0 %v6019_v58  ;;  %3491 = vmatmul.mubr.bf16.vlgmr.msra.gmra.mrb[0].mxu1 %v6019_v58 }
 0x2d6   : > { %2844 = vmatpush1.bf16.msra.mxu0 %v1717_v0  ;;  %3500 = vmatpush1.bf16.msra.mxu1 %v1719_v2  ;;  %v1755_v0 = vunpack.c.h.s8.bf16 %v695_v8  ;;  %v698_v2 = vld [vmem:[%s5512_s14 + $0xd28] sm:$0xff] }
 0x2d7   : > { %2845 = vmatprep.subr.bf16.mxu0 %v1723_v3  ;;  %3501 = vmatprep.subr.bf16.mxu1 %v1725_v4  ;;  %v700_v3 = vld [vmem:[%s5512_s14 + $0xd38] sm:$0xff]  ;;  %v1752_v4 = vunpack.c.h.s8.bf16 %v692_v63  ;;  %v1758_v11 = vunpack.c.l.s8.bf16 %v698_v2  ;;  %v1763_v23 = vunpack.c.h.s8.bf16 %v698_v2 }
 0x2d8   : > { %2875 = vmatprep.mubr.bf16.mxu0 %v6024_v12  ;;  %3531 = vmatprep.mubr.bf16.mxu1 %v6024_v12 }
 0x2da   : > { %2846 = vmatpush1.bf16.msra.mxu0 %v1722_v1  ;;  %3502 = vmatpush1.bf16.msra.mxu1 %v1724_v15  ;;  %v1760_v1 = vunpack.c.l.s8.bf16 %v700_v3  ;;  %v697_v15 = vld [vmem:[%s5512_s14 + $0xd20] sm:$0xff] }
 0x2db   : > { %2847 = vmatprep.subr.bf16.mxu0 %v1728_v17  ;;  %3503 = vmatprep.subr.bf16.mxu1 %v1730_v19  ;;  %v699_v17 = vld [vmem:[%s5512_s14 + $0xd30] sm:$0xff]  ;;  %v1757_v19 = vunpack.c.l.s8.bf16 %v697_v15 }
 0x2dc   : > { %v1759_v41 = vunpack.c.l.s8.bf16 %v699_v17  ;;  %v1764_v36 = vunpack.c.h.s8.bf16 %v699_v17 }
 0x2de   : > { %2848 = vmatpush1.bf16.msra.mxu0 %v1727_v24  ;;  %3504 = vmatpush1.bf16.msra.mxu1 %v1729_v25  ;;  %v1765_v24 = vunpack.c.h.s8.bf16 %v700_v3  ;;  %v703_v25 = vld [vmem:[%s5512_s14 + $0xd50] sm:$0xff] }
 0x2df   : > { %2849 = vmatprep.subr.bf16.mxu0 %v1733_v27  ;;  %3505 = vmatprep.subr.bf16.mxu1 %v1735_v29  ;;  %v705_v27 = vld [vmem:[%s5512_s14 + $0xd60] sm:$0xff]  ;;  %v1762_v29 = vunpack.c.h.s8.bf16 %v697_v15  ;;  %v1768_v31 = vunpack.c.l.s8.bf16 %v703_v25  ;;  %v1773_v42 = vunpack.c.h.s8.bf16 %v703_v25 }
 0x2e2   : > { %2850 = vmatpush1.bf16.msra.mxu0 %v1732_v32  ;;  %3506 = vmatpush1.bf16.msra.mxu1 %v1734_v33  ;;  %v1770_v32 = vunpack.c.l.s8.bf16 %v705_v27  ;;  %v702_v33 = vld [vmem:[%s5512_s14 + $0xd48] sm:$0xff] }
 0x2e3   : > { %2851 = vmatprep.subr.bf16.mxu0 %v1738_v37  ;;  %3507 = vmatprep.subr.bf16.mxu1 %v1740_v38  ;;  %v704_v37 = vld [vmem:[%s5512_s14 + $0xd58] sm:$0xff]  ;;  %v1767_v38 = vunpack.c.l.s8.bf16 %v702_v33 }
 0x2e4   : > { %v1769_v39 = vunpack.c.l.s8.bf16 %v704_v37  ;;  %v1774_v48 = vunpack.c.h.s8.bf16 %v704_v37 }
 0x2e6   : > { %2852 = vmatpush1.bf16.msra.mxu0 %v1737_v43  ;;  %3508 = vmatpush1.bf16.msra.mxu1 %v1739_v45  ;;  %v1775_v43 = vunpack.c.h.s8.bf16 %v705_v27  ;;  %v708_v45 = vld [vmem:[%s5512_s14 + $0xd78] sm:$0xff] }
 0x2e7   : > { %2853 = vmatprep.subr.bf16.mxu0 %v1743_v46  ;;  %3509 = vmatprep.subr.bf16.mxu1 %v1745_v47  ;;  %v710_v46 = vld [vmem:[%s5512_s14 + $0xd88] sm:$0xff]  ;;  %v1772_v47 = vunpack.c.h.s8.bf16 %v702_v33  ;;  %v1778_v8 = vunpack.c.l.s8.bf16 %v708_v45  ;;  %v1783_v57 = vunpack.c.h.s8.bf16 %v708_v45  ;;  %v6068_v45 = vcombine.high %v6024_v12, %v6024_v12 }
 0x2ea   : > { %2854 = vmatpush1.bf16.msra.mxu0 %v1742_v50  ;;  %3510 = vmatpush1.bf16.msra.mxu1 %v1744_v52  ;;  %v1780_v50 = vunpack.c.l.s8.bf16 %v710_v46  ;;  %v707_v52 = vld [vmem:[%s5512_s14 + $0xd70] sm:$0xff] }
 0x2eb   : > { %2855 = vmatprep.subr.bf16.mxu0 %v1748_v55  ;;  %3511 = vmatprep.subr.bf16.mxu1 %v1750_v56  ;;  %v709_v55 = vld [vmem:[%s5512_s14 + $0xd80] sm:$0xff]  ;;  %v1777_v56 = vunpack.c.l.s8.bf16 %v707_v52 }
 0x2ec   : > { %v1779_v63 = vunpack.c.l.s8.bf16 %v709_v55  ;;  %v1784_v2 = vunpack.c.h.s8.bf16 %v709_v55 }
 0x2ee   : > { %2856 = vmatpush1.bf16.msra.mxu0 %v1747_v59  ;;  %3512 = vmatpush1.bf16.msra.mxu1 %v1749_v60  ;;  %v1785_v59 = vunpack.c.h.s8.bf16 %v710_v46  ;;  %v713_v60 = vld [vmem:[%s5512_s14 + $0xda0] sm:$0xff] }
 0x2ef   : > { %2857 = vmatprep.subr.bf16.mxu0 %v1753_v62  ;;  %3513 = vmatprep.subr.bf16.mxu1 %v1755_v0  ;;  %v715_v62 = vld [vmem:[%s5512_s14 + $0xdb0] sm:$0xff]  ;;  %v1782_v0 = vunpack.c.h.s8.bf16 %v707_v52  ;;  %v1788_v3 = vunpack.c.l.s8.bf16 %v713_v60  ;;  %v1793_v17 = vunpack.c.h.s8.bf16 %v713_v60 }
 0x2f2   : > { %2858 = vmatpush1.bf16.msra.mxu0 %v1752_v4  ;;  %3514 = vmatpush1.bf16.msra.mxu1 %v1754_v7  ;;  %v1790_v4 = vunpack.c.l.s8.bf16 %v715_v62  ;;  %v712_v7 = vld [vmem:[%s5512_s14 + $0xd98] sm:$0xff] }
 0x2f3   : > { %2859 = vmatprep.subr.bf16.mxu0 %v1758_v11  ;;  %3515 = vmatprep.subr.bf16.mxu1 %v1760_v1  ;;  %v714_v11 = vld [vmem:[%s5512_s14 + $0xda8] sm:$0xff]  ;;  %v1787_v1 = vunpack.c.l.s8.bf16 %v712_v7 }
 0x2f4   : > { %v1789_v15 = vunpack.c.l.s8.bf16 %v714_v11  ;;  %v1794_v25 = vunpack.c.h.s8.bf16 %v714_v11 }
 0x2f6   : > { %2860 = vmatpush1.bf16.msra.mxu0 %v1757_v19  ;;  %3516 = vmatpush1.bf16.msra.mxu1 %v1759_v41  ;;  %v1795_v19 = vunpack.c.h.s8.bf16 %v715_v62  ;;  %v718_v41 = vld [vmem:[%s5512_s14 + $0xdc8] sm:$0xff] }
 0x2f7   : > { %2861 = vmatprep.subr.bf16.mxu0 %v1763_v23  ;;  %3517 = vmatprep.subr.bf16.mxu1 %v1765_v24  ;;  %v720_v23 = vld [vmem:[%s5512_s14 + $0xdd8] sm:$0xff]  ;;  %v1792_v24 = vunpack.c.h.s8.bf16 %v712_v7  ;;  %v1798_v27 = vunpack.c.l.s8.bf16 %v718_v41 }
 0x2fa   : > { %2862 = vmatpush1.bf16.msra.mxu0 %v1762_v29  ;;  %3518 = vmatpush1.bf16.msra.mxu1 %v1764_v36  ;;  %v1800_v29 = vunpack.c.l.s8.bf16 %v720_v23  ;;  %v717_v36 = vld [vmem:[%s5512_s14 + $0xdc0] sm:$0xff] }
 0x2fb   : > { %2863 = vmatprep.subr.bf16.mxu0 %v1768_v31  ;;  %3519 = vmatprep.subr.bf16.mxu1 %v1770_v32  ;;  %v719_v31 = vld [vmem:[%s5512_s14 + $0xdd0] sm:$0xff]  ;;  %v6062_v32 = vrot.slane %v6011_v53, %v5540_v35  ;;  %v1797_v33 = vunpack.c.l.s8.bf16 %v717_v36  ;;  %v1802_v53 = vunpack.c.h.s8.bf16 %v717_v36 }
 0x2fc   : > { %v1799_v37 = vunpack.c.l.s8.bf16 %v719_v31  ;;  %v1804_v46 = vunpack.c.h.s8.bf16 %v719_v31 }
 0x2fe   : > { %2864 = vmatpush1.bf16.msra.mxu0 %v1767_v38  ;;  %3520 = vmatpush1.bf16.msra.mxu1 %v1769_v39  ;;  %v1803_v38 = vunpack.c.h.s8.bf16 %v718_v41  ;;  %v1805_v39 = vunpack.c.h.s8.bf16 %v720_v23 }
 0x2ff   : > { %2865 = vmatprep.subr.bf16.mxu0 %v1773_v42  ;;  %3521 = vmatprep.subr.bf16.mxu1 %v1775_v43  ;;  %v723_v42 = vld [vmem:[%s5512_s14 + $0xdf0] sm:$0xff]  ;;  %v725_v43 = vld [vmem:[%s5512_s14 + $0xe00] sm:$0xff] }
 0x302   : > { %2866 = vmatpush1.bf16.msra.mxu0 %v1772_v47  ;;  %3522 = vmatpush1.bf16.msra.mxu1 %v1774_v48  ;;  %v1808_v47 = vunpack.c.l.s8.bf16 %v723_v42  ;;  %v1810_v48 = vunpack.c.l.s8.bf16 %v725_v43 }
 0x303   : > { %2867 = vmatprep.subr.bf16.mxu0 %v1778_v8  ;;  %3523 = vmatprep.subr.bf16.mxu1 %v1780_v50  ;;  %v722_v8 = vld [vmem:[%s5512_s14 + $0xde8] sm:$0xff]  ;;  %v724_v50 = vld [vmem:[%s5512_s14 + $0xdf8] sm:$0xff] }
 0x304   : > { %v1807_v52 = vunpack.c.l.s8.bf16 %v722_v8  ;;  %v1809_v55 = vunpack.c.l.s8.bf16 %v724_v50  ;;  %v1812_v60 = vunpack.c.h.s8.bf16 %v722_v8  ;;  %v1814_v62 = vunpack.c.h.s8.bf16 %v724_v50 }
 0x306   : > { %2868 = vmatpush1.bf16.msra.mxu0 %v1777_v56  ;;  %3524 = vmatpush1.bf16.msra.mxu1 %v1779_v63  ;;  %v1813_v56 = vunpack.c.h.s8.bf16 %v723_v42  ;;  %v1815_v63 = vunpack.c.h.s8.bf16 %v725_v43 }
 0x307   : > { %2869 = vmatprep.subr.bf16.mxu0 %v1783_v57  ;;  %3525 = vmatprep.subr.bf16.mxu1 %v1785_v59  ;;  %v728_v57 = vld [vmem:[%s5512_s14 + $0xe18] sm:$0xff]  ;;  %v730_v59 = vld [vmem:[%s5512_s14 + $0xe28] sm:$0xff] }
 0x30a   : > { %2870 = vmatpush1.bf16.msra.mxu0 %v1782_v0  ;;  %3526 = vmatpush1.bf16.msra.mxu1 %v1784_v2  ;;  %v1818_v0 = vunpack.c.l.s8.bf16 %v728_v57  ;;  %v1820_v2 = vunpack.c.l.s8.bf16 %v730_v59 }
 0x30b   : > { %2871 = vmatprep.subr.bf16.mxu0 %v1788_v3  ;;  %3527 = vmatprep.subr.bf16.mxu1 %v1790_v4  ;;  %v727_v3 = vld [vmem:[%s5512_s14 + $0xe10] sm:$0xff]  ;;  %v729_v4 = vld [vmem:[%s5512_s14 + $0xe20] sm:$0xff] }
 0x30c   : > { %v1817_v7 = vunpack.c.l.s8.bf16 %v727_v3  ;;  %v1819_v11 = vunpack.c.l.s8.bf16 %v729_v4  ;;  %v1822_v41 = vunpack.c.h.s8.bf16 %v727_v3  ;;  %v1824_v23 = vunpack.c.h.s8.bf16 %v729_v4 }
 0x30e   : > { %2872 = vmatpush1.bf16.msra.mxu0 %v1787_v1  ;;  %3528 = vmatpush1.bf16.msra.mxu1 %v1789_v15  ;;  %v1823_v1 = vunpack.c.h.s8.bf16 %v728_v57  ;;  %v1825_v15 = vunpack.c.h.s8.bf16 %v730_v59 }
 0x30f   : > { %2873 = vmatprep.subr.bf16.mxu0 %v1793_v17  ;;  %3529 = vmatprep.subr.bf16.mxu1 %v1795_v19  ;;  %v733_v17 = vld [vmem:[%s5512_s14 + $0xe40] sm:$0xff]  ;;  %v735_v19 = vld [vmem:[%s5512_s14 + $0xe50] sm:$0xff] }
 0x312   : > { %2874 = vmatpush1.bf16.msra.mxu0 %v1792_v24  ;;  %3530 = vmatpush1.bf16.msra.mxu1 %v1794_v25  ;;  %v1828_v24 = vunpack.c.l.s8.bf16 %v733_v17  ;;  %v1830_v25 = vunpack.c.l.s8.bf16 %v735_v19 }
 0x313   : > { %2884 = vmatprep.subr.bf16.mxu0 %v1798_v27  ;;  %3540 = vmatprep.subr.bf16.mxu1 %v1800_v29  ;;  %v732_v27 = vld [vmem:[%s5512_s14 + $0xe38] sm:$0xff]  ;;  %v734_v29 = vld [vmem:[%s5512_s14 + $0xe48] sm:$0xff] }
 0x314   : > { %v1827_v36 = vunpack.c.l.s8.bf16 %v732_v27  ;;  %v1829_v31 = vunpack.c.l.s8.bf16 %v734_v29  ;;  %v1832_v42 = vunpack.c.h.s8.bf16 %v732_v27  ;;  %v1834_v43 = vunpack.c.h.s8.bf16 %v734_v29 }
 0x315   : > { %2876 = vmatmul.mubr.bf16.vlgmr.msra.gmra.mrb[0].mxu0 %v6062_v32  ;;  %3532 = vmatmul.mubr.bf16.vlgmr.msra.gmra.mrb[0].mxu1 %v6062_v32 }
 0x316   : > { %2885 = vmatpush1.bf16.msra.mxu0 %v1797_v33  ;;  %3541 = vmatpush1.bf16.msra.mxu1 %v1799_v37  ;;  %v1833_v33 = vunpack.c.h.s8.bf16 %v733_v17  ;;  %v1835_v37 = vunpack.c.h.s8.bf16 %v735_v19 }
 0x317   : > { %2886 = vmatprep.subr.bf16.mxu0 %v1803_v38  ;;  %3542 = vmatprep.subr.bf16.mxu1 %v1805_v39  ;;  %v738_v38 = vld [vmem:[%s5512_s14 + $0xe68] sm:$0xff]  ;;  %v740_v39 = vld [vmem:[%s5512_s14 + $0xe78] sm:$0xff] }
 0x318   : > { %2916 = vmatprep.mubr.bf16.mxu0 %v6068_v45  ;;  %3572 = vmatprep.mubr.bf16.mxu1 %v6068_v45 }
 0x31a   : > { %2887 = vmatpush1.bf16.msra.mxu0 %v1802_v53  ;;  %3543 = vmatpush1.bf16.msra.mxu1 %v1804_v46  ;;  %v1838_v53 = vunpack.c.l.s8.bf16 %v738_v38  ;;  %v1840_v46 = vunpack.c.l.s8.bf16 %v740_v39 }
 0x31b   : > { %2888 = vmatprep.subr.bf16.mxu0 %v1808_v47  ;;  %3544 = vmatprep.subr.bf16.mxu1 %v1810_v48  ;;  %v737_v47 = vld [vmem:[%s5512_s14 + $0xe60] sm:$0xff]  ;;  %v739_v48 = vld [vmem:[%s5512_s14 + $0xe70] sm:$0xff] }
 0x31c   : > { %v1837_v8 = vunpack.c.l.s8.bf16 %v737_v47  ;;  %v1839_v50 = vunpack.c.l.s8.bf16 %v739_v48  ;;  %v1842_v57 = vunpack.c.h.s8.bf16 %v737_v47  ;;  %v1844_v59 = vunpack.c.h.s8.bf16 %v739_v48  ;;  %v6103_v47 = vld [vmem:[%s6595_s0 + $0x18] sm:$0xff] }
 0x31e   : > { %2889 = vmatpush1.bf16.msra.mxu0 %v1807_v52  ;;  %3545 = vmatpush1.bf16.msra.mxu1 %v1809_v55  ;;  %v1843_v52 = vunpack.c.h.s8.bf16 %v738_v38  ;;  %v1845_v55 = vunpack.c.h.s8.bf16 %v740_v39 }
 0x31f   : > { %2890 = vmatprep.subr.bf16.mxu0 %v1813_v56  ;;  %3546 = vmatprep.subr.bf16.mxu1 %v1815_v63  ;;  %v743_v56 = vld [vmem:[%s5512_s14 + $0xe90] sm:$0xff]  ;;  %v745_v63 = vld [vmem:[%s5512_s14 + $0xea0] sm:$0xff] }
 0x322   : > { %2891 = vmatpush1.bf16.msra.mxu0 %v1812_v60  ;;  %3547 = vmatpush1.bf16.msra.mxu1 %v1814_v62  ;;  %v1848_v60 = vunpack.c.l.s8.bf16 %v743_v56  ;;  %v1850_v62 = vunpack.c.l.s8.bf16 %v745_v63 }
 0x323   : > { %2892 = vmatprep.subr.bf16.mxu0 %v1818_v0  ;;  %3548 = vmatprep.subr.bf16.mxu1 %v1820_v2  ;;  %v742_v0 = vld [vmem:[%s5512_s14 + $0xe88] sm:$0xff]  ;;  %v744_v2 = vld [vmem:[%s5512_s14 + $0xe98] sm:$0xff] }
 0x324   : > { %v1847_v3 = vunpack.c.l.s8.bf16 %v742_v0  ;;  %v1849_v4 = vunpack.c.l.s8.bf16 %v744_v2  ;;  %v1852_v17 = vunpack.c.h.s8.bf16 %v742_v0  ;;  %v1854_v19 = vunpack.c.h.s8.bf16 %v744_v2  ;;  %v757_v0 = vld [vmem:[%s5512_s14 + $0xf00] sm:$0xff]  ;;  %v759_v2 = vld [vmem:[%s5512_s14 + $0xf10] sm:$0xff] }
 0x326   : > { %2893 = vmatpush1.bf16.msra.mxu0 %v1817_v7  ;;  %3549 = vmatpush1.bf16.msra.mxu1 %v1819_v11  ;;  %v1853_v7 = vunpack.c.h.s8.bf16 %v743_v56  ;;  %v1855_v11 = vunpack.c.h.s8.bf16 %v745_v63  ;;  %v760_v56 = vld [vmem:[%s5512_s14 + $0xf18] sm:$0xff]  ;;  %v6109_v63 = vrot.slane %v6103_v47, %v5540_v35 }
 0x327   : > { %2894 = vmatprep.subr.bf16.mxu0 %v1823_v1  ;;  %3550 = vmatprep.subr.bf16.mxu1 %v1825_v15  ;;  %v748_v1 = vld [vmem:[%s5512_s14 + $0xeb8] sm:$0xff]  ;;  %v750_v15 = vld [vmem:[%s5512_s14 + $0xec8] sm:$0xff] }
 0x32a   : > { %2895 = vmatpush1.bf16.msra.mxu0 %v1822_v41  ;;  %3551 = vmatpush1.bf16.msra.mxu1 %v1824_v23  ;;  %v1858_v41 = vunpack.c.l.s8.bf16 %v748_v1  ;;  %v1860_v23 = vunpack.c.l.s8.bf16 %v750_v15 }
 0x32b   : > { %2896 = vmatprep.subr.bf16.mxu0 %v1828_v24  ;;  %3552 = vmatprep.subr.bf16.mxu1 %v1830_v25  ;;  %v747_v24 = vld [vmem:[%s5512_s14 + $0xeb0] sm:$0xff]  ;;  %v749_v25 = vld [vmem:[%s5512_s14 + $0xec0] sm:$0xff] }
 0x32c   : > { %v1857_v27 = vunpack.c.l.s8.bf16 %v747_v24  ;;  %v1859_v29 = vunpack.c.l.s8.bf16 %v749_v25  ;;  %v1862_v38 = vunpack.c.h.s8.bf16 %v747_v24  ;;  %v1864_v39 = vunpack.c.h.s8.bf16 %v749_v25 }
 0x32d   : > { %v1884_v24 = vunpack.c.h.s8.bf16 %v759_v2 }
 0x32e   : > { %2897 = vmatpush1.bf16.msra.mxu0 %v1827_v36  ;;  %3553 = vmatpush1.bf16.msra.mxu1 %v1829_v31  ;;  %v1863_v36 = vunpack.c.h.s8.bf16 %v748_v1  ;;  %v1865_v31 = vunpack.c.h.s8.bf16 %v750_v15  ;;  %v1885_v15 = vunpack.c.h.s8.bf16 %v760_v56 }
 0x32f   : > { %2898 = vmatprep.subr.bf16.mxu0 %v1833_v33  ;;  %3554 = vmatprep.subr.bf16.mxu1 %v1835_v37  ;;  %v753_v33 = vld [vmem:[%s5512_s14 + $0xee0] sm:$0xff]  ;;  %v755_v37 = vld [vmem:[%s5512_s14 + $0xef0] sm:$0xff] }
 0x332   : > { %2899 = vmatpush1.bf16.msra.mxu0 %v1832_v42  ;;  %3555 = vmatpush1.bf16.msra.mxu1 %v1834_v43  ;;  %v1868_v42 = vunpack.c.l.s8.bf16 %v753_v33  ;;  %v1870_v43 = vunpack.c.l.s8.bf16 %v755_v37 }
 0x333   : > { %2900 = vmatprep.subr.bf16.mxu0 %v1838_v53  ;;  %3556 = vmatprep.subr.bf16.mxu1 %v1840_v46  ;;  %v752_v53 = vld [vmem:[%s5512_s14 + $0xed8] sm:$0xff]  ;;  %v754_v46 = vld [vmem:[%s5512_s14 + $0xee8] sm:$0xff] }
 0x334   : > { %v1867_v48 = vunpack.c.l.s8.bf16 %v752_v53 }
 0x336   : > { %2901 = vmatpush1.bf16.msra.mxu0 %v1837_v8  ;;  %3557 = vmatpush1.bf16.msra.mxu1 %v1839_v50  ;;  %v1869_v8 = vunpack.c.l.s8.bf16 %v754_v46  ;;  %v1873_v50 = vunpack.c.h.s8.bf16 %v753_v33 }
 0x337   : > { %2902 = vmatprep.subr.bf16.mxu0 %v1843_v52  ;;  %3558 = vmatprep.subr.bf16.mxu1 %v1845_v55  ;;  %v1875_v52 = vunpack.c.h.s8.bf16 %v755_v37  ;;  %v758_v55 = vld [vmem:[%s5512_s14 + $0xf08] sm:$0xff] }
 0x338   : > { %v1883_v1 = vunpack.c.h.s8.bf16 %v758_v55 }
 0x33a   : > { %2903 = vmatpush1.bf16.msra.mxu0 %v1842_v57  ;;  %3559 = vmatpush1.bf16.msra.mxu1 %v1844_v59  ;;  %v1872_v57 = vunpack.c.h.s8.bf16 %v752_v53  ;;  %v1874_v59 = vunpack.c.h.s8.bf16 %v754_v46 }
 0x33b   : > { %2904 = vmatprep.subr.bf16.mxu0 %v1848_v60  ;;  %3560 = vmatprep.subr.bf16.mxu1 %v1850_v62  ;;  %v1878_v60 = vunpack.c.l.s8.bf16 %v758_v55  ;;  %v1880_v62 = vunpack.c.l.s8.bf16 %v760_v56 }
 0x33e   : > { %2905 = vmatpush1.bf16.msra.mxu0 %v1847_v3  ;;  %3561 = vmatpush1.bf16.msra.mxu1 %v1849_v4  ;;  %v2367_v3 = vcombine.high %v6109_v63, %v6109_v63  ;;  %v6117_v4 = vcombine.high %v6062_v32, %v6062_v32 }
 0x33f   : > { %2906 = vmatprep.subr.bf16.mxu0 %v1853_v7  ;;  %3562 = vmatprep.subr.bf16.mxu1 %v1855_v11  ;;  %v1877_v7 = vunpack.c.l.s8.bf16 %v757_v0  ;;  %v1879_v11 = vunpack.c.l.s8.bf16 %v759_v2 }
 0x342   : > { %2907 = vmatpush1.bf16.msra.mxu0 %v1852_v17  ;;  %3563 = vmatpush1.bf16.msra.mxu1 %v1854_v19  ;;  %v763_v17 = vld [vmem:[%s5512_s14 + $0xf30] sm:$0xff]  ;;  %v765_v19 = vld [vmem:[%s5512_s14 + $0xf40] sm:$0xff] }
 0x343   : > { %2908 = vmatprep.subr.bf16.mxu0 %v1858_v41  ;;  %3564 = vmatprep.subr.bf16.mxu1 %v1860_v23  ;;  %v6122_v41 = vrot.slane %v2367_v3, %v5540_v35  ;;  %v1882_v23 = vunpack.c.h.s8.bf16 %v757_v0  ;;  %v1888_v25 = vunpack.c.l.s8.bf16 %v763_v17  ;;  %v1893_v37 = vunpack.c.h.s8.bf16 %v763_v17 }
 0x346   : > { %2909 = vmatpush1.bf16.msra.mxu0 %v1857_v27  ;;  %3565 = vmatpush1.bf16.msra.mxu1 %v1859_v29  ;;  %v1890_v27 = vunpack.c.l.s8.bf16 %v765_v19  ;;  %v762_v29 = vld [vmem:[%s5512_s14 + $0xf28] sm:$0xff] }
 0x347   : > { %2910 = vmatprep.subr.bf16.mxu0 %v1863_v36  ;;  %3566 = vmatprep.subr.bf16.mxu1 %v1865_v31  ;;  %v764_v36 = vld [vmem:[%s5512_s14 + $0xf38] sm:$0xff]  ;;  %v1887_v31 = vunpack.c.l.s8.bf16 %v762_v29 }
 0x348   : > { %v1889_v33 = vunpack.c.l.s8.bf16 %v764_v36  ;;  %v1894_v53 = vunpack.c.h.s8.bf16 %v764_v36 }
 0x34a   : > { %2911 = vmatpush1.bf16.msra.mxu0 %v1862_v38  ;;  %3567 = vmatpush1.bf16.msra.mxu1 %v1864_v39  ;;  %v1895_v38 = vunpack.c.h.s8.bf16 %v765_v19  ;;  %v768_v39 = vld [vmem:[%s5512_s14 + $0xf58] sm:$0xff] }
 0x34b   : > { %2912 = vmatprep.subr.bf16.mxu0 %v1868_v42  ;;  %3568 = vmatprep.subr.bf16.mxu1 %v1870_v43  ;;  %v770_v42 = vld [vmem:[%s5512_s14 + $0xf68] sm:$0xff]  ;;  %v1892_v43 = vunpack.c.h.s8.bf16 %v762_v29  ;;  %v1898_v46 = vunpack.c.l.s8.bf16 %v768_v39  ;;  %v1903_v56 = vunpack.c.h.s8.bf16 %v768_v39 }
 0x34e   : > { %2913 = vmatpush1.bf16.msra.mxu0 %v1867_v48  ;;  %3569 = vmatpush1.bf16.msra.mxu1 %v1869_v8  ;;  %v1900_v48 = vunpack.c.l.s8.bf16 %v770_v42  ;;  %v767_v8 = vld [vmem:[%s5512_s14 + $0xf50] sm:$0xff] }
 0x34f   : > { %2914 = vmatprep.subr.bf16.mxu0 %v1873_v50  ;;  %3570 = vmatprep.subr.bf16.mxu1 %v1875_v52  ;;  %v769_v50 = vld [vmem:[%s5512_s14 + $0xf60] sm:$0xff]  ;;  %v1897_v52 = vunpack.c.l.s8.bf16 %v767_v8 }
 0x350   : > { %v1899_v55 = vunpack.c.l.s8.bf16 %v769_v50  ;;  %v1904_v0 = vunpack.c.h.s8.bf16 %v769_v50 }
 0x352   : > { %2915 = vmatpush1.bf16.msra.mxu0 %v1872_v57  ;;  %3571 = vmatpush1.bf16.msra.mxu1 %v1874_v59  ;;  %v1905_v57 = vunpack.c.h.s8.bf16 %v770_v42  ;;  %v773_v59 = vld [vmem:[%s5512_s14 + $0xf80] sm:$0xff] }
 0x353   : > { %2925 = vmatprep.subr.bf16.mxu0 %v1878_v60  ;;  %3581 = vmatprep.subr.bf16.mxu1 %v1880_v62  ;;  %v775_v60 = vld [vmem:[%s5512_s14 + $0xf90] sm:$0xff]  ;;  %v1902_v62 = vunpack.c.h.s8.bf16 %v767_v8  ;;  %v1908_v2 = vunpack.c.l.s8.bf16 %v773_v59  ;;  %v1913_v17 = vunpack.c.h.s8.bf16 %v773_v59 }
 0x354   : > { %v1910_v3 = vunpack.c.l.s8.bf16 %v775_v60  ;;  %v1915_v19 = vunpack.c.h.s8.bf16 %v775_v60 }
 0x355   : > { %2917 = vmatmul.mubr.bf16.vlgmr.msra.gmra.mrb[0].mxu0 %v6117_v4  ;;  %3573 = vmatmul.mubr.bf16.vlgmr.msra.gmra.mrb[0].mxu1 %v6117_v4 }
 0x356   : > { %2926 = vmatpush1.bf16.msra.mxu0 %v1877_v7  ;;  %3582 = vmatpush1.bf16.msra.mxu1 %v1879_v11  ;;  %v772_v7 = vld [vmem:[%s5512_s14 + $0xf78] sm:$0xff]  ;;  %v774_v11 = vld [vmem:[%s5512_s14 + $0xf88] sm:$0xff] }
 0x357   : > { %2927 = vmatprep.subr.bf16.mxu0 %v1883_v1  ;;  %3583 = vmatprep.subr.bf16.mxu1 %v1885_v15  ;;  %v1907_v1 = vunpack.c.l.s8.bf16 %v772_v7  ;;  %v1909_v15 = vunpack.c.l.s8.bf16 %v774_v11 }
 0x358   : > { %2957 = vmatprep.mubr.bf16.mxu0 %v6122_v41  ;;  %3613 = vmatprep.mubr.bf16.mxu1 %v6122_v41 }
 0x35a   : > { %2928 = vmatpush1.bf16.msra.mxu0 %v1882_v23  ;;  %3584 = vmatpush1.bf16.msra.mxu1 %v1884_v24  ;;  %v778_v23 = vld [vmem:[%s5512_s14 + $0xfa8] sm:$0xff]  ;;  %v780_v24 = vld [vmem:[%s5512_s14 + $0xfb8] sm:$0xff] }
 0x35b   : > { %2929 = vmatprep.subr.bf16.mxu0 %v1888_v25  ;;  %3585 = vmatprep.subr.bf16.mxu1 %v1890_v27  ;;  %v1912_v25 = vunpack.c.h.s8.bf16 %v772_v7  ;;  %v1914_v27 = vunpack.c.h.s8.bf16 %v774_v11  ;;  %v1918_v29 = vunpack.c.l.s8.bf16 %v778_v23  ;;  %v1920_v36 = vunpack.c.l.s8.bf16 %v780_v24 }
 0x35c   : > { %v1923_v39 = vunpack.c.h.s8.bf16 %v778_v23  ;;  %v1925_v42 = vunpack.c.h.s8.bf16 %v780_v24 }
 0x35e   : > { %2930 = vmatpush1.bf16.msra.mxu0 %v1887_v31  ;;  %3586 = vmatpush1.bf16.msra.mxu1 %v1889_v33  ;;  %v777_v31 = vld [vmem:[%s5512_s14 + $0xfa0] sm:$0xff]  ;;  %v779_v33 = vld [vmem:[%s5512_s14 + $0xfb0] sm:$0xff] }
 0x35f   : > { %2931 = vmatprep.subr.bf16.mxu0 %v1893_v37  ;;  %3587 = vmatprep.subr.bf16.mxu1 %v1895_v38  ;;  %v1917_v37 = vunpack.c.l.s8.bf16 %v777_v31  ;;  %v1919_v38 = vunpack.c.l.s8.bf16 %v779_v33 }
 0x362   : > { %2932 = vmatpush1.bf16.msra.mxu0 %v1892_v43  ;;  %3588 = vmatpush1.bf16.msra.mxu1 %v1894_v53  ;;  %v783_v43 = vld [vmem:[%s5512_s14 + $0xfd0] sm:$0xff]  ;;  %v785_v53 = vld [vmem:[%s5512_s14 + $0xfe0] sm:$0xff] }
 0x363   : > { %2933 = vmatprep.subr.bf16.mxu0 %v1898_v46  ;;  %3589 = vmatprep.subr.bf16.mxu1 %v1900_v48  ;;  %v1922_v46 = vunpack.c.h.s8.bf16 %v777_v31  ;;  %v1924_v48 = vunpack.c.h.s8.bf16 %v779_v33  ;;  %v1928_v8 = vunpack.c.l.s8.bf16 %v783_v43  ;;  %v1930_v50 = vunpack.c.l.s8.bf16 %v785_v53 }
 0x364   : > { %v1933_v59 = vunpack.c.h.s8.bf16 %v783_v43  ;;  %v1935_v60 = vunpack.c.h.s8.bf16 %v785_v53 }
 0x366   : > { %2934 = vmatpush1.bf16.msra.mxu0 %v1897_v52  ;;  %3590 = vmatpush1.bf16.msra.mxu1 %v1899_v55  ;;  %v782_v52 = vld [vmem:[%s5512_s14 + $0xfc8] sm:$0xff]  ;;  %v784_v55 = vld [vmem:[%s5512_s14 + $0xfd8] sm:$0xff] }
 0x367   : > { %2935 = vmatprep.subr.bf16.mxu0 %v1903_v56  ;;  %3591 = vmatprep.subr.bf16.mxu1 %v1905_v57  ;;  %v1927_v56 = vunpack.c.l.s8.bf16 %v782_v52  ;;  %v1929_v57 = vunpack.c.l.s8.bf16 %v784_v55 }
 0x36a   : > { %2936 = vmatpush1.bf16.msra.mxu0 %v1902_v62  ;;  %3592 = vmatpush1.bf16.msra.mxu1 %v1904_v0  ;;  %v788_v62 = vld [vmem:[%s5512_s14 + $0xff8] sm:$0xff]  ;;  %v790_v0 = vld [vmem:[%s5512_s14 + $0x1008] sm:$0xff] }
 0x36b   : > { %2937 = vmatprep.subr.bf16.mxu0 %v1908_v2  ;;  %3593 = vmatprep.subr.bf16.mxu1 %v1910_v3  ;;  %v1932_v2 = vunpack.c.h.s8.bf16 %v782_v52  ;;  %v1934_v3 = vunpack.c.h.s8.bf16 %v784_v55  ;;  %v1938_v7 = vunpack.c.l.s8.bf16 %v788_v62  ;;  %v1940_v11 = vunpack.c.l.s8.bf16 %v790_v0 }
 0x36c   : > { %v1943_v23 = vunpack.c.h.s8.bf16 %v788_v62  ;;  %v1945_v24 = vunpack.c.h.s8.bf16 %v790_v0 }
 0x36e   : > { %2938 = vmatpush1.bf16.msra.mxu0 %v1907_v1  ;;  %3594 = vmatpush1.bf16.msra.mxu1 %v1909_v15  ;;  %v787_v1 = vld [vmem:[%s5512_s14 + $0xff0] sm:$0xff]  ;;  %v789_v15 = vld [vmem:[%s5512_s14 + $0x1000] sm:$0xff] }
 0x36f   : > { %2939 = vmatprep.subr.bf16.mxu0 %v1913_v17  ;;  %3595 = vmatprep.subr.bf16.mxu1 %v1915_v19  ;;  %v1937_v17 = vunpack.c.l.s8.bf16 %v787_v1  ;;  %v1939_v19 = vunpack.c.l.s8.bf16 %v789_v15 }
 0x372   : > { %2940 = vmatpush1.bf16.msra.mxu0 %v1912_v25  ;;  %3596 = vmatpush1.bf16.msra.mxu1 %v1914_v27  ;;  %v793_v25 = vld [vmem:[%s5512_s14 + $0x1020] sm:$0xff]  ;;  %v795_v27 = vld [vmem:[%s5512_s14 + $0x1030] sm:$0xff] }
 0x373   : > { %2941 = vmatprep.subr.bf16.mxu0 %v1918_v29  ;;  %3597 = vmatprep.subr.bf16.mxu1 %v1920_v36  ;;  %v1942_v29 = vunpack.c.h.s8.bf16 %v787_v1  ;;  %v1944_v36 = vunpack.c.h.s8.bf16 %v789_v15  ;;  %v1948_v31 = vunpack.c.l.s8.bf16 %v793_v25  ;;  %v1950_v33 = vunpack.c.l.s8.bf16 %v795_v27 }
 0x374   : > { %v1953_v43 = vunpack.c.h.s8.bf16 %v793_v25  ;;  %v1955_v53 = vunpack.c.h.s8.bf16 %v795_v27 }
 0x376   : > { %2942 = vmatpush1.bf16.msra.mxu0 %v1917_v37  ;;  %3598 = vmatpush1.bf16.msra.mxu1 %v1919_v38  ;;  %v792_v37 = vld [vmem:[%s5512_s14 + $0x1018] sm:$0xff]  ;;  %v794_v38 = vld [vmem:[%s5512_s14 + $0x1028] sm:$0xff] }
 0x377   : > { %2943 = vmatprep.subr.bf16.mxu0 %v1923_v39  ;;  %3599 = vmatprep.subr.bf16.mxu1 %v1925_v42  ;;  %v1947_v39 = vunpack.c.l.s8.bf16 %v792_v37  ;;  %v1949_v42 = vunpack.c.l.s8.bf16 %v794_v38 }
 0x37a   : > { %2944 = vmatpush1.bf16.msra.mxu0 %v1922_v46  ;;  %3600 = vmatpush1.bf16.msra.mxu1 %v1924_v48  ;;  %v798_v46 = vld [vmem:[%s5512_s14 + $0x1048] sm:$0xff]  ;;  %v800_v48 = vld [vmem:[%s5512_s14 + $0x1058] sm:$0xff] }
 0x37b   : > { %2945 = vmatprep.subr.bf16.mxu0 %v1928_v8  ;;  %3601 = vmatprep.subr.bf16.mxu1 %v1930_v50  ;;  %v1952_v8 = vunpack.c.h.s8.bf16 %v792_v37  ;;  %v1954_v50 = vunpack.c.h.s8.bf16 %v794_v38  ;;  %v1958_v52 = vunpack.c.l.s8.bf16 %v798_v46  ;;  %v1960_v55 = vunpack.c.l.s8.bf16 %v800_v48 }
 0x37c   : > { %v1963_v0 = vunpack.c.h.s8.bf16 %v798_v46 }
 0x37e   : > { %2946 = vmatpush1.bf16.msra.mxu0 %v1927_v56  ;;  %3602 = vmatpush1.bf16.msra.mxu1 %v1929_v57  ;;  %v797_v56 = vld [vmem:[%s5512_s14 + $0x1040] sm:$0xff]  ;;  %v799_v57 = vld [vmem:[%s5512_s14 + $0x1050] sm:$0xff] }
 0x37f   : > { %2947 = vmatprep.subr.bf16.mxu0 %v1933_v59  ;;  %3603 = vmatprep.subr.bf16.mxu1 %v1935_v60  ;;  %v6160_v59 = vrot.slane %v6109_v63, %v5540_v35  ;;  %v1957_v60 = vunpack.c.l.s8.bf16 %v797_v56  ;;  %v1959_v62 = vunpack.c.l.s8.bf16 %v799_v57  ;;  %v1962_v63 = vunpack.c.h.s8.bf16 %v797_v56 }
 0x380   : > { %v1964_v1 = vunpack.c.h.s8.bf16 %v799_v57 }
 0x382   : > { %2948 = vmatpush1.bf16.msra.mxu0 %v1932_v2  ;;  %3604 = vmatpush1.bf16.msra.mxu1 %v1934_v3  ;;  %v1965_v2 = vunpack.c.h.s8.bf16 %v800_v48  ;;  %v803_v3 = vld [vmem:[%s5512_s14 + $0x1070] sm:$0xff] }
 0x383   : > { %2949 = vmatprep.subr.bf16.mxu0 %v1938_v7  ;;  %3605 = vmatprep.subr.bf16.mxu1 %v1940_v11  ;;  %v805_v7 = vld [vmem:[%s5512_s14 + $0x1080] sm:$0xff]  ;;  %v6166_v11 = vcombine.high %v6122_v41, %v6122_v41  ;;  %v1968_v15 = vunpack.c.l.s8.bf16 %v803_v3  ;;  %v1973_v27 = vunpack.c.h.s8.bf16 %v803_v3 }
 0x386   : > { %2950 = vmatpush1.bf16.msra.mxu0 %v1937_v17  ;;  %3606 = vmatpush1.bf16.msra.mxu1 %v1939_v19  ;;  %v1970_v17 = vunpack.c.l.s8.bf16 %v805_v7  ;;  %v802_v19 = vld [vmem:[%s5512_s14 + $0x1068] sm:$0xff] }
 0x387   : > { %2951 = vmatprep.subr.bf16.mxu0 %v1943_v23  ;;  %3607 = vmatprep.subr.bf16.mxu1 %v1945_v24  ;;  %v804_v23 = vld [vmem:[%s5512_s14 + $0x1078] sm:$0xff]  ;;  %v1967_v24 = vunpack.c.l.s8.bf16 %v802_v19 }
 0x388   : > { %v1969_v25 = vunpack.c.l.s8.bf16 %v804_v23  ;;  %v1974_v37 = vunpack.c.h.s8.bf16 %v804_v23 }
 0x38a   : > { %2952 = vmatpush1.bf16.msra.mxu0 %v1942_v29  ;;  %3608 = vmatpush1.bf16.msra.mxu1 %v1944_v36  ;;  %v1975_v29 = vunpack.c.h.s8.bf16 %v805_v7  ;;  %v808_v36 = vld [vmem:[%s5512_s14 + $0x1098] sm:$0xff] }
 0x38b   : > { %2953 = vmatprep.subr.bf16.mxu0 %v1948_v31  ;;  %3609 = vmatprep.subr.bf16.mxu1 %v1950_v33  ;;  %v810_v31 = vld [vmem:[%s5512_s14 + $0x10a8] sm:$0xff]  ;;  %v1972_v33 = vunpack.c.h.s8.bf16 %v802_v19  ;;  %v1978_v38 = vunpack.c.l.s8.bf16 %v808_v36  ;;  %v1983_v48 = vunpack.c.h.s8.bf16 %v808_v36 }
 0x38e   : > { %2954 = vmatpush1.bf16.msra.mxu0 %v1947_v39  ;;  %3610 = vmatpush1.bf16.msra.mxu1 %v1949_v42  ;;  %v1980_v39 = vunpack.c.l.s8.bf16 %v810_v31  ;;  %v807_v42 = vld [vmem:[%s5512_s14 + $0x1090] sm:$0xff] }
 0x38f   : > { %2955 = vmatprep.subr.bf16.mxu0 %v1953_v43  ;;  %3611 = vmatprep.subr.bf16.mxu1 %v1955_v53  ;;  %v809_v43 = vld [vmem:[%s5512_s14 + $0x10a0] sm:$0xff]  ;;  %v1977_v53 = vunpack.c.l.s8.bf16 %v807_v42 }
 0x390   : > { %v1979_v46 = vunpack.c.l.s8.bf16 %v809_v43  ;;  %v1984_v56 = vunpack.c.h.s8.bf16 %v809_v43 }
 0x392   : > { %2956 = vmatpush1.bf16.msra.mxu0 %v1952_v8  ;;  %3612 = vmatpush1.bf16.msra.mxu1 %v1954_v50  ;;  %v1985_v8 = vunpack.c.h.s8.bf16 %v810_v31  ;;  %v813_v50 = vld [vmem:[%s5512_s14 + $0x10c0] sm:$0xff] }
 0x393   : > { %2966 = vmatprep.subr.bf16.mxu0 %v1958_v52  ;;  %3622 = vmatprep.subr.bf16.mxu1 %v1960_v55  ;;  %v815_v52 = vld [vmem:[%s5512_s14 + $0x10d0] sm:$0xff]  ;;  %v1982_v55 = vunpack.c.h.s8.bf16 %v807_v42  ;;  %v1988_v57 = vunpack.c.l.s8.bf16 %v813_v50  ;;  %v1993_v7 = vunpack.c.h.s8.bf16 %v813_v50 }
 0x395   : > { %2958 = vmatmul.mubr.bf16.vlgmr.msra.gmra.mrb[0].mxu0 %v6160_v59  ;;  %3614 = vmatmul.mubr.bf16.vlgmr.msra.gmra.mrb[0].mxu1 %v6160_v59 }
 0x396   : > { %2967 = vmatpush1.bf16.msra.mxu0 %v1957_v60  ;;  %3623 = vmatpush1.bf16.msra.mxu1 %v1959_v62  ;;  %v1990_v60 = vunpack.c.l.s8.bf16 %v815_v52  ;;  %v812_v62 = vld [vmem:[%s5512_s14 + $0x10b8] sm:$0xff] }
 0x397   : > { %2968 = vmatprep.subr.bf16.mxu0 %v1963_v0  ;;  %3624 = vmatprep.subr.bf16.mxu1 %v1965_v2  ;;  %v814_v0 = vld [vmem:[%s5512_s14 + $0x10c8] sm:$0xff]  ;;  %v1987_v2 = vunpack.c.l.s8.bf16 %v812_v62 }
 0x398   : > { %2998 = vmatprep.mubr.bf16.mxu0 %v6166_v11  ;;  %3654 = vmatprep.mubr.bf16.mxu1 %v6166_v11  ;;  %v1989_v3 = vunpack.c.l.s8.bf16 %v814_v0  ;;  %v1994_v19 = vunpack.c.h.s8.bf16 %v814_v0 }
 0x39a   : > { %2969 = vmatpush1.bf16.msra.mxu0 %v1962_v63  ;;  %3625 = vmatpush1.bf16.msra.mxu1 %v1964_v1  ;;  %v1995_v63 = vunpack.c.h.s8.bf16 %v815_v52  ;;  %v818_v1 = vld [vmem:[%s5512_s14 + $0x10e8] sm:$0xff] }
 0x39b   : > { %2970 = vmatprep.subr.bf16.mxu0 %v1968_v15  ;;  %3626 = vmatprep.subr.bf16.mxu1 %v1970_v17  ;;  %v820_v15 = vld [vmem:[%s5512_s14 + $0x10f8] sm:$0xff]  ;;  %v1992_v17 = vunpack.c.h.s8.bf16 %v812_v62  ;;  %v1998_v23 = vunpack.c.l.s8.bf16 %v818_v1  ;;  %v2003_v31 = vunpack.c.h.s8.bf16 %v818_v1 }
 0x39e   : > { %2971 = vmatpush1.bf16.msra.mxu0 %v1967_v24  ;;  %3627 = vmatpush1.bf16.msra.mxu1 %v1969_v25  ;;  %v2000_v24 = vunpack.c.l.s8.bf16 %v820_v15  ;;  %v817_v25 = vld [vmem:[%s5512_s14 + $0x10e0] sm:$0xff] }
 0x39f   : > { %2972 = vmatprep.subr.bf16.mxu0 %v1973_v27  ;;  %3628 = vmatprep.subr.bf16.mxu1 %v1975_v29  ;;  %v819_v27 = vld [vmem:[%s5512_s14 + $0x10f0] sm:$0xff]  ;;  %v1997_v29 = vunpack.c.l.s8.bf16 %v817_v25 }
 0x3a0   : > { %v1999_v36 = vunpack.c.l.s8.bf16 %v819_v27  ;;  %v2004_v42 = vunpack.c.h.s8.bf16 %v819_v27 }
 0x3a2   : > { %2973 = vmatpush1.bf16.msra.mxu0 %v1972_v33  ;;  %3629 = vmatpush1.bf16.msra.mxu1 %v1974_v37  ;;  %v2005_v33 = vunpack.c.h.s8.bf16 %v820_v15  ;;  %v823_v37 = vld [vmem:[%s5512_s14 + $0x1110] sm:$0xff] }
 0x3a3   : > { %2974 = vmatprep.subr.bf16.mxu0 %v1978_v38  ;;  %3630 = vmatprep.subr.bf16.mxu1 %v1980_v39  ;;  %v825_v38 = vld [vmem:[%s5512_s14 + $0x1120] sm:$0xff]  ;;  %v2002_v39 = vunpack.c.h.s8.bf16 %v817_v25  ;;  %v2008_v43 = vunpack.c.l.s8.bf16 %v823_v37  ;;  %v2013_v52 = vunpack.c.h.s8.bf16 %v823_v37 }
 0x3a6   : > { %2975 = vmatpush1.bf16.msra.mxu0 %v1977_v53  ;;  %3631 = vmatpush1.bf16.msra.mxu1 %v1979_v46  ;;  %v2010_v53 = vunpack.c.l.s8.bf16 %v825_v38  ;;  %v822_v46 = vld [vmem:[%s5512_s14 + $0x1108] sm:$0xff] }
 0x3a7   : > { %2976 = vmatprep.subr.bf16.mxu0 %v1983_v48  ;;  %3632 = vmatprep.subr.bf16.mxu1 %v1985_v8  ;;  %v824_v48 = vld [vmem:[%s5512_s14 + $0x1118] sm:$0xff]  ;;  %v2007_v8 = vunpack.c.l.s8.bf16 %v822_v46 }
 0x3a8   : > { %v2009_v50 = vunpack.c.l.s8.bf16 %v824_v48  ;;  %v2014_v62 = vunpack.c.h.s8.bf16 %v824_v48 }
 0x3aa   : > { %2977 = vmatpush1.bf16.msra.mxu0 %v1982_v55  ;;  %3633 = vmatpush1.bf16.msra.mxu1 %v1984_v56  ;;  %v2015_v55 = vunpack.c.h.s8.bf16 %v825_v38  ;;  %v828_v56 = vld [vmem:[%s5512_s14 + $0x1138] sm:$0xff] }
 0x3ab   : > { %2978 = vmatprep.subr.bf16.mxu0 %v1988_v57  ;;  %3634 = vmatprep.subr.bf16.mxu1 %v1990_v60  ;;  %v830_v57 = vld [vmem:[%s5512_s14 + $0x1148] sm:$0xff]  ;;  %v2012_v60 = vunpack.c.h.s8.bf16 %v822_v46  ;;  %v2018_v0 = vunpack.c.l.s8.bf16 %v828_v56  ;;  %v2023_v15 = vunpack.c.h.s8.bf16 %v828_v56 }
 0x3ae   : > { %2979 = vmatpush1.bf16.msra.mxu0 %v1987_v2  ;;  %3635 = vmatpush1.bf16.msra.mxu1 %v1989_v3  ;;  %v2020_v2 = vunpack.c.l.s8.bf16 %v830_v57  ;;  %v827_v3 = vld [vmem:[%s5512_s14 + $0x1130] sm:$0xff] }
 0x3af   : > { %2980 = vmatprep.subr.bf16.mxu0 %v1993_v7  ;;  %3636 = vmatprep.subr.bf16.mxu1 %v1995_v63  ;;  %v829_v7 = vld [vmem:[%s5512_s14 + $0x1140] sm:$0xff]  ;;  %v2017_v63 = vunpack.c.l.s8.bf16 %v827_v3 }
 0x3b0   : > { %v2019_v1 = vunpack.c.l.s8.bf16 %v829_v7  ;;  %v2024_v25 = vunpack.c.h.s8.bf16 %v829_v7  ;;  %v845_v7 = vld [vmem:[%s5512_s14 + $0x11c0] sm:$0xff] }
 0x3b2   : > { %2981 = vmatpush1.bf16.msra.mxu0 %v1992_v17  ;;  %3637 = vmatpush1.bf16.msra.mxu1 %v1994_v19  ;;  %v2025_v17 = vunpack.c.h.s8.bf16 %v830_v57  ;;  %v833_v19 = vld [vmem:[%s5512_s14 + $0x1160] sm:$0xff]  ;;  %v6211_v57 = vcombine.high %v6160_v59, %v6160_v59 }
 0x3b3   : > { %2982 = vmatprep.subr.bf16.mxu0 %v1998_v23  ;;  %3638 = vmatprep.subr.bf16.mxu1 %v2000_v24  ;;  %v835_v23 = vld [vmem:[%s5512_s14 + $0x1170] sm:$0xff]  ;;  %v2022_v24 = vunpack.c.h.s8.bf16 %v827_v3  ;;  %v2028_v27 = vunpack.c.l.s8.bf16 %v833_v19 }
 0x3b4   : > { %v843_v3 = vld [vmem:[%s5512_s14 + $0x11b0] sm:$0xff] }
 0x3b6   : > { %2983 = vmatpush1.bf16.msra.mxu0 %v1997_v29  ;;  %3639 = vmatpush1.bf16.msra.mxu1 %v1999_v36  ;;  %v2030_v29 = vunpack.c.l.s8.bf16 %v835_v23  ;;  %v832_v36 = vld [vmem:[%s5512_s14 + $0x1158] sm:$0xff] }
 0x3b7   : > { %2984 = vmatprep.subr.bf16.mxu0 %v2003_v31  ;;  %3640 = vmatprep.subr.bf16.mxu1 %v2005_v33  ;;  %v834_v31 = vld [vmem:[%s5512_s14 + $0x1168] sm:$0xff]  ;;  %v2352_v33 = vcombine.high %v6103_v47, %v6103_v47  ;;  %v2027_v37 = vunpack.c.l.s8.bf16 %v832_v36  ;;  %v2032_v48 = vunpack.c.h.s8.bf16 %v832_v36  ;;  %v2055_v36 = vunpack.c.h.s8.bf16 %v845_v7 }
 0x3b8   : > { %v2029_v38 = vunpack.c.l.s8.bf16 %v834_v31 }
 0x3b9   : > { %v6203_v46 = vrot.slane %v2352_v33, %v5540_v35  ;;  %v850_v33 = vld [vmem:[%s5512_s14 + $0x11e8] sm:$0xff] }
 0x3ba   : > { %2985 = vmatpush1.bf16.msra.mxu0 %v2002_v39  ;;  %3641 = vmatpush1.bf16.msra.mxu1 %v2004_v42  ;;  %v2033_v39 = vunpack.c.h.s8.bf16 %v833_v19  ;;  %v2035_v42 = vunpack.c.h.s8.bf16 %v835_v23  ;;  %v2050_v19 = vunpack.c.l.s8.bf16 %v845_v7  ;;  %v842_v23 = vld [vmem:[%s5512_s14 + $0x11a8] sm:$0xff] }
 0x3bb   : > { %2986 = vmatprep.subr.bf16.mxu0 %v2008_v43  ;;  %3642 = vmatprep.subr.bf16.mxu1 %v2010_v53  ;;  %v838_v43 = vld [vmem:[%s5512_s14 + $0x1188] sm:$0xff]  ;;  %v840_v53 = vld [vmem:[%s5512_s14 + $0x1198] sm:$0xff]  ;;  %v2368_v56 = vcombine.high %v6203_v46, %v6203_v46 }
 0x3bc   : > { %v2038_v47 = vunpack.c.l.s8.bf16 %v838_v43 }
 0x3be   : > { %2987 = vmatpush1.bf16.msra.mxu0 %v2007_v8  ;;  %3643 = vmatpush1.bf16.msra.mxu1 %v2009_v50  ;;  %v2034_v8 = vunpack.c.h.s8.bf16 %v834_v31  ;;  %v2040_v50 = vunpack.c.l.s8.bf16 %v840_v53  ;;  %v848_v31 = vld [vmem:[%s5512_s14 + $0x11d8] sm:$0xff] }
 0x3bf   : > { %2988 = vmatprep.subr.bf16.mxu0 %v2013_v52  ;;  %3644 = vmatprep.subr.bf16.mxu1 %v2015_v55  ;;  %v837_v52 = vld [vmem:[%s5512_s14 + $0x1180] sm:$0xff]  ;;  %v839_v55 = vld [vmem:[%s5512_s14 + $0x1190] sm:$0xff] }
 0x3c2   : > { %2989 = vmatpush1.bf16.msra.mxu0 %v2012_v60  ;;  %3645 = vmatpush1.bf16.msra.mxu1 %v2014_v62  ;;  %v2037_v60 = vunpack.c.l.s8.bf16 %v837_v52  ;;  %v2039_v62 = vunpack.c.l.s8.bf16 %v839_v55 }
 0x3c3   : > { %2990 = vmatprep.subr.bf16.mxu0 %v2018_v0  ;;  %3646 = vmatprep.subr.bf16.mxu1 %v2020_v2  ;;  %v2043_v0 = vunpack.c.h.s8.bf16 %v838_v43  ;;  %v2045_v2 = vunpack.c.h.s8.bf16 %v840_v53  ;;  %v847_v43 = vld [vmem:[%s5512_s14 + $0x11d0] sm:$0xff]  ;;  %v849_v53 = vld [vmem:[%s5512_s14 + $0x11e0] sm:$0xff] }
 0x3c6   : > { %2991 = vmatpush1.bf16.msra.mxu0 %v2017_v63  ;;  %3647 = vmatpush1.bf16.msra.mxu1 %v2019_v1  ;;  %v6216_v63 = vrot.slane %v2368_v56, %v5540_v35  ;;  %v2042_v1 = vunpack.c.h.s8.bf16 %v837_v52  ;;  %v853_v52 = vld [vmem:[%s5512_s14 + $0x1200] sm:$0xff]  ;;  %v2062_v56 = vunpack.c.h.s8.bf16 %v847_v43 }
 0x3c7   : > { %2992 = vmatprep.subr.bf16.mxu0 %v2023_v15  ;;  %3648 = vmatprep.subr.bf16.mxu1 %v2025_v17  ;;  %v2044_v15 = vunpack.c.h.s8.bf16 %v839_v55  ;;  %v2048_v17 = vunpack.c.l.s8.bf16 %v843_v3  ;;  %v855_v55 = vld [vmem:[%s5512_s14 + $0x1210] sm:$0xff] }
 0x3ca   : > { %2993 = vmatpush1.bf16.msra.mxu0 %v2022_v24  ;;  %3649 = vmatpush1.bf16.msra.mxu1 %v2024_v25  ;;  %v844_v24 = vld [vmem:[%s5512_s14 + $0x11b8] sm:$0xff]  ;;  %v2047_v25 = vunpack.c.l.s8.bf16 %v842_v23 }
 0x3cb   : > { %2994 = vmatprep.subr.bf16.mxu0 %v2028_v27  ;;  %3650 = vmatprep.subr.bf16.mxu1 %v2030_v29  ;;  %v2049_v27 = vunpack.c.l.s8.bf16 %v844_v24  ;;  %v2053_v29 = vunpack.c.h.s8.bf16 %v843_v3  ;;  %v854_v3 = vld [vmem:[%s5512_s14 + $0x1208] sm:$0xff] }
 0x3ce   : > { %2995 = vmatpush1.bf16.msra.mxu0 %v2027_v37  ;;  %3651 = vmatpush1.bf16.msra.mxu1 %v2029_v38  ;;  %v2052_v37 = vunpack.c.h.s8.bf16 %v842_v23  ;;  %v2054_v38 = vunpack.c.h.s8.bf16 %v844_v24  ;;  %v860_v23 = vld [vmem:[%s5512_s14 + $0x1238] sm:$0xff] }
 0x3cf   : > { %2996 = vmatprep.subr.bf16.mxu0 %v2033_v39  ;;  %3652 = vmatprep.subr.bf16.mxu1 %v2035_v42  ;;  %v2058_v39 = vunpack.c.l.s8.bf16 %v848_v31  ;;  %v2060_v42 = vunpack.c.l.s8.bf16 %v850_v33 }
 0x3d2   : > { %2997 = vmatpush1.bf16.msra.mxu0 %v2032_v48  ;;  %3653 = vmatpush1.bf16.msra.mxu1 %v2034_v8  ;;  %v2057_v48 = vunpack.c.l.s8.bf16 %v847_v43  ;;  %v2059_v8 = vunpack.c.l.s8.bf16 %v849_v53  ;;  %v865_v43 = vld [vmem:[%s5512_s14 + $0x1260] sm:$0xff] }
 0x3d3   : > { %3007 = vmatprep.subr.bf16.mxu0 %v2038_v47  ;;  %3663 = vmatprep.subr.bf16.mxu1 %v2040_v50  ;;  %v2063_v47 = vunpack.c.h.s8.bf16 %v848_v31  ;;  %v2065_v50 = vunpack.c.h.s8.bf16 %v850_v33  ;;  %v859_v31 = vld [vmem:[%s5512_s14 + $0x1230] sm:$0xff] }
 0x3d5   : > { %2999 = vmatmul.mubr.bf16.vlgmr.msra.gmra.mrb[0].mxu0 %v6211_v57  ;;  %3655 = vmatmul.mubr.bf16.vlgmr.msra.gmra.mrb[0].mxu1 %v6211_v57 }
 0x3d6   : > { %3008 = vmatpush1.bf16.msra.mxu0 %v2037_v60  ;;  %3664 = vmatpush1.bf16.msra.mxu1 %v2039_v62  ;;  %v2064_v60 = vunpack.c.h.s8.bf16 %v849_v53  ;;  %v2068_v62 = vunpack.c.l.s8.bf16 %v853_v52 }
 0x3d7   : > { %3009 = vmatprep.subr.bf16.mxu0 %v2043_v0  ;;  %3665 = vmatprep.subr.bf16.mxu1 %v2045_v2  ;;  %v2070_v0 = vunpack.c.l.s8.bf16 %v855_v55  ;;  %v852_v2 = vld [vmem:[%s5512_s14 + $0x11f8] sm:$0xff] }
 0x3d8   : > { %3039 = vmatprep.mubr.bf16.mxu0 %v6216_v63  ;;  %3695 = vmatprep.mubr.bf16.mxu1 %v6216_v63  ;;  %v2067_v7 = vunpack.c.l.s8.bf16 %v852_v2  ;;  %v2072_v24 = vunpack.c.h.s8.bf16 %v852_v2  ;;  %v870_v2 = vld [vmem:[%s5512_s14 + $0x1288] sm:$0xff] }
 0x3da   : > { %3010 = vmatpush1.bf16.msra.mxu0 %v2042_v1  ;;  %3666 = vmatpush1.bf16.msra.mxu1 %v2044_v15  ;;  %v2069_v1 = vunpack.c.l.s8.bf16 %v854_v3  ;;  %v2073_v15 = vunpack.c.h.s8.bf16 %v853_v52  ;;  %v864_v52 = vld [vmem:[%s5512_s14 + $0x1258] sm:$0xff] }
 0x3db   : > { %3011 = vmatprep.subr.bf16.mxu0 %v2048_v17  ;;  %3667 = vmatprep.subr.bf16.mxu1 %v2050_v19  ;;  %v2075_v17 = vunpack.c.h.s8.bf16 %v855_v55  ;;  %v858_v19 = vld [vmem:[%s5512_s14 + $0x1228] sm:$0xff] }
 0x3de   : > { %3012 = vmatpush1.bf16.msra.mxu0 %v2047_v25  ;;  %3668 = vmatpush1.bf16.msra.mxu1 %v2049_v27  ;;  %v2074_v25 = vunpack.c.h.s8.bf16 %v854_v3  ;;  %v2078_v27 = vunpack.c.l.s8.bf16 %v858_v19 }
 0x3df   : > { %3013 = vmatprep.subr.bf16.mxu0 %v2053_v29  ;;  %3669 = vmatprep.subr.bf16.mxu1 %v2055_v36  ;;  %v2080_v29 = vunpack.c.l.s8.bf16 %v860_v23  ;;  %v857_v36 = vld [vmem:[%s5512_s14 + $0x1220] sm:$0xff] }
 0x3e0   : > { %v2077_v33 = vunpack.c.l.s8.bf16 %v857_v36  ;;  %v2082_v53 = vunpack.c.h.s8.bf16 %v857_v36  ;;  %v875_v36 = vld [vmem:[%s5512_s14 + $0x12b0] sm:$0xff] }
 0x3e2   : > { %3014 = vmatpush1.bf16.msra.mxu0 %v2052_v37  ;;  %3670 = vmatpush1.bf16.msra.mxu1 %v2054_v38  ;;  %v2079_v37 = vunpack.c.l.s8.bf16 %v859_v31  ;;  %v2083_v38 = vunpack.c.h.s8.bf16 %v858_v19  ;;  %v869_v19 = vld [vmem:[%s5512_s14 + $0x1280] sm:$0xff] }
 0x3e3   : > { %3015 = vmatprep.subr.bf16.mxu0 %v2058_v39  ;;  %3671 = vmatprep.subr.bf16.mxu1 %v2060_v42  ;;  %v2085_v39 = vunpack.c.h.s8.bf16 %v860_v23  ;;  %v863_v42 = vld [vmem:[%s5512_s14 + $0x1250] sm:$0xff] }
 0x3e6   : > { %3016 = vmatpush1.bf16.msra.mxu0 %v2057_v48  ;;  %3672 = vmatpush1.bf16.msra.mxu1 %v2059_v8  ;;  %v2084_v48 = vunpack.c.h.s8.bf16 %v859_v31  ;;  %v2088_v8 = vunpack.c.l.s8.bf16 %v863_v42 }
 0x3e7   : > { %3017 = vmatprep.subr.bf16.mxu0 %v2063_v47  ;;  %3673 = vmatprep.subr.bf16.mxu1 %v2065_v50  ;;  %v2090_v47 = vunpack.c.l.s8.bf16 %v865_v43  ;;  %v862_v50 = vld [vmem:[%s5512_s14 + $0x1248] sm:$0xff] }
 0x3e8   : > { %v2087_v55 = vunpack.c.l.s8.bf16 %v862_v50  ;;  %v2092_v3 = vunpack.c.h.s8.bf16 %v862_v50  ;;  %v880_v50 = vld [vmem:[%s5512_s14 + $0x12d8] sm:$0xff] }
 0x3ea   : > { %3018 = vmatpush1.bf16.msra.mxu0 %v2062_v56  ;;  %3674 = vmatpush1.bf16.msra.mxu1 %v2064_v60  ;;  %v2089_v56 = vunpack.c.l.s8.bf16 %v864_v52  ;;  %v2093_v60 = vunpack.c.h.s8.bf16 %v863_v42  ;;  %v874_v42 = vld [vmem:[%s5512_s14 + $0x12a8] sm:$0xff] }
 0x3eb   : > { %3019 = vmatprep.subr.bf16.mxu0 %v2068_v62  ;;  %3675 = vmatprep.subr.bf16.mxu1 %v2070_v0  ;;  %v2095_v62 = vunpack.c.h.s8.bf16 %v865_v43  ;;  %v868_v0 = vld [vmem:[%s5512_s14 + $0x1278] sm:$0xff] }
 0x3ee   : > { %3020 = vmatpush1.bf16.msra.mxu0 %v2067_v7  ;;  %3676 = vmatpush1.bf16.msra.mxu1 %v2069_v1  ;;  %v2094_v7 = vunpack.c.h.s8.bf16 %v864_v52  ;;  %v2098_v1 = vunpack.c.l.s8.bf16 %v868_v0 }
 0x3ef   : > { %3021 = vmatprep.subr.bf16.mxu0 %v2073_v15  ;;  %3677 = vmatprep.subr.bf16.mxu1 %v2075_v17  ;;  %v2100_v15 = vunpack.c.l.s8.bf16 %v870_v2  ;;  %v867_v17 = vld [vmem:[%s5512_s14 + $0x1270] sm:$0xff] }
 0x3f0   : > { %v2097_v23 = vunpack.c.l.s8.bf16 %v867_v17  ;;  %v2102_v31 = vunpack.c.h.s8.bf16 %v867_v17  ;;  %v883_v17 = vld [vmem:[%s5512_s14 + $0x12f0] sm:$0xff] }
 0x3f2   : > { %3022 = vmatpush1.bf16.msra.mxu0 %v2072_v24  ;;  %3678 = vmatpush1.bf16.msra.mxu1 %v2074_v25  ;;  %v2099_v24 = vunpack.c.l.s8.bf16 %v869_v19  ;;  %v2103_v25 = vunpack.c.h.s8.bf16 %v868_v0  ;;  %v879_v0 = vld [vmem:[%s5512_s14 + $0x12d0] sm:$0xff] }
 0x3f3   : > { %3023 = vmatprep.subr.bf16.mxu0 %v2078_v27  ;;  %3679 = vmatprep.subr.bf16.mxu1 %v2080_v29  ;;  %v2105_v27 = vunpack.c.h.s8.bf16 %v870_v2  ;;  %v873_v29 = vld [vmem:[%s5512_s14 + $0x12a0] sm:$0xff]  ;;  %v6254_v2 = vrot.slane %v6203_v46, %v5540_v35 }
 0x3f6   : > { %3024 = vmatpush1.bf16.msra.mxu0 %v2077_v33  ;;  %3680 = vmatpush1.bf16.msra.mxu1 %v2079_v37  ;;  %v2104_v33 = vunpack.c.h.s8.bf16 %v869_v19  ;;  %v2108_v37 = vunpack.c.l.s8.bf16 %v873_v29  ;;  %v885_v19 = vld [vmem:[%s5512_s14 + $0x1300] sm:$0xff] }
 0x3f7   : > { %3025 = vmatprep.subr.bf16.mxu0 %v2083_v38  ;;  %3681 = vmatprep.subr.bf16.mxu1 %v2085_v39  ;;  %v2110_v38 = vunpack.c.l.s8.bf16 %v875_v36  ;;  %v872_v39 = vld [vmem:[%s5512_s14 + $0x1298] sm:$0xff] }
 0x3f8   : > { %v2107_v43 = vunpack.c.l.s8.bf16 %v872_v39  ;;  %v2112_v52 = vunpack.c.h.s8.bf16 %v872_v39  ;;  %v888_v39 = vld [vmem:[%s5512_s14 + $0x1318] sm:$0xff] }
 0x3fa   : > { %3026 = vmatpush1.bf16.msra.mxu0 %v2082_v53  ;;  %3682 = vmatpush1.bf16.msra.mxu1 %v2084_v48  ;;  %v2109_v53 = vunpack.c.l.s8.bf16 %v874_v42  ;;  %v2113_v48 = vunpack.c.h.s8.bf16 %v873_v29  ;;  %v882_v29 = vld [vmem:[%s5512_s14 + $0x12e8] sm:$0xff] }
 0x3fb   : > { %3027 = vmatprep.subr.bf16.mxu0 %v2088_v8  ;;  %3683 = vmatprep.subr.bf16.mxu1 %v2090_v47  ;;  %v2115_v8 = vunpack.c.h.s8.bf16 %v875_v36  ;;  %v878_v47 = vld [vmem:[%s5512_s14 + $0x12c8] sm:$0xff]  ;;  %v884_v36 = vld [vmem:[%s5512_s14 + $0x12f8] sm:$0xff] }
 0x3fe   : > { %3028 = vmatpush1.bf16.msra.mxu0 %v2087_v55  ;;  %3684 = vmatpush1.bf16.msra.mxu1 %v2089_v56  ;;  %v2114_v55 = vunpack.c.h.s8.bf16 %v874_v42  ;;  %v2118_v56 = vunpack.c.l.s8.bf16 %v878_v47  ;;  %v890_v42 = vld [vmem:[%s5512_s14 + $0x1328] sm:$0xff] }
 0x3ff   : > { %3029 = vmatprep.subr.bf16.mxu0 %v2093_v60  ;;  %3685 = vmatprep.subr.bf16.mxu1 %v2095_v62  ;;  %v2120_v60 = vunpack.c.l.s8.bf16 %v880_v50  ;;  %v877_v62 = vld [vmem:[%s5512_s14 + $0x12c0] sm:$0xff] }
 0x400   : > { %v2122_v46 = vunpack.c.h.s8.bf16 %v877_v62 }
 0x402   : > { %3030 = vmatpush1.bf16.msra.mxu0 %v2092_v3  ;;  %3686 = vmatpush1.bf16.msra.mxu1 %v2094_v7  ;;  %v2117_v3 = vunpack.c.l.s8.bf16 %v877_v62  ;;  %v2119_v7 = vunpack.c.l.s8.bf16 %v879_v0  ;;  %v893_v62 = vld [vmem:[%s5512_s14 + $0x1340] sm:$0xff] }
 0x403   : > { %3031 = vmatprep.subr.bf16.mxu0 %v2098_v1  ;;  %3687 = vmatprep.subr.bf16.mxu1 %v2100_v15  ;;  %v2123_v1 = vunpack.c.h.s8.bf16 %v878_v47  ;;  %v2125_v15 = vunpack.c.h.s8.bf16 %v880_v50  ;;  %v887_v47 = vld [vmem:[%s5512_s14 + $0x1310] sm:$0xff]  ;;  %v889_v50 = vld [vmem:[%s5512_s14 + $0x1320] sm:$0xff] }
 0x406   : > { %3032 = vmatpush1.bf16.msra.mxu0 %v2097_v23  ;;  %3688 = vmatpush1.bf16.msra.mxu1 %v2099_v24  ;;  %v6260_v23 = vcombine.high %v6216_v63, %v6216_v63  ;;  %v2124_v24 = vunpack.c.h.s8.bf16 %v879_v0  ;;  %v895_v0 = vld [vmem:[%s5512_s14 + $0x1350] sm:$0xff] }
 0x407   : > { %3033 = vmatprep.subr.bf16.mxu0 %v2103_v25  ;;  %3689 = vmatprep.subr.bf16.mxu1 %v2105_v27  ;;  %v2128_v25 = vunpack.c.l.s8.bf16 %v883_v17  ;;  %v2130_v27 = vunpack.c.l.s8.bf16 %v885_v19 }
 0x40a   : > { %3034 = vmatpush1.bf16.msra.mxu0 %v2102_v31  ;;  %3690 = vmatpush1.bf16.msra.mxu1 %v2104_v33  ;;  %v2127_v31 = vunpack.c.l.s8.bf16 %v882_v29  ;;  %v2129_v33 = vunpack.c.l.s8.bf16 %v884_v36 }
 0x40b   : > { %3035 = vmatprep.subr.bf16.mxu0 %v2108_v37  ;;  %3691 = vmatprep.subr.bf16.mxu1 %v2110_v38  ;;  %v2133_v37 = vunpack.c.h.s8.bf16 %v883_v17  ;;  %v2135_v38 = vunpack.c.h.s8.bf16 %v885_v19  ;;  %v892_v17 = vld [vmem:[%s5512_s14 + $0x1338] sm:$0xff]  ;;  %v894_v19 = vld [vmem:[%s5512_s14 + $0x1348] sm:$0xff] }
 0x40e   : > { %3036 = vmatpush1.bf16.msra.mxu0 %v2107_v43  ;;  %3692 = vmatpush1.bf16.msra.mxu1 %v2109_v53  ;;  %v2132_v43 = vunpack.c.h.s8.bf16 %v882_v29  ;;  %v2134_v53 = vunpack.c.h.s8.bf16 %v884_v36  ;;  %v898_v29 = vld [vmem:[%s5512_s14 + $0x1368] sm:$0xff]  ;;  %v900_v36 = vld [vmem:[%s5512_s14 + $0x1378] sm:$0xff] }
 0x40f   : > { %3037 = vmatprep.subr.bf16.mxu0 %v2113_v48  ;;  %3693 = vmatprep.subr.bf16.mxu1 %v2115_v8  ;;  %v2138_v48 = vunpack.c.l.s8.bf16 %v888_v39  ;;  %v2140_v8 = vunpack.c.l.s8.bf16 %v890_v42 }
 0x412   : > { %3038 = vmatpush1.bf16.msra.mxu0 %v2112_v52  ;;  %3694 = vmatpush1.bf16.msra.mxu1 %v2114_v55  ;;  %v2137_v52 = vunpack.c.l.s8.bf16 %v887_v47  ;;  %v2139_v55 = vunpack.c.l.s8.bf16 %v889_v50 }
 0x413   : > { %3048 = vmatprep.subr.bf16.mxu0 %v2118_v56  ;;  %3704 = vmatprep.subr.bf16.mxu1 %v2120_v60  ;;  %v2143_v56 = vunpack.c.h.s8.bf16 %v888_v39  ;;  %v2145_v60 = vunpack.c.h.s8.bf16 %v890_v42  ;;  %v897_v39 = vld [vmem:[%s5512_s14 + $0x1360] sm:$0xff]  ;;  %v899_v42 = vld [vmem:[%s5512_s14 + $0x1370] sm:$0xff] }
 0x415   : > { %3040 = vmatmul.mubr.bf16.vlgmr.msra.gmra.mrb[0].mxu0 %v6254_v2  ;;  %3696 = vmatmul.mubr.bf16.vlgmr.msra.gmra.mrb[0].mxu1 %v6254_v2 }
 0x416   : > { %3049 = vmatpush1.bf16.msra.mxu0 %v2117_v3  ;;  %3705 = vmatpush1.bf16.msra.mxu1 %v2119_v7  ;;  %v2142_v3 = vunpack.c.h.s8.bf16 %v887_v47  ;;  %v2144_v7 = vunpack.c.h.s8.bf16 %v889_v50  ;;  %v903_v47 = vld [vmem:[%s5512_s14 + $0x1390] sm:$0xff]  ;;  %v905_v50 = vld [vmem:[%s5512_s14 + $0x13a0] sm:$0xff] }
 0x417   : > { %3050 = vmatprep.subr.bf16.mxu0 %v2123_v1  ;;  %3706 = vmatprep.subr.bf16.mxu1 %v2125_v15  ;;  %v2148_v1 = vunpack.c.l.s8.bf16 %v893_v62  ;;  %v2150_v15 = vunpack.c.l.s8.bf16 %v895_v0 }
 0x418   : > { %3080 = vmatprep.mubr.bf16.mxu0 %v6260_v23  ;;  %3736 = vmatprep.mubr.bf16.mxu1 %v6260_v23 }
 0x41a   : > { %3051 = vmatpush1.bf16.msra.mxu0 %v2122_v46  ;;  %3707 = vmatpush1.bf16.msra.mxu1 %v2124_v24  ;;  %v2147_v46 = vunpack.c.l.s8.bf16 %v892_v17  ;;  %v2149_v24 = vunpack.c.l.s8.bf16 %v894_v19 }
 0x41b   : > { %3052 = vmatprep.subr.bf16.mxu0 %v2128_v25  ;;  %3708 = vmatprep.subr.bf16.mxu1 %v2130_v27  ;;  %v2153_v25 = vunpack.c.h.s8.bf16 %v893_v62  ;;  %v2155_v27 = vunpack.c.h.s8.bf16 %v895_v0  ;;  %v902_v62 = vld [vmem:[%s5512_s14 + $0x1388] sm:$0xff]  ;;  %v904_v0 = vld [vmem:[%s5512_s14 + $0x1398] sm:$0xff] }
 0x41e   : > { %3053 = vmatpush1.bf16.msra.mxu0 %v2127_v31  ;;  %3709 = vmatpush1.bf16.msra.mxu1 %v2129_v33  ;;  %v2152_v31 = vunpack.c.h.s8.bf16 %v892_v17  ;;  %v2154_v33 = vunpack.c.h.s8.bf16 %v894_v19  ;;  %v908_v17 = vld [vmem:[%s5512_s14 + $0x13b8] sm:$0xff]  ;;  %v910_v19 = vld [vmem:[%s5512_s14 + $0x13c8] sm:$0xff] }
 0x41f   : > { %3054 = vmatprep.subr.bf16.mxu0 %v2133_v37  ;;  %3710 = vmatprep.subr.bf16.mxu1 %v2135_v38  ;;  %v2158_v37 = vunpack.c.l.s8.bf16 %v898_v29  ;;  %v2160_v38 = vunpack.c.l.s8.bf16 %v900_v36 }
 0x422   : > { %3055 = vmatpush1.bf16.msra.mxu0 %v2132_v43  ;;  %3711 = vmatpush1.bf16.msra.mxu1 %v2134_v53  ;;  %v2157_v43 = vunpack.c.l.s8.bf16 %v897_v39  ;;  %v2159_v53 = vunpack.c.l.s8.bf16 %v899_v42 }
 0x423   : > { %3056 = vmatprep.subr.bf16.mxu0 %v2138_v48  ;;  %3712 = vmatprep.subr.bf16.mxu1 %v2140_v8  ;;  %v2163_v48 = vunpack.c.h.s8.bf16 %v898_v29  ;;  %v2165_v8 = vunpack.c.h.s8.bf16 %v900_v36  ;;  %v907_v29 = vld [vmem:[%s5512_s14 + $0x13b0] sm:$0xff]  ;;  %v909_v36 = vld [vmem:[%s5512_s14 + $0x13c0] sm:$0xff] }
 0x426   : > { %3057 = vmatpush1.bf16.msra.mxu0 %v2137_v52  ;;  %3713 = vmatpush1.bf16.msra.mxu1 %v2139_v55  ;;  %v2162_v52 = vunpack.c.h.s8.bf16 %v897_v39  ;;  %v2164_v55 = vunpack.c.h.s8.bf16 %v899_v42  ;;  %v913_v39 = vld [vmem:[%s5512_s14 + $0x13e0] sm:$0xff]  ;;  %v915_v42 = vld [vmem:[%s5512_s14 + $0x13f0] sm:$0xff] }
 0x427   : > { %3058 = vmatprep.subr.bf16.mxu0 %v2143_v56  ;;  %3714 = vmatprep.subr.bf16.mxu1 %v2145_v60  ;;  %v2168_v56 = vunpack.c.l.s8.bf16 %v903_v47  ;;  %v2170_v60 = vunpack.c.l.s8.bf16 %v905_v50 }
 0x42a   : > { %3059 = vmatpush1.bf16.msra.mxu0 %v2142_v3  ;;  %3715 = vmatpush1.bf16.msra.mxu1 %v2144_v7  ;;  %v2167_v3 = vunpack.c.l.s8.bf16 %v902_v62  ;;  %v2169_v7 = vunpack.c.l.s8.bf16 %v904_v0 }
 0x42b   : > { %3060 = vmatprep.subr.bf16.mxu0 %v2148_v1  ;;  %3716 = vmatprep.subr.bf16.mxu1 %v2150_v15  ;;  %v2173_v1 = vunpack.c.h.s8.bf16 %v903_v47  ;;  %v2175_v15 = vunpack.c.h.s8.bf16 %v905_v50  ;;  %v912_v47 = vld [vmem:[%s5512_s14 + $0x13d8] sm:$0xff]  ;;  %v914_v50 = vld [vmem:[%s5512_s14 + $0x13e8] sm:$0xff] }
 0x42e   : > { %3061 = vmatpush1.bf16.msra.mxu0 %v2147_v46  ;;  %3717 = vmatpush1.bf16.msra.mxu1 %v2149_v24  ;;  %v2172_v46 = vunpack.c.h.s8.bf16 %v902_v62  ;;  %v2174_v24 = vunpack.c.h.s8.bf16 %v904_v0  ;;  %v301_v62 = vld [vmem:[%s5512_s14 + $0xc0] sm:$0xff] }
 0x42f   : > { %3062 = vmatprep.subr.bf16.mxu0 %v2153_v25  ;;  %3718 = vmatprep.subr.bf16.mxu1 %v2155_v27  ;;  %v2178_v25 = vunpack.c.l.s8.bf16 %v908_v17  ;;  %v2180_v27 = vunpack.c.l.s8.bf16 %v910_v19  ;;  %v341_v0 = vld [vmem:[%s5512_s14 + $0x200] sm:$0xff] }
 0x432   : > { %3063 = vmatpush1.bf16.msra.mxu0 %v2152_v31  ;;  %3719 = vmatpush1.bf16.msra.mxu1 %v2154_v33  ;;  %v2177_v31 = vunpack.c.l.s8.bf16 %v907_v29  ;;  %v2179_v33 = vunpack.c.l.s8.bf16 %v909_v36 }
 0x433   : > { %3064 = vmatprep.subr.bf16.mxu0 %v2158_v37  ;;  %3720 = vmatprep.subr.bf16.mxu1 %v2160_v38  ;;  %v2183_v37 = vunpack.c.h.s8.bf16 %v908_v17  ;;  %v2185_v38 = vunpack.c.h.s8.bf16 %v910_v19  ;;  %v281_v17 = vld [vmem:[%s5512_s14 + $0x20] sm:$0xff] }
 0x434   : > { %v321_v19 = vld [vmem:[%s5512_s14 + $0x160] sm:$0xff] }
 0x436   : > { %3065 = vmatpush1.bf16.msra.mxu0 %v2157_v43  ;;  %3721 = vmatpush1.bf16.msra.mxu1 %v2159_v53  ;;  %v2182_v43 = vunpack.c.h.s8.bf16 %v907_v29  ;;  %v2184_v53 = vunpack.c.h.s8.bf16 %v909_v36  ;;  %v1046_v29 = vunpack.c.h.s8.bf16 %v341_v0  ;;  %v306_v36 = vld [vmem:[%s5512_s14 + $0xe8] sm:$0xff] }
 0x437   : > { %3066 = vmatprep.subr.bf16.mxu0 %v2163_v48  ;;  %3722 = vmatprep.subr.bf16.mxu1 %v2165_v8  ;;  %v2188_v48 = vunpack.c.l.s8.bf16 %v913_v39  ;;  %v2190_v8 = vunpack.c.l.s8.bf16 %v915_v42 }
 0x43a   : > { %3067 = vmatpush1.bf16.msra.mxu0 %v2162_v52  ;;  %3723 = vmatpush1.bf16.msra.mxu1 %v2164_v55  ;;  %v2187_v52 = vunpack.c.l.s8.bf16 %v912_v47  ;;  %v2189_v55 = vunpack.c.l.s8.bf16 %v914_v50 }
 0x43b   : > { %3068 = vmatprep.subr.bf16.mxu0 %v2168_v56  ;;  %3724 = vmatprep.subr.bf16.mxu1 %v2170_v60  ;;  %v2193_v56 = vunpack.c.h.s8.bf16 %v913_v39  ;;  %v2195_v60 = vunpack.c.h.s8.bf16 %v915_v42  ;;  %v286_v42 = vld [vmem:[%s5512_s14 + $0x48] sm:$0xff] }
 0x43e   : > { %3069 = vmatpush1.bf16.msra.mxu0 %v2167_v3  ;;  %3725 = vmatpush1.bf16.msra.mxu1 %v2169_v7  ;;  %v2192_v3 = vunpack.c.h.s8.bf16 %v912_v47  ;;  %v2194_v7 = vunpack.c.h.s8.bf16 %v914_v50  ;;  %v311_v50 = vld [vmem:[%s5512_s14 + $0x110] sm:$0xff] }
 0x43f   : > { %3070 = vmatprep.subr.bf16.mxu0 %v2173_v1  ;;  %3726 = vmatprep.subr.bf16.mxu1 %v2175_v15  ;;  %v961_v1 = vunpack.c.l.s8.bf16 %v301_v62  ;;  %v1041_v15 = vunpack.c.l.s8.bf16 %v341_v0 }
 0x442   : > { %3071 = vmatpush1.bf16.msra.mxu0 %v2172_v46  ;;  %3727 = vmatpush1.bf16.msra.mxu1 %v2174_v24  ;;  %v6298_v46 = vcombine.high %v6254_v2, %v6254_v2  ;;  %v921_v24 = vunpack.c.l.s8.bf16 %v281_v17 }
 0x443   : > { %3072 = vmatprep.subr.bf16.mxu0 %v2178_v25  ;;  %3728 = vmatprep.subr.bf16.mxu1 %v2180_v27  ;;  %v1001_v25 = vunpack.c.l.s8.bf16 %v321_v19  ;;  %v966_v27 = vunpack.c.h.s8.bf16 %v301_v62  ;;  %v331_v62 = vld [vmem:[%s5512_s14 + $0x1b0] sm:$0xff] }
 0x446   : > { %3073 = vmatpush1.bf16.msra.mxu0 %v2177_v31  ;;  %3729 = vmatpush1.bf16.msra.mxu1 %v2179_v33  ;;  %v346_v31 = vld [vmem:[%s5512_s14 + $0x228] sm:$0xff]  ;;  %v926_v33 = vunpack.c.h.s8.bf16 %v281_v17  ;;  %v356_v17 = vld [vmem:[%s5512_s14 + $0x278] sm:$0xff] }
 0x447   : > { %3074 = vmatprep.subr.bf16.mxu0 %v2183_v37  ;;  %3730 = vmatprep.subr.bf16.mxu1 %v2185_v38  ;;  %v1006_v37 = vunpack.c.h.s8.bf16 %v321_v19  ;;  %v971_v38 = vunpack.c.l.s8.bf16 %v306_v36  ;;  %v1051_v39 = vunpack.c.l.s8.bf16 %v346_v31  ;;  %v1056_v47 = vunpack.c.h.s8.bf16 %v346_v31 }
 0x44a   : > { %3075 = vmatpush1.bf16.msra.mxu0 %v2182_v43  ;;  %3731 = vmatpush1.bf16.msra.mxu1 %v2184_v53  ;;  %v326_v43 = vld [vmem:[%s5512_s14 + $0x188] sm:$0xff]  ;;  %v931_v53 = vunpack.c.l.s8.bf16 %v286_v42 }
 0x44b   : > { %3076 = vmatprep.subr.bf16.mxu0 %v2188_v48  ;;  %3732 = vmatprep.subr.bf16.mxu1 %v2190_v8  ;;  %v1011_v48 = vunpack.c.l.s8.bf16 %v326_v43  ;;  %v976_v8 = vunpack.c.h.s8.bf16 %v306_v36  ;;  %v336_v36 = vld [vmem:[%s5512_s14 + $0x1d8] sm:$0xff] }
 0x44e   : > { %3077 = vmatpush1.bf16.msra.mxu0 %v2187_v52  ;;  %3733 = vmatpush1.bf16.msra.mxu1 %v2189_v55  ;;  %v351_v52 = vld [vmem:[%s5512_s14 + $0x250] sm:$0xff]  ;;  %v936_v55 = vunpack.c.h.s8.bf16 %v286_v42  ;;  %v421_v42 = vld [vmem:[%s5512_s14 + $0x480] sm:$0xff] }
 0x44f   : > { %3078 = vmatprep.subr.bf16.mxu0 %v2193_v56  ;;  %3734 = vmatprep.subr.bf16.mxu1 %v2195_v60  ;;  %v1016_v56 = vunpack.c.h.s8.bf16 %v326_v43  ;;  %v291_v60 = vld [vmem:[%s5512_s14 + $0x70] sm:$0xff] }
 0x450   : > { %v941_v0 = vunpack.c.l.s8.bf16 %v291_v60  ;;  %v946_v19 = vunpack.c.h.s8.bf16 %v291_v60  ;;  %v426_v60 = vld [vmem:[%s5512_s14 + $0x4a8] sm:$0xff] }
 0x452   : > { %3079 = vmatpush1.bf16.msra.mxu0 %v2192_v3  ;;  %3735 = vmatpush1.bf16.msra.mxu1 %v2194_v7  ;;  %v1021_v3 = vunpack.c.l.s8.bf16 %v331_v62  ;;  %v986_v7 = vunpack.c.h.s8.bf16 %v311_v50 }
 0x453   : > { %4699 = vmatprep.subr.bf16.mxu0 %v961_v1  ;;  %4721 = vmatprep.subr.bf16.mxu1 %v1041_v15  ;;  %v1066_v1 = vunpack.c.h.s8.bf16 %v351_v52  ;;  %v316_v15 = vld [vmem:[%s5512_s14 + $0x138] sm:$0xff] }
 0x455   : > { %3081 = vmatmul.mubr.bf16.vlgmr.msra.gmra.mrb[0].mxu0 %v6298_v46  ;;  %3737 = vmatmul.mubr.bf16.vlgmr.msra.gmra.mrb[0].mxu1 %v6298_v46 }
 0x456   : > { %4700 = vmatpush3.bf16.msra.mxu0 %v921_v24  ;;  %4722 = vmatpush3.bf16.msra.mxu1 %v1001_v25  ;;  %v1026_v24 = vunpack.c.h.s8.bf16 %v331_v62  ;;  %v991_v25 = vunpack.c.l.s8.bf16 %v316_v15 }
 0x457   : > { %4701 = vmatprep.subr.bf16.mxu0 %v966_v27  ;;  %4723 = vmatprep.subr.bf16.mxu1 %v1046_v29  ;;  %v1071_v27 = vunpack.c.l.s8.bf16 %v356_v17  ;;  %v296_v29 = vld [vmem:[%s5512_s14 + $0x98] sm:$0xff] }
 0x458   : > { %3777 = vmatprep.mubr.bf16.mxu0 %v5558_v51  ;;  %3817 = vmatprep.mubr.bf16.mxu1 %v5590_v61  ;;  %v981_v51 = vunpack.c.l.s8.bf16 %v311_v50  ;;  %v1061_v61 = vunpack.c.l.s8.bf16 %v351_v52  ;;  %v951_v31 = vunpack.c.l.s8.bf16 %v296_v29  ;;  %v956_v43 = vunpack.c.h.s8.bf16 %v296_v29  ;;  %v401_v50 = vld [vmem:[%s5512_s14 + $0x3e0] sm:$0xff] }
 0x45a   : > { %4702 = vmatpush3.bf16.msra.mxu0 %v926_v33  ;;  %4724 = vmatpush3.bf16.msra.mxu1 %v1006_v37  ;;  %v1031_v33 = vunpack.c.l.s8.bf16 %v336_v36  ;;  %v996_v37 = vunpack.c.h.s8.bf16 %v316_v15  ;;  %v406_v15 = vld [vmem:[%s5512_s14 + $0x408] sm:$0xff] }
 0x45b   : > { %4703 = vmatprep.subr.bf16.mxu0 %v971_v38  ;;  %4725 = vmatprep.subr.bf16.mxu1 %v1051_v39  ;;  %v1076_v38 = vunpack.c.h.s8.bf16 %v356_v17  ;;  %v381_v39 = vld [vmem:[%s5512_s14 + $0x340] sm:$0xff]  ;;  %v1176_v29 = vunpack.c.h.s8.bf16 %v406_v15 }
 0x45e   : > { %4704 = vmatpush3.bf16.msra.mxu0 %v931_v53  ;;  %4726 = vmatpush3.bf16.msra.mxu1 %v1011_v48  ;;  %v1036_v53 = vunpack.c.h.s8.bf16 %v336_v36  ;;  %v1121_v48 = vunpack.c.l.s8.bf16 %v381_v39  ;;  %v371_v36 = vld [vmem:[%s5512_s14 + $0x2f0] sm:$0xff] }
 0x45f   : > { %4705 = vmatprep.subr.bf16.mxu0 %v976_v8  ;;  %4727 = vmatprep.subr.bf16.mxu1 %v1056_v47  ;;  %v1201_v8 = vunpack.c.l.s8.bf16 %v421_v42  ;;  %v361_v47 = vld [vmem:[%s5512_s14 + $0x2a0] sm:$0xff] }
 0x460   : > { %v1081_v52 = vunpack.c.l.s8.bf16 %v361_v47  ;;  %v1086_v62 = vunpack.c.h.s8.bf16 %v361_v47 }
 0x462   : > { %4706 = vmatpush3.bf16.msra.mxu0 %v936_v55  ;;  %4728 = vmatpush3.bf16.msra.mxu1 %v1016_v56  ;;  %v1161_v55 = vunpack.c.l.s8.bf16 %v401_v50  ;;  %v1126_v56 = vunpack.c.h.s8.bf16 %v381_v39 }
 0x463   : > { %4707 = vmatprep.subr.bf16.mxu0 %v981_v51  ;;  %4729 = vmatprep.subr.bf16.mxu1 %v1061_v61  ;;  %v1206_v51 = vunpack.c.h.s8.bf16 %v421_v42  ;;  %v386_v61 = vld [vmem:[%s5512_s14 + $0x368] sm:$0xff]  ;;  %v396_v42 = vld [vmem:[%s5512_s14 + $0x3b8] sm:$0xff] }
 0x464   : > { %v1136_v17 = vunpack.c.h.s8.bf16 %v386_v61 }
 0x466   : > { %4708 = vmatpush3.bf16.msra.mxu0 %v941_v0  ;;  %4730 = vmatpush3.bf16.msra.mxu1 %v1021_v3  ;;  %v1166_v0 = vunpack.c.h.s8.bf16 %v401_v50  ;;  %v1131_v3 = vunpack.c.l.s8.bf16 %v386_v61  ;;  %v376_v50 = vld [vmem:[%s5512_s14 + $0x318] sm:$0xff] }
 0x467   : > { %4709 = vmatprep.subr.bf16.mxu0 %v986_v7  ;;  %4731 = vmatprep.subr.bf16.mxu1 %v1066_v1  ;;  %v1211_v7 = vunpack.c.l.s8.bf16 %v426_v60  ;;  %v366_v1 = vld [vmem:[%s5512_s14 + $0x2c8] sm:$0xff] }
 0x46a   : > { %4710 = vmatpush3.bf16.msra.mxu0 %v946_v19  ;;  %4732 = vmatpush3.bf16.msra.mxu1 %v1026_v24  ;;  %v1216_v19 = vunpack.c.h.s8.bf16 %v426_v60  ;;  %v391_v24 = vld [vmem:[%s5512_s14 + $0x390] sm:$0xff]  ;;  %v461_v60 = vld [vmem:[%s5512_s14 + $0x5c0] sm:$0xff] }
 0x46b   : > { %4711 = vmatprep.subr.bf16.mxu0 %v991_v25  ;;  %4733 = vmatprep.subr.bf16.mxu1 %v1071_v27  ;;  %v431_v25 = vld [vmem:[%s5512_s14 + $0x4d0] sm:$0xff]  ;;  %v1096_v27 = vunpack.c.h.s8.bf16 %v366_v1 }
 0x46c   : > { %v1226_v39 = vunpack.c.h.s8.bf16 %v431_v25 }
 0x46e   : > { %4712 = vmatpush3.bf16.msra.mxu0 %v951_v31  ;;  %4734 = vmatpush3.bf16.msra.mxu1 %v1031_v33  ;;  %v411_v31 = vld [vmem:[%s5512_s14 + $0x430] sm:$0xff]  ;;  %v1101_v33 = vunpack.c.l.s8.bf16 %v371_v36 }
 0x46f   : > { %4713 = vmatprep.subr.bf16.mxu0 %v996_v37  ;;  %4735 = vmatprep.subr.bf16.mxu1 %v1076_v38  ;;  %v1181_v37 = vunpack.c.l.s8.bf16 %v411_v31  ;;  %v1146_v38 = vunpack.c.h.s8.bf16 %v391_v24 }
 0x472   : > { %4714 = vmatpush3.bf16.msra.mxu0 %v956_v43  ;;  %4736 = vmatpush3.bf16.msra.mxu1 %v1036_v53  ;;  %v436_v43 = vld [vmem:[%s5512_s14 + $0x4f8] sm:$0xff]  ;;  %v1106_v53 = vunpack.c.h.s8.bf16 %v371_v36 }
 0x473   : > { %4743 = vmatprep.subr.bf16.mxu0 %v1121_v48  ;;  %4765 = vmatprep.subr.bf16.mxu1 %v1201_v8  ;;  %v1186_v48 = vunpack.c.h.s8.bf16 %v411_v31  ;;  %v1151_v8 = vunpack.c.l.s8.bf16 %v396_v42  ;;  %v1231_v47 = vunpack.c.l.s8.bf16 %v436_v43  ;;  %v1236_v61 = vunpack.c.h.s8.bf16 %v436_v43  ;;  %v446_v31 = vld [vmem:[%s5512_s14 + $0x548] sm:$0xff] }
 0x474   : > { %v1256_v43 = vunpack.c.h.s8.bf16 %v446_v31 }
 0x475   : > { %3778 = vmatmul.mubr.bf16.vlgmr.msra.gmra.mrb[4].mxu0 %v5584_v54  ;;  %3818 = vmatmul.mubr.bf16.vlgmr.msra.gmra.mrb[4].mxu1 %v5635_v34  ;;  %v1091_v54 = vunpack.c.l.s8.bf16 %v366_v1  ;;  %v1171_v34 = vunpack.c.l.s8.bf16 %v406_v15  ;;  %v441_v15 = vld [vmem:[%s5512_s14 + $0x520] sm:$0xff] }
 0x476   : > { %4744 = vmatpush3.bf16.msra.mxu0 %v1081_v52  ;;  %4766 = vmatpush3.bf16.msra.mxu1 %v1161_v55  ;;  %v416_v52 = vld [vmem:[%s5512_s14 + $0x458] sm:$0xff]  ;;  %v1111_v55 = vunpack.c.l.s8.bf16 %v376_v50 }
 0x477   : > { %4745 = vmatprep.subr.bf16.mxu0 %v1126_v56  ;;  %4767 = vmatprep.subr.bf16.mxu1 %v1206_v51  ;;  %v1191_v56 = vunpack.c.l.s8.bf16 %v416_v52  ;;  %v1156_v51 = vunpack.c.h.s8.bf16 %v396_v42  ;;  %v511_v42 = vld [vmem:[%s5512_s14 + $0x750] sm:$0xff] }
 0x478   : > { %3857 = vmatprep.mubr.bf16.mxu0 %v5640_v44  ;;  %3897 = vmatprep.mubr.bf16.mxu1 %v5684_v28  ;;  %v1141_v44 = vunpack.c.l.s8.bf16 %v391_v24  ;;  %v1221_v28 = vunpack.c.l.s8.bf16 %v431_v25  ;;  %v466_v25 = vld [vmem:[%s5512_s14 + $0x5e8] sm:$0xff] }
 0x47a   : > { %4746 = vmatpush3.bf16.msra.mxu0 %v1086_v62  ;;  %4768 = vmatpush3.bf16.msra.mxu1 %v1166_v0  ;;  %v501_v62 = vld [vmem:[%s5512_s14 + $0x700] sm:$0xff]  ;;  %v1116_v0 = vunpack.c.h.s8.bf16 %v376_v50 }
 0x47b   : > { %4747 = vmatprep.subr.bf16.mxu0 %v1131_v3  ;;  %4769 = vmatprep.subr.bf16.mxu1 %v1211_v7  ;;  %v1196_v3 = vunpack.c.h.s8.bf16 %v416_v52  ;;  %v1281_v7 = vunpack.c.l.s8.bf16 %v461_v60  ;;  %v1361_v1 = vunpack.c.l.s8.bf16 %v501_v62  ;;  %v1366_v24 = vunpack.c.h.s8.bf16 %v501_v62 }
 0x47e   : > { %4748 = vmatpush3.bf16.msra.mxu0 %v1091_v54  ;;  %4770 = vmatpush3.bf16.msra.mxu1 %v1171_v34  ;;  %v481_v54 = vld [vmem:[%s5512_s14 + $0x660] sm:$0xff]  ;;  %v1241_v34 = vunpack.c.l.s8.bf16 %v441_v15 }
 0x47f   : > { %4749 = vmatprep.subr.bf16.mxu0 %v1136_v17  ;;  %4771 = vmatprep.subr.bf16.mxu1 %v1216_v19  ;;  %v1321_v17 = vunpack.c.l.s8.bf16 %v481_v54  ;;  %v1286_v19 = vunpack.c.h.s8.bf16 %v461_v60 }
 0x482   : > { %4750 = vmatpush3.bf16.msra.mxu0 %v1096_v27  ;;  %4772 = vmatpush3.bf16.msra.mxu1 %v1176_v29  ;;  %v506_v27 = vld [vmem:[%s5512_s14 + $0x728] sm:$0xff]  ;;  %v1246_v29 = vunpack.c.h.s8.bf16 %v441_v15 }
 0x483   : > { %4751 = vmatprep.subr.bf16.mxu0 %v1141_v44  ;;  %4773 = vmatprep.subr.bf16.mxu1 %v1221_v28  ;;  %v1326_v44 = vunpack.c.h.s8.bf16 %v481_v54  ;;  %v1291_v28 = vunpack.c.l.s8.bf16 %v466_v25  ;;  %v1371_v36 = vunpack.c.l.s8.bf16 %v506_v27 }
 0x486   : > { %4752 = vmatpush3.bf16.msra.mxu0 %v1101_v33  ;;  %4774 = vmatpush3.bf16.msra.mxu1 %v1181_v37  ;;  %v486_v33 = vld [vmem:[%s5512_s14 + $0x688] sm:$0xff]  ;;  %v1296_v37 = vunpack.c.h.s8.bf16 %v466_v25 }
 0x487   : > { %4753 = vmatprep.subr.bf16.mxu0 %v1146_v38  ;;  %4775 = vmatprep.subr.bf16.mxu1 %v1226_v39  ;;  %v1376_v38 = vunpack.c.h.s8.bf16 %v506_v27  ;;  %v471_v39 = vld [vmem:[%s5512_s14 + $0x610] sm:$0xff] }
 0x488   : > { %v1306_v52 = vunpack.c.h.s8.bf16 %v471_v39 }
 0x48a   : > { %4754 = vmatpush3.bf16.msra.mxu0 %v1106_v53  ;;  %4776 = vmatpush3.bf16.msra.mxu1 %v1186_v48  ;;  %v1336_v53 = vunpack.c.h.s8.bf16 %v486_v33  ;;  %v451_v48 = vld [vmem:[%s5512_s14 + $0x570] sm:$0xff] }
 0x48b   : > { %4755 = vmatprep.subr.bf16.mxu0 %v1151_v8  ;;  %4777 = vmatprep.subr.bf16.mxu1 %v1231_v47  ;;  %v491_v8 = vld [vmem:[%s5512_s14 + $0x6b0] sm:$0xff]  ;;  %v1261_v47 = vunpack.c.l.s8.bf16 %v451_v48 }
 0x48c   : > { %v1341_v50 = vunpack.c.l.s8.bf16 %v491_v8  ;;  %v1346_v60 = vunpack.c.h.s8.bf16 %v491_v8  ;;  %v551_v8 = vld [vmem:[%s5512_s14 + $0x890] sm:$0xff] }
 0x48e   : > { %4756 = vmatpush3.bf16.msra.mxu0 %v1111_v55  ;;  %4778 = vmatpush3.bf16.msra.mxu1 %v1191_v56  ;;  %v1386_v55 = vunpack.c.h.s8.bf16 %v511_v42  ;;  %v476_v56 = vld [vmem:[%s5512_s14 + $0x638] sm:$0xff] }
 0x48f   : > { %4757 = vmatprep.subr.bf16.mxu0 %v1156_v51  ;;  %4779 = vmatprep.subr.bf16.mxu1 %v1236_v61  ;;  %v516_v51 = vld [vmem:[%s5512_s14 + $0x778] sm:$0xff]  ;;  %v1266_v61 = vunpack.c.h.s8.bf16 %v451_v48  ;;  %v1311_v62 = vunpack.c.l.s8.bf16 %v476_v56  ;;  %v1316_v54 = vunpack.c.h.s8.bf16 %v476_v56  ;;  %v571_v56 = vld [vmem:[%s5512_s14 + $0x930] sm:$0xff] }
 0x492   : > { %4758 = vmatpush3.bf16.msra.mxu0 %v1116_v0  ;;  %4780 = vmatpush3.bf16.msra.mxu1 %v1196_v3  ;;  %v1391_v0 = vunpack.c.l.s8.bf16 %v516_v51  ;;  %v456_v3 = vld [vmem:[%s5512_s14 + $0x598] sm:$0xff] }
 0x493   : > { %4787 = vmatprep.subr.bf16.mxu0 %v1281_v7  ;;  %4809 = vmatprep.subr.bf16.mxu1 %v1361_v1  ;;  %v496_v7 = vld [vmem:[%s5512_s14 + $0x6d8] sm:$0xff]  ;;  %v1271_v1 = vunpack.c.l.s8.bf16 %v456_v3 }
 0x494   : > { %v1351_v15 = vunpack.c.l.s8.bf16 %v496_v7  ;;  %v1356_v25 = vunpack.c.h.s8.bf16 %v496_v7 }
 0x495   : > { %3858 = vmatmul.mubr.bf16.vlgmr.msra.gmra.mrb[8].mxu0 %v5678_v18  ;;  %3898 = vmatmul.mubr.bf16.vlgmr.msra.gmra.mrb[8].mxu1 %v5733_v9  ;;  %v1251_v18 = vunpack.c.l.s8.bf16 %v446_v31  ;;  %v1331_v9 = vunpack.c.l.s8.bf16 %v486_v33 }
 0x496   : > { %4788 = vmatpush3.bf16.msra.mxu0 %v1241_v34  ;;  %4810 = vmatpush3.bf16.msra.mxu1 %v1321_v17  ;;  %v1396_v34 = vunpack.c.h.s8.bf16 %v516_v51  ;;  %v541_v17 = vld [vmem:[%s5512_s14 + $0x840] sm:$0xff] }
 0x497   : > { %4789 = vmatprep.subr.bf16.mxu0 %v1286_v19  ;;  %4811 = vmatprep.subr.bf16.mxu1 %v1366_v24  ;;  %v581_v19 = vld [vmem:[%s5512_s14 + $0x980] sm:$0xff]  ;;  %v1276_v24 = vunpack.c.h.s8.bf16 %v456_v3  ;;  %v1441_v27 = vunpack.c.l.s8.bf16 %v541_v17  ;;  %v1446_v33 = vunpack.c.h.s8.bf16 %v541_v17  ;;  %v596_v3 = vld [vmem:[%s5512_s14 + $0x9f8] sm:$0xff] }
 0x498   : > { %3937 = vmatprep.mubr.bf16.mxu0 %v5738_v16  ;;  %3977 = vmatprep.mubr.bf16.mxu1 %v5782_v13  ;;  %v1301_v16 = vunpack.c.l.s8.bf16 %v471_v39  ;;  %v1381_v13 = vunpack.c.l.s8.bf16 %v511_v42  ;;  %v576_v17 = vld [vmem:[%s5512_s14 + $0x958] sm:$0xff] }
 0x49a   : > { %4790 = vmatpush3.bf16.msra.mxu0 %v1246_v29  ;;  %4812 = vmatpush3.bf16.msra.mxu1 %v1326_v44  ;;  %v1521_v29 = vunpack.c.l.s8.bf16 %v581_v19  ;;  %v521_v44 = vld [vmem:[%s5512_s14 + $0x7a0] sm:$0xff] }
 0x49b   : > { %4791 = vmatprep.subr.bf16.mxu0 %v1291_v28  ;;  %4813 = vmatprep.subr.bf16.mxu1 %v1371_v36  ;;  %v561_v28 = vld [vmem:[%s5512_s14 + $0x8e0] sm:$0xff]  ;;  %v1401_v36 = vunpack.c.l.s8.bf16 %v521_v44 }
 0x49c   : > { %v1481_v31 = vunpack.c.l.s8.bf16 %v561_v28  ;;  %v1486_v39 = vunpack.c.h.s8.bf16 %v561_v28 }
 0x49e   : > { %4792 = vmatpush3.bf16.msra.mxu0 %v1251_v18  ;;  %4814 = vmatpush3.bf16.msra.mxu1 %v1331_v9  ;;  %v1526_v18 = vunpack.c.h.s8.bf16 %v581_v19  ;;  %v546_v9 = vld [vmem:[%s5512_s14 + $0x868] sm:$0xff] }
 0x49f   : > { %4793 = vmatprep.subr.bf16.mxu0 %v1296_v37  ;;  %4815 = vmatprep.subr.bf16.mxu1 %v1376_v38  ;;  %v586_v37 = vld [vmem:[%s5512_s14 + $0x9a8] sm:$0xff]  ;;  %v1406_v38 = vunpack.c.h.s8.bf16 %v521_v44  ;;  %v1451_v42 = vunpack.c.l.s8.bf16 %v546_v9  ;;  %v661_v44 = vld [vmem:[%s5512_s14 + $0xc00] sm:$0xff] }
 0x4a0   : > { %v1536_v48 = vunpack.c.h.s8.bf16 %v586_v37 }
 0x4a2   : > { %4794 = vmatpush3.bf16.msra.mxu0 %v1256_v43  ;;  %4816 = vmatpush3.bf16.msra.mxu1 %v1336_v53  ;;  %v1531_v43 = vunpack.c.l.s8.bf16 %v586_v37  ;;  %v526_v53 = vld [vmem:[%s5512_s14 + $0x7c8] sm:$0xff] }
 0x4a3   : > { %4795 = vmatprep.subr.bf16.mxu0 %v1301_v16  ;;  %4817 = vmatprep.subr.bf16.mxu1 %v1381_v13  ;;  %v566_v16 = vld [vmem:[%s5512_s14 + $0x908] sm:$0xff]  ;;  %v1456_v13 = vunpack.c.h.s8.bf16 %v546_v9  ;;  %v641_v9 = vld [vmem:[%s5512_s14 + $0xb60] sm:$0xff] }
 0x4a6   : > { %4796 = vmatpush3.bf16.msra.mxu0 %v1261_v47  ;;  %4818 = vmatpush3.bf16.msra.mxu1 %v1341_v50  ;;  %v591_v47 = vld [vmem:[%s5512_s14 + $0x9d0] sm:$0xff]  ;;  %v1416_v50 = vunpack.c.h.s8.bf16 %v526_v53 }
 0x4a7   : > { %4797 = vmatprep.subr.bf16.mxu0 %v1306_v52  ;;  %4819 = vmatprep.subr.bf16.mxu1 %v1386_v55  ;;  %v1496_v52 = vunpack.c.h.s8.bf16 %v566_v16  ;;  %v531_v55 = vld [vmem:[%s5512_s14 + $0x7f0] sm:$0xff] }
 0x4a8   : > { %v1421_v51 = vunpack.c.l.s8.bf16 %v531_v55  ;;  %v1426_v7 = vunpack.c.h.s8.bf16 %v531_v55 }
 0x4aa   : > { %4798 = vmatpush3.bf16.msra.mxu0 %v1266_v61  ;;  %4820 = vmatpush3.bf16.msra.mxu1 %v1346_v60  ;;  %v1501_v61 = vunpack.c.l.s8.bf16 %v571_v56  ;;  %v1466_v60 = vunpack.c.h.s8.bf16 %v551_v8 }
 0x4ab   : > { %4799 = vmatprep.subr.bf16.mxu0 %v1311_v62  ;;  %4821 = vmatprep.subr.bf16.mxu1 %v1391_v0  ;;  %v1546_v62 = vunpack.c.h.s8.bf16 %v591_v47  ;;  %v556_v0 = vld [vmem:[%s5512_s14 + $0x8b8] sm:$0xff] }
 0x4ae   : > { %4800 = vmatpush3.bf16.msra.mxu0 %v1271_v1  ;;  %4822 = vmatpush3.bf16.msra.mxu1 %v1351_v15  ;;  %v1506_v1 = vunpack.c.h.s8.bf16 %v571_v56  ;;  %v1471_v15 = vunpack.c.l.s8.bf16 %v556_v0  ;;  %v611_v56 = vld [vmem:[%s5512_s14 + $0xa70] sm:$0xff] }
 0x4af   : > { %4801 = vmatprep.subr.bf16.mxu0 %v1316_v54  ;;  %4823 = vmatprep.subr.bf16.mxu1 %v1396_v34  ;;  %v1551_v54 = vunpack.c.l.s8.bf16 %v596_v3  ;;  %v536_v34 = vld [vmem:[%s5512_s14 + $0x818] sm:$0xff] }
 0x4b0   : > { %v1431_v19 = vunpack.c.l.s8.bf16 %v536_v34  ;;  %v1436_v28 = vunpack.c.h.s8.bf16 %v536_v34 }
 0x4b2   : > { %4802 = vmatpush3.bf16.msra.mxu0 %v1276_v24  ;;  %4824 = vmatpush3.bf16.msra.mxu1 %v1356_v25  ;;  %v1511_v24 = vunpack.c.l.s8.bf16 %v576_v17  ;;  %v1476_v25 = vunpack.c.h.s8.bf16 %v556_v0 }
 0x4b3   : > { %4831 = vmatprep.subr.bf16.mxu0 %v1441_v27  ;;  %4853 = vmatprep.subr.bf16.mxu1 %v1521_v29  ;;  %v1556_v27 = vunpack.c.h.s8.bf16 %v596_v3  ;;  %v621_v29 = vld [vmem:[%s5512_s14 + $0xac0] sm:$0xff]  ;;  %v636_v3 = vld [vmem:[%s5512_s14 + $0xb38] sm:$0xff] }
 0x4b5   : > { %3938 = vmatmul.mubr.bf16.vlgmr.msra.gmra.mrb[12].mxu0 %v5776_v5  ;;  %3978 = vmatmul.mubr.bf16.vlgmr.msra.gmra.mrb[12].mxu1 %v5827_v6  ;;  %v1411_v5 = vunpack.c.l.s8.bf16 %v526_v53  ;;  %v1491_v6 = vunpack.c.l.s8.bf16 %v566_v16  ;;  %v666_v53 = vld [vmem:[%s5512_s14 + $0xc28] sm:$0xff] }
 0x4b6   : > { %4832 = vmatpush3.bf16.msra.mxu0 %v1401_v36  ;;  %4854 = vmatpush3.bf16.msra.mxu1 %v1481_v31  ;;  %v1516_v36 = vunpack.c.h.s8.bf16 %v576_v17  ;;  %v1601_v31 = vunpack.c.l.s8.bf16 %v621_v29  ;;  %v616_v17 = vld [vmem:[%s5512_s14 + $0xa98] sm:$0xff] }
 0x4b7   : > { %4833 = vmatprep.subr.bf16.mxu0 %v1446_v33  ;;  %4855 = vmatprep.subr.bf16.mxu1 %v1526_v18  ;;  %v1681_v33 = vunpack.c.l.s8.bf16 %v661_v44  ;;  %v601_v18 = vld [vmem:[%s5512_s14 + $0xa20] sm:$0xff] }
 0x4b8   : > { %4017 = vmatprep.mubr.bf16.mxu0 %v5832_v14  ;;  %4057 = vmatprep.mubr.bf16.mxu1 %v5876_v21  ;;  %v1461_v14 = vunpack.c.l.s8.bf16 %v551_v8  ;;  %v1541_v21 = vunpack.c.l.s8.bf16 %v591_v47  ;;  %v1561_v37 = vunpack.c.l.s8.bf16 %v601_v18  ;;  %v1566_v16 = vunpack.c.h.s8.bf16 %v601_v18  ;;  %v646_v8 = vld [vmem:[%s5512_s14 + $0xb88] sm:$0xff] }
 0x4b9   : > { %v1656_v55 = vunpack.c.h.s8.bf16 %v646_v8 }
 0x4ba   : > { %4834 = vmatpush3.bf16.msra.mxu0 %v1406_v38  ;;  %4856 = vmatpush3.bf16.msra.mxu1 %v1486_v39  ;;  %v1641_v38 = vunpack.c.l.s8.bf16 %v641_v9  ;;  %v1606_v39 = vunpack.c.h.s8.bf16 %v621_v29 }
 0x4bb   : > { %4835 = vmatprep.subr.bf16.mxu0 %v1451_v42  ;;  %4857 = vmatprep.subr.bf16.mxu1 %v1531_v43  ;;  %v1686_v42 = vunpack.c.h.s8.bf16 %v661_v44  ;;  %v626_v43 = vld [vmem:[%s5512_s14 + $0xae8] sm:$0xff]  ;;  %v701_v44 = vld [vmem:[%s5512_s14 + $0xd40] sm:$0xff] }
 0x4bc   : > { %v1616_v47 = vunpack.c.h.s8.bf16 %v626_v43 }
 0x4be   : > { %4836 = vmatpush3.bf16.msra.mxu0 %v1411_v5  ;;  %4858 = vmatpush3.bf16.msra.mxu1 %v1491_v6  ;;  %v1646_v5 = vunpack.c.h.s8.bf16 %v641_v9  ;;  %v1611_v6 = vunpack.c.l.s8.bf16 %v626_v43  ;;  %v681_v9 = vld [vmem:[%s5512_s14 + $0xca0] sm:$0xff] }
 0x4bf   : > { %4837 = vmatprep.subr.bf16.mxu0 %v1456_v13  ;;  %4859 = vmatprep.subr.bf16.mxu1 %v1536_v48  ;;  %v1691_v13 = vunpack.c.l.s8.bf16 %v666_v53  ;;  %v606_v48 = vld [vmem:[%s5512_s14 + $0xa48] sm:$0xff] }
 0x4c2   : > { %4838 = vmatpush3.bf16.msra.mxu0 %v1416_v50  ;;  %4860 = vmatpush3.bf16.msra.mxu1 %v1496_v52  ;;  %v1696_v50 = vunpack.c.h.s8.bf16 %v666_v53  ;;  %v631_v52 = vld [vmem:[%s5512_s14 + $0xb10] sm:$0xff]  ;;  %v706_v53 = vld [vmem:[%s5512_s14 + $0xd68] sm:$0xff] }
 0x4c3   : > { %4839 = vmatprep.subr.bf16.mxu0 %v1461_v14  ;;  %4861 = vmatprep.subr.bf16.mxu1 %v1541_v21  ;;  %v671_v14 = vld [vmem:[%s5512_s14 + $0xc50] sm:$0xff]  ;;  %v1576_v21 = vunpack.c.h.s8.bf16 %v606_v48 }
 0x4c4   : > { %v1706_v0 = vunpack.c.h.s8.bf16 %v671_v14 }
 0x4c6   : > { %4840 = vmatpush3.bf16.msra.mxu0 %v1421_v51  ;;  %4862 = vmatpush3.bf16.msra.mxu1 %v1501_v61  ;;  %v651_v51 = vld [vmem:[%s5512_s14 + $0xbb0] sm:$0xff]  ;;  %v1581_v61 = vunpack.c.l.s8.bf16 %v611_v56 }
 0x4c7   : > { %4841 = vmatprep.subr.bf16.mxu0 %v1466_v60  ;;  %4863 = vmatprep.subr.bf16.mxu1 %v1546_v62  ;;  %v1661_v60 = vunpack.c.l.s8.bf16 %v651_v51  ;;  %v1626_v62 = vunpack.c.h.s8.bf16 %v631_v52 }
 0x4ca   : > { %4842 = vmatpush3.bf16.msra.mxu0 %v1426_v7  ;;  %4864 = vmatpush3.bf16.msra.mxu1 %v1506_v1  ;;  %v676_v7 = vld [vmem:[%s5512_s14 + $0xc78] sm:$0xff]  ;;  %v1586_v1 = vunpack.c.h.s8.bf16 %v611_v56 }
 0x4cb   : > { %4843 = vmatprep.subr.bf16.mxu0 %v1471_v15  ;;  %4865 = vmatprep.subr.bf16.mxu1 %v1551_v54  ;;  %v1666_v15 = vunpack.c.h.s8.bf16 %v651_v51  ;;  %v1631_v54 = vunpack.c.l.s8.bf16 %v636_v3  ;;  %v1711_v34 = vunpack.c.l.s8.bf16 %v676_v7  ;;  %v1716_v29 = vunpack.c.h.s8.bf16 %v676_v7 }
 0x4ce   : > { %4844 = vmatpush3.bf16.msra.mxu0 %v1431_v19  ;;  %4866 = vmatpush3.bf16.msra.mxu1 %v1511_v24  ;;  %v656_v19 = vld [vmem:[%s5512_s14 + $0xbd8] sm:$0xff]  ;;  %v1591_v24 = vunpack.c.l.s8.bf16 %v616_v17 }
 0x4cf   : > { %4845 = vmatprep.subr.bf16.mxu0 %v1476_v25  ;;  %4867 = vmatprep.subr.bf16.mxu1 %v1556_v27  ;;  %v1671_v25 = vunpack.c.l.s8.bf16 %v656_v19  ;;  %v1636_v27 = vunpack.c.h.s8.bf16 %v636_v3 }
 0x4d2   : > { %4846 = vmatpush3.bf16.msra.mxu0 %v1436_v28  ;;  %4868 = vmatpush3.bf16.msra.mxu1 %v1516_v36  ;;  %v741_v28 = vld [vmem:[%s5512_s14 + $0xe80] sm:$0xff]  ;;  %v1596_v36 = vunpack.c.h.s8.bf16 %v616_v17 }
 0x4d3   : > { %4875 = vmatprep.subr.bf16.mxu0 %v1601_v31  ;;  %4897 = vmatprep.subr.bf16.mxu1 %v1681_v33  ;;  %v1676_v31 = vunpack.c.h.s8.bf16 %v656_v19  ;;  %v1761_v33 = vunpack.c.l.s8.bf16 %v701_v44  ;;  %v1841_v18 = vunpack.c.l.s8.bf16 %v741_v28  ;;  %v1846_v43 = vunpack.c.h.s8.bf16 %v741_v28 }
 0x4d5   : > { %4018 = vmatmul.mubr.bf16.vlgmr.msra.gmra.mrb[16].mxu0 %v5870_v10  ;;  %4058 = vmatmul.mubr.bf16.vlgmr.msra.gmra.mrb[16].mxu1 %v5925_v22  ;;  %v1571_v10 = vunpack.c.l.s8.bf16 %v606_v48  ;;  %v1651_v22 = vunpack.c.l.s8.bf16 %v646_v8  ;;  %v686_v8 = vld [vmem:[%s5512_s14 + $0xcc8] sm:$0xff] }
 0x4d6   : > { %4876 = vmatpush3.bf16.msra.mxu0 %v1561_v37  ;;  %4898 = vmatpush3.bf16.msra.mxu1 %v1641_v38  ;;  %v721_v37 = vld [vmem:[%s5512_s14 + $0xde0] sm:$0xff]  ;;  %v1721_v38 = vunpack.c.l.s8.bf16 %v681_v9 }
 0x4d7   : > { %4877 = vmatprep.subr.bf16.mxu0 %v1606_v39  ;;  %4899 = vmatprep.subr.bf16.mxu1 %v1686_v42  ;;  %v1801_v39 = vunpack.c.l.s8.bf16 %v721_v37  ;;  %v1766_v42 = vunpack.c.h.s8.bf16 %v701_v44 }
 0x4d8   : > { %4097 = vmatprep.mubr.bf16.mxu0 %v5930_v30  ;;  %4137 = vmatprep.mubr.bf16.mxu1 %v5974_v49  ;;  %v1621_v30 = vunpack.c.l.s8.bf16 %v631_v52  ;;  %v1701_v49 = vunpack.c.l.s8.bf16 %v671_v14  ;;  %v751_v52 = vld [vmem:[%s5512_s14 + $0xed0] sm:$0xff]  ;;  %v1736_v14 = vunpack.c.h.s8.bf16 %v686_v8 }
 0x4da   : > { %4878 = vmatpush3.bf16.msra.mxu0 %v1566_v16  ;;  %4900 = vmatpush3.bf16.msra.mxu1 %v1646_v5  ;;  %v746_v16 = vld [vmem:[%s5512_s14 + $0xea8] sm:$0xff]  ;;  %v1726_v5 = vunpack.c.h.s8.bf16 %v681_v9 }
 0x4db   : > { %4879 = vmatprep.subr.bf16.mxu0 %v1611_v6  ;;  %4901 = vmatprep.subr.bf16.mxu1 %v1691_v13  ;;  %v1806_v6 = vunpack.c.h.s8.bf16 %v721_v37  ;;  %v1771_v13 = vunpack.c.l.s8.bf16 %v706_v53  ;;  %v1851_v48 = vunpack.c.l.s8.bf16 %v746_v16 }
 0x4de   : > { %4880 = vmatpush3.bf16.msra.mxu0 %v1571_v10  ;;  %4902 = vmatpush3.bf16.msra.mxu1 %v1651_v22  ;;  %v726_v10 = vld [vmem:[%s5512_s14 + $0xe08] sm:$0xff]  ;;  %v1776_v22 = vunpack.c.h.s8.bf16 %v706_v53 }
 0x4df   : > { %4881 = vmatprep.subr.bf16.mxu0 %v1616_v47  ;;  %4903 = vmatprep.subr.bf16.mxu1 %v1696_v50  ;;  %v1856_v47 = vunpack.c.h.s8.bf16 %v746_v16  ;;  %v711_v50 = vld [vmem:[%s5512_s14 + $0xd90] sm:$0xff] }
 0x4e0   : > { %v1786_v51 = vunpack.c.h.s8.bf16 %v711_v50 }
 0x4e2   : > { %4882 = vmatpush3.bf16.msra.mxu0 %v1576_v21  ;;  %4904 = vmatpush3.bf16.msra.mxu1 %v1656_v55  ;;  %v1816_v21 = vunpack.c.h.s8.bf16 %v726_v10  ;;  %v691_v55 = vld [vmem:[%s5512_s14 + $0xcf0] sm:$0xff] }
 0x4e3   : > { %4883 = vmatprep.subr.bf16.mxu0 %v1621_v30  ;;  %4905 = vmatprep.subr.bf16.mxu1 %v1701_v49  ;;  %v731_v30 = vld [vmem:[%s5512_s14 + $0xe30] sm:$0xff]  ;;  %v1741_v49 = vunpack.c.l.s8.bf16 %v691_v55 }
 0x4e4   : > { %v1821_v56 = vunpack.c.l.s8.bf16 %v731_v30  ;;  %v1826_v3 = vunpack.c.h.s8.bf16 %v731_v30  ;;  %v4401_v30 = vsub.s32 3, %v5533_v26 }
 0x4e6   : > { %4884 = vmatpush3.bf16.msra.mxu0 %v1581_v61  ;;  %4906 = vmatpush3.bf16.msra.mxu1 %v1661_v60  ;;  %v1866_v61 = vunpack.c.h.s8.bf16 %v751_v52  ;;  %v716_v60 = vld [vmem:[%s5512_s14 + $0xdb8] sm:$0xff] }
 0x4e7   : > { %4885 = vmatprep.subr.bf16.mxu0 %v1626_v62  ;;  %4907 = vmatprep.subr.bf16.mxu1 %v1706_v0  ;;  %v756_v62 = vld [vmem:[%s5512_s14 + $0xef8] sm:$0xff]  ;;  %v1746_v0 = vunpack.c.h.s8.bf16 %v691_v55  ;;  %v1791_v7 = vunpack.c.l.s8.bf16 %v716_v60  ;;  %v1796_v19 = vunpack.c.h.s8.bf16 %v716_v60  ;;  %v4393_v55 = vsub.s32 1, %v5533_v26 }
 0x4ea   : > { %4886 = vmatpush3.bf16.msra.mxu0 %v1586_v1  ;;  %4908 = vmatpush3.bf16.msra.mxu1 %v1666_v15  ;;  %v1871_v1 = vunpack.c.l.s8.bf16 %v756_v62  ;;  %v696_v15 = vld [vmem:[%s5512_s14 + $0xd18] sm:$0xff] }
 0x4eb   : > { %4887 = vmatprep.subr.bf16.mxu0 %v1631_v54  ;;  %4909 = vmatprep.subr.bf16.mxu1 %v1711_v34  ;;  %v736_v54 = vld [vmem:[%s5512_s14 + $0xe58] sm:$0xff]  ;;  %v1751_v34 = vunpack.c.l.s8.bf16 %v696_v15 }
 0x4ec   : > { %v1831_v17 = vunpack.c.l.s8.bf16 %v736_v54  ;;  %v1836_v44 = vunpack.c.h.s8.bf16 %v736_v54 }
 0x4ee   : > { %4888 = vmatpush3.bf16.msra.mxu0 %v1591_v24  ;;  %4910 = vmatpush3.bf16.msra.mxu1 %v1671_v25  ;;  %v1876_v24 = vunpack.c.h.s8.bf16 %v756_v62  ;;  %v781_v25 = vld [vmem:[%s5512_s14 + $0xfc0] sm:$0xff] }
 0x4ef   : > { %4889 = vmatprep.subr.bf16.mxu0 %v1636_v27  ;;  %4911 = vmatprep.subr.bf16.mxu1 %v1716_v29  ;;  %v821_v27 = vld [vmem:[%s5512_s14 + $0x1100] sm:$0xff]  ;;  %v1756_v29 = vunpack.c.h.s8.bf16 %v696_v15  ;;  %v1921_v28 = vunpack.c.l.s8.bf16 %v781_v25  ;;  %v1926_v37 = vunpack.c.h.s8.bf16 %v781_v25 }
 0x4f2   : > { %4890 = vmatpush3.bf16.msra.mxu0 %v1596_v36  ;;  %4912 = vmatpush3.bf16.msra.mxu1 %v1676_v31  ;;  %v2001_v36 = vunpack.c.l.s8.bf16 %v821_v27  ;;  %v761_v31 = vld [vmem:[%s5512_s14 + $0xf20] sm:$0xff] }
 0x4f3   : > { %4919 = vmatprep.subr.bf16.mxu0 %v1761_v33  ;;  %4941 = vmatprep.subr.bf16.mxu1 %v1841_v18  ;;  %v801_v33 = vld [vmem:[%s5512_s14 + $0x1060] sm:$0xff]  ;;  %v1881_v18 = vunpack.c.l.s8.bf16 %v761_v31 }
 0x4f4   : > { %v1961_v9 = vunpack.c.l.s8.bf16 %v801_v33  ;;  %v1966_v53 = vunpack.c.h.s8.bf16 %v801_v33 }
 0x4f5   : > { %4098 = vmatmul.mubr.bf16.vlgmr.msra.gmra.mrb[20].mxu0 %v5968_v40  ;;  %4138 = vmatmul.mubr.bf16.vlgmr.msra.gmra.mrb[20].mxu1 %v6019_v58  ;;  %v1731_v40 = vunpack.c.l.s8.bf16 %v686_v8  ;;  %v1811_v58 = vunpack.c.l.s8.bf16 %v726_v10  ;;  %v791_v10 = vld [vmem:[%s5512_s14 + $0x1010] sm:$0xff] }
 0x4f6   : > { %4920 = vmatpush3.bf16.msra.mxu0 %v1721_v38  ;;  %4942 = vmatpush3.bf16.msra.mxu1 %v1801_v39  ;;  %v2006_v38 = vunpack.c.h.s8.bf16 %v821_v27  ;;  %v786_v39 = vld [vmem:[%s5512_s14 + $0xfe8] sm:$0xff] }
 0x4f7   : > { %4921 = vmatprep.subr.bf16.mxu0 %v1766_v42  ;;  %4943 = vmatprep.subr.bf16.mxu1 %v1846_v43  ;;  %v826_v42 = vld [vmem:[%s5512_s14 + $0x1128] sm:$0xff]  ;;  %v1886_v43 = vunpack.c.h.s8.bf16 %v761_v31  ;;  %v1931_v16 = vunpack.c.l.s8.bf16 %v786_v39 }
 0x4f8   : > { %4177 = vmatprep.mubr.bf16.mxu0 %v6024_v12  ;;  %4217 = vmatprep.mubr.bf16.mxu1 %v6068_v45  ;;  %v1781_v12 = vunpack.c.l.s8.bf16 %v711_v50  ;;  %v1861_v45 = vunpack.c.l.s8.bf16 %v751_v52  ;;  %v2016_v8 = vunpack.c.h.s8.bf16 %v826_v42  ;;  %v811_v50 = vld [vmem:[%s5512_s14 + $0x10b0] sm:$0xff]  ;;  %v4389_v52 = vsub.s32 0, %v5533_v26 }
 0x4fa   : > { %4922 = vmatpush3.bf16.msra.mxu0 %v1726_v5  ;;  %4944 = vmatpush3.bf16.msra.mxu1 %v1806_v6  ;;  %v2011_v5 = vunpack.c.l.s8.bf16 %v826_v42  ;;  %v766_v6 = vld [vmem:[%s5512_s14 + $0xf48] sm:$0xff] }
 0x4fb   : > { %4923 = vmatprep.subr.bf16.mxu0 %v1771_v13  ;;  %4945 = vmatprep.subr.bf16.mxu1 %v1851_v48  ;;  %v806_v13 = vld [vmem:[%s5512_s14 + $0x1088] sm:$0xff]  ;;  %v1936_v48 = vunpack.c.h.s8.bf16 %v786_v39 }
 0x4fe   : > { %4924 = vmatpush3.bf16.msra.mxu0 %v1731_v40  ;;  %4946 = vmatpush3.bf16.msra.mxu1 %v1811_v58  ;;  %v831_v40 = vld [vmem:[%s5512_s14 + $0x1150] sm:$0xff]  ;;  %v1896_v58 = vunpack.c.h.s8.bf16 %v766_v6 }
 0x4ff   : > { %4925 = vmatprep.subr.bf16.mxu0 %v1776_v22  ;;  %4947 = vmatprep.subr.bf16.mxu1 %v1856_v47  ;;  %v1976_v22 = vunpack.c.h.s8.bf16 %v806_v13  ;;  %v771_v47 = vld [vmem:[%s5512_s14 + $0xf70] sm:$0xff] }
 0x502   : > { %4926 = vmatpush3.bf16.msra.mxu0 %v1736_v14  ;;  %4948 = vmatpush3.bf16.msra.mxu1 %v1816_v21  ;;  %v4397_v14 = vsub.s32 2, %v5533_v26  ;;  %v1901_v21 = vunpack.c.l.s8.bf16 %v771_v47 }
 0x503   : > { %4927 = vmatprep.subr.bf16.mxu0 %v1781_v12  ;;  %4949 = vmatprep.subr.bf16.mxu1 %v1861_v45  ;;  %v1981_v12 = vunpack.c.l.s8.bf16 %v811_v50  ;;  %v6435_v45 = vld [vmem:[%s5518_s8] sm:$0x1f] }
 0x504   : > { %v4390_v60 = vrot.slane %v6435_v45, %v4389_v52  ;;  %v4398_v62 = vrot.slane %v6435_v45, %v4397_v14 }
 0x506   : > { %4928 = vmatpush3.bf16.msra.mxu0 %v1741_v49  ;;  %4950 = vmatpush3.bf16.msra.mxu1 %v1821_v56  ;;  %v1946_v49 = vunpack.c.h.s8.bf16 %v791_v10  ;;  %v2026_v56 = vunpack.c.h.s8.bf16 %v831_v40 }
 0x507   : > { %4929 = vmatprep.subr.bf16.mxu0 %v1786_v51  ;;  %4951 = vmatprep.subr.bf16.mxu1 %v1866_v61  ;;  %v796_v51 = vld [vmem:[%s5512_s14 + $0x1038] sm:$0xff] }
 0x508   : > { %v836_v61 = vld [vmem:[%s5512_s14 + $0x1178] sm:$0xff]  ;;  %v1951_v15 = vunpack.c.l.s8.bf16 %v796_v51 }
 0x509   : > { %v2031_v54 = vunpack.c.l.s8.bf16 %v836_v61 }
 0x50a   : > { %4930 = vmatpush3.bf16.msra.mxu0 %v1746_v0  ;;  %4952 = vmatpush3.bf16.msra.mxu1 %v1826_v3  ;;  %v4394_v0 = vrot.slane %v6435_v45, %v4393_v55  ;;  %v4402_v3 = vrot.slane %v6435_v45, %v4401_v30 }
 0x50b   : > { %4931 = vmatprep.subr.bf16.mxu0 %v1791_v7  ;;  %4953 = vmatprep.subr.bf16.mxu1 %v1871_v1  ;;  %v1906_v7 = vunpack.c.h.s8.bf16 %v771_v47  ;;  %v1986_v1 = vunpack.c.h.s8.bf16 %v811_v50 }
 0x50e   : > { %4932 = vmatpush3.bf16.msra.mxu0 %v1751_v34  ;;  %4954 = vmatpush3.bf16.msra.mxu1 %v1831_v17  ;;  %v776_v34 = vld [vmem:[%s5512_s14 + $0xf98] sm:$0xff] }
 0x50f   : > { %4933 = vmatprep.subr.bf16.mxu0 %v1796_v19  ;;  %4955 = vmatprep.subr.bf16.mxu1 %v1876_v24  ;;  %v816_v17 = vld [vmem:[%s5512_s14 + $0x10d8] sm:$0xff] }
 0x512   : > { %4934 = vmatpush3.bf16.msra.mxu0 %v1756_v29  ;;  %4956 = vmatpush3.bf16.msra.mxu1 %v1836_v44 }
 0x513   : > { %4963 = vmatprep.subr.bf16.mxu0 %v1921_v28  ;;  %4985 = vmatprep.subr.bf16.mxu1 %v2001_v36 }
 0x515   : > { %4178 = vmatmul.mubr.bf16.vlgmr.msra.gmra.mrb[24].mxu0 %v6062_v32  ;;  %4218 = vmatmul.mubr.bf16.vlgmr.msra.gmra.mrb[24].mxu1 %v6117_v4  ;;  %v1891_v32 = vunpack.c.l.s8.bf16 %v766_v6  ;;  %v1971_v4 = vunpack.c.l.s8.bf16 %v806_v13  ;;  %v861_v6 = vld [vmem:[%s5512_s14 + $0x1240] sm:$0xff] }
 0x516   : > { %4964 = vmatpush3.bf16.msra.mxu0 %v1881_v18  ;;  %4986 = vmatpush3.bf16.msra.mxu1 %v1961_v9  ;;  %v1911_v18 = vunpack.c.l.s8.bf16 %v776_v34  ;;  %v1991_v9 = vunpack.c.l.s8.bf16 %v816_v17  ;;  %v901_v13 = vld [vmem:[%s5512_s14 + $0x1380] sm:$0xff] }
 0x517   : > { %4965 = vmatprep.subr.bf16.mxu0 %v1926_v37  ;;  %4987 = vmatprep.subr.bf16.mxu1 %v2006_v38 }
 0x518   : > { %4257 = vmatprep.mubr.bf16.mxu0 %v6122_v41  ;;  %4297 = vmatprep.mubr.bf16.mxu1 %v6166_v11  ;;  %v1941_v41 = vunpack.c.l.s8.bf16 %v791_v10  ;;  %v2021_v11 = vunpack.c.l.s8.bf16 %v831_v40  ;;  %v1916_v10 = vunpack.c.h.s8.bf16 %v776_v34  ;;  %v1996_v40 = vunpack.c.h.s8.bf16 %v816_v17 }
 0x51a   : > { %4966 = vmatpush3.bf16.msra.mxu0 %v1886_v43  ;;  %4988 = vmatpush3.bf16.msra.mxu1 %v1966_v53  ;;  %v1956_v43 = vunpack.c.h.s8.bf16 %v796_v51  ;;  %v2036_v53 = vunpack.c.h.s8.bf16 %v836_v61 }
 0x51b   : > { %4967 = vmatprep.subr.bf16.mxu0 %v1931_v16  ;;  %4989 = vmatprep.subr.bf16.mxu1 %v2011_v5 }
 0x51e   : > { %4968 = vmatpush3.bf16.msra.mxu0 %v1891_v32  ;;  %4990 = vmatpush3.bf16.msra.mxu1 %v1971_v4 }
 0x51f   : > { %4969 = vmatprep.subr.bf16.mxu0 %v1936_v48  ;;  %4991 = vmatprep.subr.bf16.mxu1 %v2016_v8 }
 0x522   : > { %4970 = vmatpush3.bf16.msra.mxu0 %v1896_v58  ;;  %4992 = vmatpush3.bf16.msra.mxu1 %v1976_v22  ;;  %v2081_v58 = vunpack.c.l.s8.bf16 %v861_v6  ;;  %v2161_v22 = vunpack.c.l.s8.bf16 %v901_v13 }
 0x523   : > { %4971 = vmatprep.subr.bf16.mxu0 %v1941_v41  ;;  %4993 = vmatprep.subr.bf16.mxu1 %v2021_v11  ;;  %v841_v41 = vld [vmem:[%s5512_s14 + $0x11a0] sm:$0xff] }
 0x524   : > { %v881_v11 = vld [vmem:[%s5512_s14 + $0x12e0] sm:$0xff]  ;;  %v2041_v47 = vunpack.c.l.s8.bf16 %v841_v41  ;;  %v2046_v51 = vunpack.c.h.s8.bf16 %v841_v41 }
 0x525   : > { %v2121_v50 = vunpack.c.l.s8.bf16 %v881_v11  ;;  %v2126_v61 = vunpack.c.h.s8.bf16 %v881_v11 }
 0x526   : > { %4972 = vmatpush3.bf16.msra.mxu0 %v1901_v21  ;;  %4994 = vmatpush3.bf16.msra.mxu1 %v1981_v12  ;;  %v2086_v21 = vunpack.c.h.s8.bf16 %v861_v6  ;;  %v2166_v12 = vunpack.c.h.s8.bf16 %v901_v13 }
 0x527   : > { %4973 = vmatprep.subr.bf16.mxu0 %v1946_v49  ;;  %4995 = vmatprep.subr.bf16.mxu1 %v2026_v56  ;;  %v866_v49 = vld [vmem:[%s5512_s14 + $0x1268] sm:$0xff] }
 0x528   : > { %v3082_v19 = vpop.f32.mrb[0].mxu0  ;;  %v3738_v24 = vpop.f32.mrb[0].mxu1  ;;  %v906_v56 = vld [vmem:[%s5512_s14 + $0x13a8] sm:$0xff] }
 0x529   : > { %v4412_v25 = vmul.f32 %v4390_v60, %v3082_v19  ;;  %v4414_v27 = vmul.f32 %v4398_v62, %v3738_v24  ;;  %v3084_v29 = vpop.f32.mrb[1].mxu0  ;;  %v3740_v44 = vpop.f32.mrb[1].mxu1  ;;  %v2091_v60 = vunpack.c.l.s8.bf16 %v866_v49  ;;  %v2171_v62 = vunpack.c.l.s8.bf16 %v906_v56  ;;  %v871_v19 = vld [vmem:[%s5512_s14 + $0x1290] sm:$0xff] }
 0x52a   : > { %v4413_v28 = vmul.f32 %v4394_v0, %v3084_v29  ;;  %v4415_v36 = vmul.f32 %v4402_v3, %v3740_v44  ;;  %v3086_v31 = vpop.f32.mrb[2].mxu0  ;;  %v3742_v33 = vpop.f32.mrb[2].mxu1  ;;  %4974 = vmatpush3.bf16.msra.mxu0 %v1906_v7  ;;  %4996 = vmatpush3.bf16.msra.mxu1 %v1986_v1  ;;  %v846_v0 = vld [vmem:[%s5512_s14 + $0x11c8] sm:$0xff]  ;;  %v911_v24 = vld [vmem:[%s5512_s14 + $0x13d0] sm:$0xff] }
 0x52b   : > { %v4418_v37 = vsub.f32 0.0, %v4412_v25  ;;  %v4420_v38 = vsub.f32 0.0, %v4414_v27  ;;  %v3087_v39 = vpop.f32.mrb[3].mxu0  ;;  %v3743_v42 = vpop.f32.mrb[3].mxu1  ;;  %4975 = vmatprep.subr.bf16.mxu0 %v1951_v15  ;;  %4997 = vmatprep.subr.bf16.mxu1 %v2031_v54  ;;  %v886_v3 = vld [vmem:[%s5512_s14 + $0x1308] sm:$0xff]  ;;  %v2051_v1 = vunpack.c.l.s8.bf16 %v846_v0  ;;  %v2056_v29 = vunpack.c.h.s8.bf16 %v846_v0  ;;  %v851_v31 = vld [vmem:[%s5512_s14 + $0x11f0] sm:$0xff] }
 0x52c   : > { %v4419_v16 = vsub.f32 0.0, %v4413_v28  ;;  %v4421_v5 = vsub.f32 0.0, %v4415_v36  ;;  %v2131_v15 = vunpack.c.l.s8.bf16 %v886_v3  ;;  %v2136_v44 = vunpack.c.h.s8.bf16 %v886_v3  ;;  %v891_v33 = vld [vmem:[%s5512_s14 + $0x1330] sm:$0xff] }
 0x52d   : > { %v4423_v32 = vmul.f32 1.442695, %v4418_v37  ;;  %v4427_v4 = vmul.f32 1.442695, %v4420_v38  ;;  %v2101_v28 = vunpack.c.l.s8.bf16 %v871_v19  ;;  %v2181_v36 = vunpack.c.l.s8.bf16 %v911_v24  ;;  %v6495_v38 = vld [vmem:[%s5512_s14 + $0x12b8] sm:$0xff] }
 0x52e   : > { %v4425_v48 = vmul.f32 1.442695, %v4419_v16  ;;  %v4429_v8 = vmul.f32 1.442695, %v4421_v5  ;;  %4976 = vmatpush3.bf16.msra.mxu0 %v1911_v18  ;;  %4998 = vmatpush3.bf16.msra.mxu1 %v1991_v9  ;;  %v6491_v18 = vld [vmem:[%s269_s25] sm:$0x1f]  ;;  %v2061_v9 = vunpack.c.l.s8.bf16 %v851_v31  ;;  %v2141_v37 = vunpack.c.l.s8.bf16 %v891_v33 }
 0x52f   : > { %5232 = vpow2.f32 %v4423_v32  ;;  %4977 = vmatprep.subr.bf16.mxu0 %v1956_v43  ;;  %4999 = vmatprep.subr.bf16.mxu1 %v2036_v53  ;;  %v2106_v39 = vunpack.c.h.s8.bf16 %v871_v19  ;;  %v2186_v42 = vunpack.c.h.s8.bf16 %v911_v24  ;;  %v6498_v43 = vld [vmem:[%s5512_s14 + $0x13f8] sm:$0xff]  ;;  %v4477_v5 = vrot.slane %v6491_v18, %v4389_v52 }
 0x530   : > { %5234 = vpow2.f32 %v4427_v4  ;;  %v6501_v53 = vld [vmem:[%s5512_s14 + $0x1218] sm:$0xff]  ;;  %v4485_v6 = vrot.slane %v6491_v18, %v4397_v14  ;;  %v2066_v13 = vunpack.c.h.s8.bf16 %v851_v31  ;;  %v4481_v32 = vrot.slane %v6491_v18, %v4393_v55 }
 0x531   : > { %5236 = vpow2.f32 %v4425_v48  ;;  %v6504_v16 = vld [vmem:[%s5512_s14 + $0x1358] sm:$0xff]  ;;  %v6518_v4 = vrot.slane %v6491_v18, %v4401_v30  ;;  %v2146_v48 = vunpack.c.h.s8.bf16 %v891_v33  ;;  %v2191_v52 = vunpack.c.l.s8.bf16 %v6498_v43 }
 0x532   : > { %5238 = vpow2.f32 %v4429_v8  ;;  %4978 = vmatpush3.bf16.msra.mxu0 %v1916_v10  ;;  %5000 = vmatpush3.bf16.msra.mxu1 %v1996_v40  ;;  %v2111_v8 = vunpack.c.l.s8.bf16 %v6495_v38  ;;  %v2071_v14 = vunpack.c.l.s8.bf16 %v6501_v53  ;;  %v2151_v40 = vunpack.c.l.s8.bf16 %v6504_v16 }
 0x533   : > { %5007 = vmatprep.subr.bf16.mxu0 %v2081_v58  ;;  %5029 = vmatprep.subr.bf16.mxu1 %v2161_v22  ;;  %v2116_v58 = vunpack.c.h.s8.bf16 %v6495_v38  ;;  %v2196_v30 = vunpack.c.h.s8.bf16 %v6498_v43  ;;  %v2076_v41 = vunpack.c.h.s8.bf16 %v6501_v53 }
 0x535   : > { %4258 = vmatmul.mubr.bf16.vlgmr.msra.gmra.mrb[28].mxu0 %v6160_v59  ;;  %4298 = vmatmul.mubr.bf16.vlgmr.msra.gmra.mrb[28].mxu1 %v6211_v57 }
 0x536   : > { %5008 = vmatpush3.bf16.msra.mxu0 %v2041_v47  ;;  %5030 = vmatpush3.bf16.msra.mxu1 %v2121_v50 }
 0x537   : > { %5009 = vmatprep.subr.bf16.mxu0 %v2086_v21  ;;  %5031 = vmatprep.subr.bf16.mxu1 %v2166_v12 }
 0x538   : > { %4337 = vmatprep.mubr.bf16.mxu0 %v6216_v63  ;;  %4377 = vmatprep.mubr.bf16.mxu1 %v6260_v23  ;;  %v2096_v63 = vunpack.c.h.s8.bf16 %v866_v49  ;;  %v2176_v23 = vunpack.c.h.s8.bf16 %v906_v56 }
 0x539   : > { %v5233_v7 = vpop.eup %5232 }
 0x53a   : > { %v5235_v59 = vpop.eup %5234  ;;  %v6472_v57 = vmul.f32 4096.0, %v5233_v7  ;;  %5010 = vmatpush3.bf16.msra.mxu0 %v2046_v51  ;;  %5032 = vmatpush3.bf16.msra.mxu1 %v2126_v61 }
 0x53b   : > { %v5237_v54 = vpop.eup %5236  ;;  %v6474_v34 = vmul.f32 4096.0, %v5235_v59  ;;  %5011 = vmatprep.subr.bf16.mxu0 %v2091_v60  ;;  %5033 = vmatprep.subr.bf16.mxu1 %v2171_v62 }
 0x53c   : > { %v5239_v17 = vpop.eup %5238  ;;  %5240 = vrsqrt.f32 %v6472_v57  ;;  %v6484_v25 = vmul.f32 4096.0, %v5237_v54  ;;  %vm4440_vm0 = vcmp.eq.f32.partialorder %v6472_v57, inf  ;;  %vm4442_vm1 = vcmp.eq.f32.partialorder %v6472_v57, 0.0 }
 0x53d   : > { %5242 = vrsqrt.f32 %v6474_v34  ;;  %v6486_v27 = vmul.f32 4096.0, %v5239_v17  ;;  %v4443_v11 = vand.u32 2147483648, %v6472_v57  ;;  %vm4454_vm2 = vcmp.eq.f32.partialorder %v6474_v34, inf }
 0x53e   : > { %5012 = vmatpush3.bf16.msra.mxu0 %v2051_v1  ;;  %5034 = vmatpush3.bf16.msra.mxu1 %v2131_v15  ;;  %5244 = vrsqrt.f32 %v6484_v25  ;;  %vm4456_vm3 = vcmp.eq.f32.partialorder %v6474_v34, 0.0  ;;  %v4457_v49 = vand.u32 2147483648, %v6474_v34  ;;  %vm4447_vm4 = vcmp.eq.f32.partialorder %v6484_v25, inf }
 0x53f   : > { %5013 = vmatprep.subr.bf16.mxu0 %v2096_v63  ;;  %5035 = vmatprep.subr.bf16.mxu1 %v2176_v23  ;;  %5246 = vrsqrt.f32 %v6486_v27  ;;  %vm4449_vm5 = vcmp.eq.f32.partialorder %v6484_v25, 0.0  ;;  %v4450_v24 = vand.u32 2147483648, %v6484_v25  ;;  %vm4461_vm6 = vcmp.eq.f32.partialorder %v6486_v27, inf }
 0x540   : > { %v4464_v31 = vand.u32 2147483648, %v6486_v27  ;;  %vm4463_vm7 = vcmp.eq.f32.partialorder %v6486_v27, 0.0 }
 0x542   : > { %5014 = vmatpush3.bf16.msra.mxu0 %v2056_v29  ;;  %5036 = vmatpush3.bf16.msra.mxu1 %v2136_v44 }
 0x543   : > { %5015 = vmatprep.subr.bf16.mxu0 %v2101_v28  ;;  %5037 = vmatprep.subr.bf16.mxu1 %v2181_v36 }
 0x546   : > { %v5241_v10 = vpop.eup %5240  ;;  %5016 = vmatpush3.bf16.msra.mxu0 %v2061_v9  ;;  %5038 = vmatpush3.bf16.msra.mxu1 %v2141_v37 }
 0x547   : > { %v5243_v55 = vpop.eup %5242  ;;  %v4439_v22 = vmul.f32 %v5241_v10, %v6472_v57  ;;  %5017 = vmatprep.subr.bf16.mxu0 %v2106_v39  ;;  %5039 = vmatprep.subr.bf16.mxu1 %v2186_v42 }
 0x548   : > { %v4453_v47 = vmul.f32 %v5243_v55, %v6474_v34  ;;  %v4715_v50 = vpop.f32.mrb[4].mxu0  ;;  %v4737_v21 = vpop.f32.mrb[4].mxu1 }
 0x549   : > { %v4441_v12 = vsel %vm4440_vm0, %v6472_v57, %v4439_v22  ;;  %v4716_v56 = vpop.f32.mrb[5].mxu0  ;;  %v4738_v51 = vpop.f32.mrb[5].mxu1 }
 0x54a   : > { %v5245_v61 = vpop.eup %5244  ;;  %v4444_v60 = vsel %vm4442_vm1, %v4443_v11, %v4441_v12  ;;  %v4455_v62 = vsel %vm4454_vm2, %v6474_v34, %v4453_v47  ;;  %v4717_v0 = vadd.f32 %v4716_v56, %v4715_v50  ;;  %v4739_v3 = vadd.f32 %v4738_v51, %v4737_v21  ;;  %v4718_v7 = vpop.f32.mrb[6].mxu0  ;;  %5018 = vmatpush3.bf16.msra.mxu0 %v2066_v13 }
 0x54b   : > { %v4740_v59 = vpop.f32.mrb[6].mxu1  ;;  %v5247_v1 = vpop.eup %5246  ;;  %v4499_v15 = vmul.f32 %v4477_v5, %v4444_v60  ;;  %v4458_v54 = vsel %vm4456_vm3, %v4457_v49, %v4455_v62  ;;  %v4446_v63 = vmul.f32 %v5245_v61, %v6484_v25  ;;  %5040 = vmatpush3.bf16.msra.mxu1 %v2146_v48  ;;  %5019 = vmatprep.subr.bf16.mxu0 %v2111_v8 }
 0x54c   : > { %v4719_v23 = vpop.f32.mrb[7].mxu0  ;;  %v4741_v17 = vpop.f32.mrb[7].mxu1  ;;  %v4501_v19 = vmul.f32 %v4485_v6, %v4458_v54  ;;  %v4460_v29 = vmul.f32 %v5247_v1, %v6486_v27  ;;  %v6542_v44 = vadd.f32 %v4739_v3, %v4717_v0  ;;  %5041 = vmatprep.subr.bf16.mxu1 %v2191_v52 }
 0x54d   : > { %v4504_v28 = vadd.f32 %v4499_v15, %v6472_v57  ;;  %v4448_v36 = vsel %vm4447_vm4, %v6484_v25, %v4446_v63  ;;  %v2156_v57 = vunpack.c.h.s8.bf16 %v6504_v16 }
 0x54e   : > { %v4506_v33 = vadd.f32 %v4501_v19, %v6474_v34  ;;  %v4451_v9 = vsel %vm4449_vm5, %v4450_v24, %v4448_v36  ;;  %v4462_v37 = vsel %vm4461_vm6, %v6486_v27, %v4460_v29  ;;  %5020 = vmatpush3.bf16.msra.mxu0 %v2071_v14 }
 0x54f   : > { %v5175_v38 = vround.rtne.f32 %v4504_v28  ;;  %v4500_v39 = vmul.f32 %v4481_v32, %v4451_v9  ;;  %v4465_v42 = vsel %vm4463_vm7, %v4464_v31, %v4462_v37  ;;  %5042 = vmatpush3.bf16.msra.mxu1 %v2151_v40  ;;  %5021 = vmatprep.subr.bf16.mxu0 %v2116_v58 }
 0x550   : > { %v5177_v43 = vround.rtne.f32 %v4506_v33  ;;  %v4502_v53 = vmul.f32 %v6518_v4, %v4465_v42  ;;  %5043 = vmatprep.subr.bf16.mxu1 %v2196_v30 }
 0x551   : > { %v4514_v5 = vmax.f32 %v5175_v38, 0.0  ;;  %v4505_v34 = vadd.f32 %v4500_v39, %v6484_v25 }
 0x552   : > { %v4516_v6 = vmax.f32 %v5177_v43, 0.0  ;;  %v4507_v13 = vadd.f32 %v4502_v53, %v6486_v27  ;;  %5022 = vmatpush3.bf16.msra.mxu0 %v2076_v41 }
 0x553   : > { %v4520_v48 = vmul.f32 0.00024414063, %v4514_v5  ;;  %v5176_v8 = vround.rtne.f32 %v4505_v34  ;;  %5044 = vmatpush3.bf16.msra.mxu1 %v2156_v57 }
 0x554   : > { %v4522_v32 = vmul.f32 0.00024414063, %v4516_v6  ;;  %v5178_v10 = vround.rtne.f32 %v4507_v13 }
 0x555   : > { %v4525_v52 = vmax.f32 %v4520_v48, 2.4414063e-05  ;;  %v4515_v14 = vmax.f32 %v5176_v8, 0.0  ;;  %4338 = vmatmul.mubr.bf16.vlgmr.msra.gmra.mrb[32].mxu0 %v6254_v2 }
 0x556   : > { %v4527_v16 = vmax.f32 %v4522_v32, 2.4414063e-05  ;;  %v4517_v40 = vmax.f32 %v5178_v10, 0.0  ;;  %4378 = vmatmul.mubr.bf16.vlgmr.msra.gmra.mrb[32].mxu1 %v6298_v46 }
 0x557   : > { %5248 = vlog2.f32 %v4525_v52  ;;  %v4521_v4 = vmul.f32 0.00024414063, %v4515_v14 }
 0x558   : > { %5250 = vlog2.f32 %v4527_v16  ;;  %v4523_v25 = vmul.f32 0.00024414063, %v4517_v40 }
 0x559   : > { %v4526_v58 = vmax.f32 %v4521_v4, 2.4414063e-05 }
 0x55a   : > { %v4528_v27 = vmax.f32 %v4523_v25, 2.4414063e-05 }
 0x55b   : > { %5252 = vlog2.f32 %v4526_v58 }
 0x55c   : > { %5254 = vlog2.f32 %v4528_v27 }
 0x561   : > { %v5249_v55 = vpop.eup %5248 }
 0x562   : > { %v5251_v22 = vpop.eup %5250  ;;  %v4531_v30 = vmul.f32 0.6931472, %v5249_v55 }
 0x563   : > { %v4535_v41 = vmul.f32 0.6931472, %v5251_v22 }
 0x564   : > { %v4540_v50 = vmul.f32 -0.012291267, %v4531_v30 }
 0x565   : > { %v5253_v11 = vpop.eup %5252  ;;  %v4542_v21 = vmul.f32 -0.012291267, %v4535_v41 }
 0x566   : > { %v5255_v47 = vpop.eup %5254  ;;  %v4533_v2 = vmul.f32 0.6931472, %v5253_v11 }
 0x567   : > { %v4537_v12 = vmul.f32 0.6931472, %v5255_v47 }
 0x568   : > { %v4541_v49 = vmul.f32 -0.012291267, %v4533_v2  ;;  %v4759_v46 = vpop.f32.mrb[8].mxu0  ;;  %v4781_v56 = vpop.f32.mrb[8].mxu1 }
 0x569   : > { %v4543_v51 = vmul.f32 -0.012291267, %v4537_v12  ;;  %v4760_v61 = vpop.f32.mrb[9].mxu0  ;;  %v4782_v60 = vpop.f32.mrb[9].mxu1 }
 0x56a   : > { %v4550_v62 = vcombine.low %v4540_v50, %v4541_v49  ;;  %v4761_v0 = vadd.f32 %v4760_v61, %v4759_v46  ;;  %v4783_v3 = vadd.f32 %v4782_v60, %v4781_v56  ;;  %v4762_v7 = vpop.f32.mrb[10].mxu0  ;;  %v4784_v59 = vpop.f32.mrb[10].mxu1 }
 0x56b   : > { %v4551_v1 = vcombine.low %v4542_v21, %v4543_v51  ;;  %v4763_v15 = vpop.f32.mrb[11].mxu0  ;;  %v4785_v54 = vpop.f32.mrb[11].mxu1 }
 0x56c   : > { %v6560_v63 = vrot.slane %v4550_v62, %v5540_v35  ;;  %v3860_v23 = vadd.f32 %v4761_v0, %v6542_v44 }
 0x56d   : > { %v6564_v17 = vrot.slane %v4551_v1, %v5540_v35 }
 0x56e   : > { %v3900_v19 = vadd.f32 %v4783_v3, %v3860_v23 }
 0x56f   : > { %v4573_v24 = vcombine.low %v6560_v63, %v6564_v17 }
 0x588   : > { %v4803_v29 = vpop.f32.mrb[12].mxu0  ;;  %v4825_v28 = vpop.f32.mrb[12].mxu1 }
 0x589   : > { %v4804_v36 = vpop.f32.mrb[13].mxu0  ;;  %v4826_v31 = vpop.f32.mrb[13].mxu1 }
 0x58a   : > { %v4805_v33 = vadd.f32 %v4804_v36, %v4803_v29  ;;  %v4827_v9 = vadd.f32 %v4826_v31, %v4825_v28  ;;  %v4806_v37 = vpop.f32.mrb[14].mxu0  ;;  %v4828_v38 = vpop.f32.mrb[14].mxu1 }
 0x58b   : > { %v4807_v39 = vpop.f32.mrb[15].mxu0  ;;  %v4829_v42 = vpop.f32.mrb[15].mxu1 }
 0x58c   : > { %v3940_v57 = vadd.f32 %v4805_v33, %v3900_v19 }
 0x58e   : > { %v3980_v43 = vadd.f32 %v4827_v9, %v3940_v57  ;;  %v4405_v9 = vsub.s32 4, %v5533_v26 }
 0x5a8   : > { %v4847_v44 = vpop.f32.mrb[16].mxu0  ;;  %v4869_v53 = vpop.f32.mrb[16].mxu1 }
 0x5a9   : > { %v4848_v5 = vpop.f32.mrb[17].mxu0  ;;  %v4870_v34 = vpop.f32.mrb[17].mxu1 }
 0x5aa   : > { %v4849_v6 = vadd.f32 %v4848_v5, %v4847_v44  ;;  %v4871_v13 = vadd.f32 %v4870_v34, %v4869_v53  ;;  %v4850_v48 = vpop.f32.mrb[18].mxu0  ;;  %v4872_v8 = vpop.f32.mrb[18].mxu1  ;;  %v4406_v34 = vrot.slane %v6435_v45, %v4405_v9 }
 0x5ab   : > { %v4851_v32 = vpop.f32.mrb[19].mxu0  ;;  %v4873_v10 = vpop.f32.mrb[19].mxu1 }
 0x5ac   : > { %v4020_v52 = vadd.f32 %v4849_v6, %v3980_v43 }
 0x5ae   : > { %v4060_v14 = vadd.f32 %v4871_v13, %v4020_v52 }
 0x5c8   : > { %v4891_v16 = vpop.f32.mrb[20].mxu0  ;;  %v4913_v40 = vpop.f32.mrb[20].mxu1 }
 0x5c9   : > { %v4892_v4 = vpop.f32.mrb[21].mxu0  ;;  %v4914_v25 = vpop.f32.mrb[21].mxu1 }
 0x5ca   : > { %v4893_v58 = vadd.f32 %v4892_v4, %v4891_v16  ;;  %v4915_v27 = vadd.f32 %v4914_v25, %v4913_v40  ;;  %v4894_v55 = vpop.f32.mrb[22].mxu0  ;;  %v4916_v22 = vpop.f32.mrb[22].mxu1  ;;  %v4493_v16 = vrot.slane %v6491_v18, %v4405_v9  ;;  %v4580_v18 = vrot.slane %v4573_v24, %v5540_v35 }
 0x5cb   : > { %v4895_v30 = vpop.f32.mrb[23].mxu0  ;;  %v4917_v41 = vpop.f32.mrb[23].mxu1 }
 0x5cc   : > { %v4100_v11 = vadd.f32 %v4893_v58, %v4060_v14 }
 0x5ce   : > { %v4140_v47 = vadd.f32 %v4915_v27, %v4100_v11 }
 0x5e8   : > { %v4935_v50 = vpop.f32.mrb[24].mxu0  ;;  %v4957_v2 = vpop.f32.mrb[24].mxu1 }
 0x5e9   : > { %v4936_v21 = vpop.f32.mrb[25].mxu0  ;;  %v4958_v12 = vpop.f32.mrb[25].mxu1 }
 0x5ea   : > { %v4937_v49 = vadd.f32 %v4936_v21, %v4935_v50  ;;  %v4959_v46 = vadd.f32 %v4958_v12, %v4957_v2  ;;  %v4938_v56 = vpop.f32.mrb[26].mxu0  ;;  %v4960_v51 = vpop.f32.mrb[26].mxu1 }
 0x5eb   : > { %v4939_v61 = vpop.f32.mrb[27].mxu0  ;;  %v4961_v60 = vpop.f32.mrb[27].mxu1 }
 0x5ec   : > { %v4180_v62 = vadd.f32 %v4937_v49, %v4140_v47 }
 0x5ee   : > { %v4220_v0 = vadd.f32 %v4959_v46, %v4180_v62 }
 0x608   : > { %v4979_v3 = vpop.f32.mrb[28].mxu0  ;;  %v5001_v7 = vpop.f32.mrb[28].mxu1 }
 0x609   : > { %v4980_v59 = vpop.f32.mrb[29].mxu0  ;;  %v5002_v1 = vpop.f32.mrb[29].mxu1 }
 0x60a   : > { %v4981_v15 = vadd.f32 %v4980_v59, %v4979_v3  ;;  %v5003_v54 = vadd.f32 %v5002_v1, %v5001_v7  ;;  %v4982_v23 = vpop.f32.mrb[30].mxu0  ;;  %v5004_v19 = vpop.f32.mrb[30].mxu1 }
 0x60b   : > { %v4983_v29 = vpop.f32.mrb[31].mxu0  ;;  %v5005_v28 = vpop.f32.mrb[31].mxu1 }
 0x60c   : > { %v4260_v36 = vadd.f32 %v4981_v15, %v4220_v0 }
 0x60e   : > { %v4300_v31 = vadd.f32 %v5003_v54, %v4260_v36 }
 0x628   : > { %v5023_v33 = vpop.f32.mrb[32].mxu0 }
 0x629   : > { %v5045_v37 = vpop.f32.mrb[32].mxu1  ;;  %v5024_v38 = vpop.f32.mrb[33].mxu0 }
 0x62a   : > { %v5025_v39 = vadd.f32 %v5024_v38, %v5023_v33  ;;  %v5046_v42 = vpop.f32.mrb[33].mxu1  ;;  %v5026_v57 = vpop.f32.mrb[34].mxu0 }
 0x62b   : > { %v5047_v43 = vadd.f32 %v5046_v42, %v5045_v37  ;;  %v5048_v44 = vpop.f32.mrb[34].mxu1  ;;  %v5027_v53 = vpop.f32.mrb[35].mxu0 }
 0x62c   : > { %v4340_v5 = vadd.f32 %v5025_v39, %v4300_v31  ;;  %v5049_v6 = vpop.f32.mrb[35].mxu1 }
 0x62e   : > { %v4380_v13 = vadd.f32 %v5047_v43, %v4340_v5 }
 0x630   : > { %v4416_v48 = vmul.f32 %v4406_v34, %v4380_v13 }
 0x632   : > { %v4422_v8 = vsub.f32 0.0, %v4416_v48 }
 0x634   : > { %v4431_v32 = vmul.f32 1.442695, %v4422_v8 }
 0x636   : > { %5256 = vpow2.f32 %v4431_v32 }
 0x640   : > { %v5257_v10 = vpop.eup %5256 }
 0x641   : > { %v4437_v52 = vmul.f32 4096.0, %v5257_v10 }
 0x643   : > { %5258 = vrsqrt.f32 %v4437_v52  ;;  %vm4468_vm8 = vcmp.eq.f32.partialorder %v4437_v52, inf  ;;  %v4471_v40 = vand.u32 2147483648, %v4437_v52  ;;  %vm4470_vm9 = vcmp.eq.f32.partialorder %v4437_v52, 0.0 }
 0x64d   : > { %v5259_v26 = vpop.eup %5258 }
 0x64e   : > { %v4467_v14 = vmul.f32 %v5259_v26, %v4437_v52 }
 0x650   : > { %v4469_v4 = vsel %vm4468_vm8, %v4437_v52, %v4467_v14 }
 0x651   : > { %v4472_v25 = vsel %vm4470_vm9, %v4471_v40, %v4469_v4 }
 0x652   : > { %v4503_v45 = vmul.f32 %v4493_v16, %v4472_v25 }
 0x654   : > { %v4508_v58 = vadd.f32 %v4503_v45, %v4437_v52 }
 0x656   : > { %v5179_v27 = vround.rtne.f32 %v4508_v58 }
 0x658   : > { %v4518_v55 = vmax.f32 %v5179_v27, 0.0 }
 0x65a   : > { %v4524_v22 = vmul.f32 0.00024414063, %v4518_v55 }
 0x65c   : > { %v4529_v30 = vmax.f32 %v4524_v22, 2.4414063e-05 }
 0x65e   : > { %5260 = vlog2.f32 %v4529_v30 }
 0x668   : > { %v5261_v41 = vpop.eup %5260 }
 0x669   : > { %v4539_v11 = vmul.f32 0.6931472, %v5261_v41 }
 0x66b   : > { %v4544_v47 = vmul.f32 -0.012291267, %v4539_v11 }
 0x66d   : > { %v4572_v50 = vrot.slane %v4544_v47, %v5540_v35 }
 0x66f   : > { %v4587_v2 = vrot.slane %v4572_v50, %v5540_v35 }
 0x671   : > { %v4588_v21 = vcombine.low %v4580_v18, %v4587_v2 }
 0x673   : > { %4594 = vst.msk [vmem:[%s274_s6] sm:$0x1f] %vm4592_vm10, %v4588_v21 }
 0x674 PF: > { %p17_p8 = scmp.ge.s32.totalorder %s5413_s20, 4   ;;  %s6606_s15 = smov %s5352_s16 }
 0x675   : > { %s6607_s16 = smov %s5356_s17  ;;  %s6608_s17 = smov %s5423_s23 }
 0x676   : > { %s6609_s18 = smov %s5413_s20  ;;  %19 = sbr.rel (!%p17_p8) target bundleno = 5 (0x5), region = 92 }
 0x67d   :  { %4615 = vsyncpa [#allocation3], 1 }
 0x67e   :  { %4617 = vsyncpa [#allocation3 + $0x1], 1 }
 0x67f   :  { %4618 = vsyncpa [#allocation5], 1 }
 0x680   :  { %4620 = vsyncpa [#allocation5 + $0x1], 1 }

</bundles_post_ra>
